<compile_context>
chip_gen: v5e
topology: v5e:2x2
jax: 0.10.0
libtpu: 0.0.40
codegen_flags: <defaults>
</compile_context>

<pallas_src>
import numpy as np
import jax
import jax.numpy as jnp
from jax.experimental import pallas as pl
from jax.experimental.pallas import tpu as pltpu

# ----------------------------- configuration --------------------------------
IGNORE_ID = -1
SOS_ID = 1
EOS_ID = 2
N_VOCAB = 50
V_PAD = 128            # lane-dense padded vocab width for the final store
D_MODEL = 32           # = d_word_vec
D_INNER = 64
N_LAYERS = 2
N_HEAD = 4
D_K = 8
D_V = 8
HK = N_HEAD * D_K      # width of the K part of the fused KV projection
LORDER = 20            # DFSMN left (past) memory order
N_TAPS = LORDER + 1
LN_EPS = 1e-5          # PyTorch nn.LayerNorm default
INV_TEMP = float(1.0 / np.sqrt(D_K))
NEG_BIG = -1e30        # finite "minus infinity" (avoids NaN on fully-masked rows)


# ------------------------------ fused kernel ---------------------------------
def _layer_norm(z, g, b):
    mean = jnp.mean(z, axis=-1, keepdims=True)
    var = jnp.mean((z - mean) ** 2, axis=-1, keepdims=True)
    return (z - mean) * jax.lax.rsqrt(var + LN_EPS) * g + b


def _make_decoder_kernel(*, T, TK, BB, n_taps_eff):
    """Build the fused kernel for BB batch elements per grid step."""
    R = BB * T          # folded decoder rows per step
    bf16 = jnp.bfloat16

    def kernel(lens_ref, dec_ref, npm_ref, enc_ref,
               ffn_w1_ref, ffn_b1_ref, ffn_w2_ref, ffn_b2_ref, ffn_g_ref, ffn_bt_ref,
               df_we_ref, df_be_ref, df_wp_ref, df_filt_ref, df_wo_ref, df_bo_ref,
               wq_ref, bq_ref, wkv_ref, bkv_ref,
               fc_w_ref, fc_b_ref, mha_g_ref, mha_bt_ref,
               prj_ref, o_ref):
        g = pl.program_id(0)
        x = dec_ref[...]                                            # (R, D)   f32
        enc = enc_ref[...]                                          # (BB*TK, D) bf16
        # hoisted: non_pad_mask broadcast once, reused 6x across the layer loop
        npm = jnp.broadcast_to(npm_ref[...], (R, D_MODEL))          # (R, D)   f32

        # hoisted: per-batch additive enc/dec attention mask built in-kernel from enc
        # lengths (SMEM scalar prefetch) -- replaces the dense (B,T,TK) f32 mask DMA.
        kpos = jax.lax.broadcasted_iota(jnp.int32, (T, TK), 1)
        mask_adds = []
        for b in range(BB):
            ln = lens_ref[g * BB + b]
            madd = jnp.where(kpos >= ln, NEG_BIG, 0.0)              # (T, TK) f32
            mask_adds.append(jnp.broadcast_to(madd[None], (N_HEAD, T, TK)))

        # hoisted: per-row within-sequence position masks so the folded DFSMN memory
        # never leaks across batch boundaries (layer-invariant).
        if BB > 1:
            tpos_seq = jax.lax.broadcasted_iota(jnp.int32, (T, 1), 0)
            tpos = jnp.concatenate([tpos_seq] * BB, axis=0)         # (R, 1)
            tap_valid = [tpos >= k for k in range(n_taps_eff)]      # [0] unused
        else:
            tap_valid = None

        for l in range(N_LAYERS):                                   # statically unrolled
            # ---- PositionwiseFeedForward (+ residual + post-LayerNorm) ----
            h = jnp.maximum(
                jnp.dot(x.astype(bf16), ffn_w1_ref[l],
                        preferred_element_type=jnp.float32) + ffn_b1_ref[l], 0.0)
            y = jnp.dot(h.astype(bf16), ffn_w2_ref[l],
                        preferred_element_type=jnp.float32) + ffn_b2_ref[l] + x
            out1 = _layer_norm(y, ffn_g_ref[l], ffn_bt_ref[l]) * npm

            # ---- DFSMN unidirectional memory block ----
            he = jnp.maximum(
                jnp.dot(out1.astype(bf16), df_we_ref[l],
                        preferred_element_type=jnp.float32) + df_be_ref[l], 0.0)
            p = jnp.dot(he.astype(bf16), df_wp_ref[l],
                        preferred_element_type=jnp.float32)         # (R, D) f32
            filt = df_filt_ref[l]                                   # (N_TAPS, D) f32
            mem = p * filt[0:1, :]
            if n_taps_eff > 1:
                # only taps that can touch real data (k < T); the rest multiply zeros
                p_pad = jnp.concatenate(
                    [jnp.zeros((n_taps_eff - 1, D_MODEL), jnp.float32), p], axis=0)
                for k in range(1, n_taps_eff):
                    off = n_taps_eff - 1 - k
                    shifted = p_pad[off:off + R, :]
                    if BB > 1:
                        shifted = jnp.where(tap_valid[k], shifted, 0.0)
                    mem = mem + shifted * filt[k:k + 1, :]
            out2 = (jnp.dot(mem.astype(bf16), df_wo_ref[l],
                            preferred_element_type=jnp.float32)
                    + df_bo_ref[l] + out1) * npm

            # ---- encoder/decoder multi-head attention (head-batched) ----
            # 1/sqrt(d_k) is folded into wq/bq at init time.
            q_all = jnp.dot(out2.astype(bf16), wq_ref[l],
                            preferred_element_type=jnp.float32) + bq_ref[l]    # (R, H*dk)
            kv_all = jnp.dot(enc, wkv_ref[l],
                             preferred_element_type=jnp.float32) + bkv_ref[l]  # (BB*TK, H*(dk+dv))
            ctx_parts = []
            for b in range(BB):                                     # tiny per-batch loop
                qb = q_all[b * T:(b + 1) * T, :]                     # (T, H*dk)
                kvb = kv_all[b * TK:(b + 1) * TK, :]                 # (TK, H*(dk+dv))
                qh = jnp.stack([qb[:, hd * D_K:(hd + 1) * D_K]
                                for hd in range(N_HEAD)], axis=0)    # (H, T, dk)
                kh = jnp.stack([kvb[:, hd * D_K:(hd + 1) * D_K]
                                for hd in range(N_HEAD)], axis=0)    # (H, TK, dk)
                vh = jnp.stack([kvb[:, HK + hd * D_V:HK + (hd + 1) * D_V]
                                for hd in range(N_HEAD)], axis=0)    # (H, TK, dv)
                s = jnp.einsum('htd,hkd->htk', qh, kh,
                               preferred_element_type=jnp.float32)   # (H, T, TK)
                s = s + mask_adds[b]
                e = jnp.exp(s - jnp.max(s, axis=-1, keepdims=True))
                attn = e * pl.reciprocal(jnp.sum(e, axis=-1, keepdims=True),
                                         approx=True)
                ctx_h = jnp.einsum('htk,hkd->htd', attn, vh,
                                   preferred_element_type=jnp.float32)  # (H, T, dv)
                ctx_parts.append(jnp.concatenate(
                    [ctx_h[hd] for hd in range(N_HEAD)], axis=-1))   # (T, H*dv)
            ctx = ctx_parts[0] if BB == 1 else jnp.concatenate(ctx_parts, axis=0)
            y2 = jnp.dot(ctx.astype(bf16), fc_w_ref[l],
                         preferred_element_type=jnp.float32) + fc_b_ref[l] + out2
            x = _layer_norm(y2, mha_g_ref[l], mha_bt_ref[l]) * npm

        # ---- shared-weight vocab projection (lane-dense, padded to V_PAD) ----
        o_ref[...] = jnp.dot(x.astype(bf16), prj_ref[...],
                             preferred_element_type=jnp.float32)

    return kernel


# ------------------------------ Pallas wrapper -------------------------------
def _num_grid_steps(B, T, TK):
    # 1 grid step folds the whole batch (best on single-TC v5e/v6e; ~0.35us/step saved).
    # 2 grid steps only when the batch splits cleanly and per-step row counts stay
    # (8,128)-tileable, so v7x's two TensorCores both get work ("parallel" semantics).
    if B >= 4 and B % 2 == 0 and ((B // 2) * T) % 8 == 0 and ((B // 2) * TK) % 8 == 0:
        return 2
    return 1


def fused_decoder(dec0_2d, npm_2d, enc_2d, enc_lengths, p, emb_prj, *, B, T, TK):
    G = _num_grid_steps(B, T, TK)
    BB = B // G
    RB, KB = BB * T, BB * TK

    weight_args = [
        p['ffn_w1'], p['ffn_b1'], p['ffn_w2'], p['ffn_b2'], p['ffn_g'], p['ffn_beta'],
        p['df_we'], p['df_be'], p['df_wp'], p['df_filt'], p['df_wo'], p['df_bo'],
        p['wq'], p['bq'], p['wkv'], p['bkv'],
        p['fc_w'], p['fc_b'], p['mha_g'], p['mha_beta'],
        emb_prj,
    ]

    def _blk(shape):                       # per-grid-step row block
        return pl.BlockSpec(shape, lambda g, lens: (g, 0))

    def _rep(shape):                       # grid-invariant (weights resident in VMEM)
        zeros = (0,) * len(shape)
        return pl.BlockSpec(shape, lambda g, lens, _z=zeros: _z)
        # NOTE: at larger D_MODEL/N_LAYERS add pipeline_mode=pl.Buffered(1) here to drop
        # the redundant double-buffer for these constant-index weight blocks.

    in_specs = ([_blk((RB, D_MODEL)), _blk((RB, 1)), _blk((KB, D_MODEL))]
                + [_rep(tuple(w.shape)) for w in weight_args])

    kernel = _make_decoder_kernel(T=T, TK=TK, BB=BB, n_taps_eff=min(N_TAPS, T))

    return pl.pallas_call(
        kernel,
        out_shape=jax.ShapeDtypeStruct((B * T, V_PAD), jnp.float32),
        grid_spec=pltpu.PrefetchScalarGridSpec(
            num_scalar_prefetch=1,
            grid=(G,),
            in_specs=in_specs,
            out_specs=_blk((RB, V_PAD)),
        ),
        compiler_params=pltpu.CompilerParams(
            dimension_semantics=("parallel",)),
    )(enc_lengths, dec0_2d, npm_2d, enc_2d, *weight_args)


# ------------------------------ model plumbing -------------------------------
def init_params(key):
    keys = iter(jax.random.split(key, 32))

    def nrm(shape, scale=0.1):
        return jax.random.normal(next(keys), shape, jnp.float32) * scale

    def mm(x):                       # matmul operands stored in bf16 (halves weight DMA)
        return x.astype(jnp.bfloat16)

    L = N_LAYERS
    return dict(
        emb=nrm((N_VOCAB, D_MODEL), 1.0 / np.sqrt(D_MODEL)),   # shared emb / projection (f32)
        ffn_w1=mm(nrm((L, D_MODEL, D_INNER))),
        ffn_b1=jnp.zeros((L, 1, D_INNER), jnp.float32),
        ffn_w2=mm(nrm((L, D_INNER, D_MODEL))),
        ffn_b2=jnp.zeros((L, 1, D_MODEL), jnp.float32),
        ffn_g=jnp.ones((L, 1, D_MODEL), jnp.float32),
        ffn_beta=jnp.zeros((L, 1, D_MODEL), jnp.float32),
        df_we=mm(nrm((L, D_MODEL, D_INNER))),
        df_be=jnp.zeros((L, 1, D_INNER), jnp.float32),
        df_wp=mm(nrm((L, D_INNER, D_MODEL))),
        df_filt=nrm((L, N_TAPS, D_MODEL)),                     # elementwise use -> f32
        df_wo=mm(nrm((L, D_MODEL, D_MODEL))),
        df_bo=jnp.zeros((L, 1, D_MODEL), jnp.float32),
        # attention 1/sqrt(d_k) score scaling folded into the Q projection:
        wq=mm(nrm((L, D_MODEL, N_HEAD * D_K)) * INV_TEMP),
        bq=jnp.zeros((L, 1, N_HEAD * D_K), jnp.float32),
        wkv=mm(nrm((L, D_MODEL, N_HEAD * (D_K + D_V)))),       # fused K/V projection
        bkv=jnp.zeros((L, 1, N_HEAD * (D_K + D_V)), jnp.float32),
        fc_w=mm(nrm((L, N_HEAD * D_V, D_MODEL))),
        fc_b=jnp.zeros((L, 1, D_MODEL), jnp.float32),
        mha_g=jnp.ones((L, 1, D_MODEL), jnp.float32),
        mha_beta=jnp.zeros((L, 1, D_MODEL), jnp.float32),
    )


@jax.jit
def decoder_forward(params, ys_in_pad, enc_out, enc_lengths):
    B, T = ys_in_pad.shape
    TK = enc_out.shape[1]
    emb = params['emb']
    x_logit_scale = D_MODEL ** (-0.5)                          # weight-sharing branch
    dec0 = jnp.take(emb, ys_in_pad, axis=0) * x_logit_scale    # (B, T, D) f32
    non_pad_mask = (ys_in_pad != EOS_ID).astype(jnp.float32)   # mirrors get_non_pad_mask
    # lane-dense shared projection weight: emb.T zero-padded 50 -> 128 cols, bf16 storage
    emb_prj = jnp.pad(emb.T, ((0, 0), (0, V_PAD - N_VOCAB))).astype(jnp.bfloat16)
    logits = fused_decoder(
        dec0.reshape(B * T, D_MODEL),
        non_pad_mask.reshape(B * T, 1),
        enc_out.astype(jnp.bfloat16).reshape(B * TK, D_MODEL),
        enc_lengths.astype(jnp.int32),
        params, emb_prj, B=B, T=T, TK=TK)                      # (B*T, 128)
    return logits.reshape(B, T, V_PAD)[:, :, :N_VOCAB]


# host-side (data-dependent-shape) preprocessing, mirrors Decoder.preprocess
def preprocess(padded_input_np):
    B, L = padded_input_np.shape
    max_len = L + 2
    ys_in = np.full((B, max_len), EOS_ID, dtype=np.int32)
    ys_out = np.full((B, max_len), IGNORE_ID, dtype=np.int32)
    for b in range(B):
        y = padded_input_np[b][padded_input_np[b] != IGNORE_ID]
        ys_in[b, 0] = SOS_ID
        ys_in[b, 1:1 + len(y)] = y
        ys_out[b, :len(y)] = y
        ys_out[b, len(y)] = EOS_ID
    return ys_in, ys_out


# ----------------------------------- main ------------------------------------
if __name__ == "__main__":
    B, L_IN, T_ENC = 2, 6, 10
    key = jax.random.PRNGKey(0)
    k_param, k_tok, k_enc = jax.random.split(key, 3)

    params = init_params(k_param)

    # target token ids with IGNORE_ID padding (row lengths 6 and 4)
    toks = np.array(jax.random.randint(k_tok, (B, L_IN), 3, N_VOCAB), dtype=np.int32)
    toks[1, 4:] = IGNORE_ID
    ys_in_pad, ys_out_pad = preprocess(toks)                   # (B, L_IN + 2) = (2, 8)
    T_DEC = ys_in_pad.shape[1]

    enc_lengths = jnp.array([10, 7], dtype=jnp.int32)          # mirrors encoder_input_lengths
    enc_out = jax.random.normal(k_enc, (B, T_ENC, D_MODEL), jnp.float32)

    pred = decoder_forward(params,
                           jnp.asarray(ys_in_pad),
                           enc_out,
                           enc_lengths)
    gold = ys_out_pad                                          # (B, T_DEC)

    jax.block_until_ready(pred)
    assert pred.shape == (B, T_DEC, N_VOCAB)
    assert gold.shape == (B, T_DEC)
    assert bool(jnp.all(jnp.isfinite(pred)))
    print("KERNEL_OK")
</pallas_src>

<mosaic_0001>
module attributes {stable_mosaic.version = 11 : i64} {
  func.func @kernel(%arg0: i32, %arg1: memref<2xi32, #tpu.memory_space<smem>>, %arg2: memref<16x32xf32, #tpu.memory_space<vmem>>, %arg3: memref<16x1xf32, #tpu.memory_space<vmem>>, %arg4: memref<20x32xbf16, #tpu.memory_space<vmem>>, %arg5: memref<2x32x64xbf16, #tpu.memory_space<vmem>>, %arg6: memref<2x1x64xf32, #tpu.memory_space<vmem>>, %arg7: memref<2x64x32xbf16, #tpu.memory_space<vmem>>, %arg8: memref<2x1x32xf32, #tpu.memory_space<vmem>>, %arg9: memref<2x1x32xf32, #tpu.memory_space<vmem>>, %arg10: memref<2x1x32xf32, #tpu.memory_space<vmem>>, %arg11: memref<2x32x64xbf16, #tpu.memory_space<vmem>>, %arg12: memref<2x1x64xf32, #tpu.memory_space<vmem>>, %arg13: memref<2x64x32xbf16, #tpu.memory_space<vmem>>, %arg14: memref<2x21x32xf32, #tpu.memory_space<vmem>>, %arg15: memref<2x32x32xbf16, #tpu.memory_space<vmem>>, %arg16: memref<2x1x32xf32, #tpu.memory_space<vmem>>, %arg17: memref<2x32x32xbf16, #tpu.memory_space<vmem>>, %arg18: memref<2x1x32xf32, #tpu.memory_space<vmem>>, %arg19: memref<2x32x64xbf16, #tpu.memory_space<vmem>>, %arg20: memref<2x1x64xf32, #tpu.memory_space<vmem>>, %arg21: memref<2x32x32xbf16, #tpu.memory_space<vmem>>, %arg22: memref<2x1x32xf32, #tpu.memory_space<vmem>>, %arg23: memref<2x1x32xf32, #tpu.memory_space<vmem>>, %arg24: memref<2x1x32xf32, #tpu.memory_space<vmem>>, %arg25: memref<32x128xbf16, #tpu.memory_space<vmem>>, %arg26: memref<16x128xf32, #tpu.memory_space<vmem>>) attributes {dimension_semantics = [#tpu.dimension_semantics<parallel>], iteration_bounds = array<i64: 1>, scalar_prefetch = 1 : i64, scratch_operands = 0 : i64, tpu.core_type = #tpu.core_type<tc>, window_params = [{transform_indices = @transform_0, window_bounds = array<i64: 16, 32>}, {transform_indices = @transform_1, window_bounds = array<i64: 16, 1>}, {transform_indices = @transform_2, window_bounds = array<i64: 20, 32>}, {pipeline_mode = #tpu.pipeline_mode<synchronous>, transform_indices = @transform_3, window_bounds = array<i64: 2, 32, 64>}, {pipeline_mode = #tpu.pipeline_mode<synchronous>, transform_indices = @transform_4, window_bounds = array<i64: 2, 1, 64>}, {pipeline_mode = #tpu.pipeline_mode<synchronous>, transform_indices = @transform_5, window_bounds = array<i64: 2, 64, 32>}, {pipeline_mode = #tpu.pipeline_mode<synchronous>, transform_indices = @transform_6, window_bounds = array<i64: 2, 1, 32>}, {pipeline_mode = #tpu.pipeline_mode<synchronous>, transform_indices = @transform_7, window_bounds = array<i64: 2, 1, 32>}, {pipeline_mode = #tpu.pipeline_mode<synchronous>, transform_indices = @transform_8, window_bounds = array<i64: 2, 1, 32>}, {pipeline_mode = #tpu.pipeline_mode<synchronous>, transform_indices = @transform_9, window_bounds = array<i64: 2, 32, 64>}, {pipeline_mode = #tpu.pipeline_mode<synchronous>, transform_indices = @transform_10, window_bounds = array<i64: 2, 1, 64>}, {pipeline_mode = #tpu.pipeline_mode<synchronous>, transform_indices = @transform_11, window_bounds = array<i64: 2, 64, 32>}, {pipeline_mode = #tpu.pipeline_mode<synchronous>, transform_indices = @transform_12, window_bounds = array<i64: 2, 21, 32>}, {pipeline_mode = #tpu.pipeline_mode<synchronous>, transform_indices = @transform_13, window_bounds = array<i64: 2, 32, 32>}, {pipeline_mode = #tpu.pipeline_mode<synchronous>, transform_indices = @transform_14, window_bounds = array<i64: 2, 1, 32>}, {pipeline_mode = #tpu.pipeline_mode<synchronous>, transform_indices = @transform_15, window_bounds = array<i64: 2, 32, 32>}, {pipeline_mode = #tpu.pipeline_mode<synchronous>, transform_indices = @transform_16, window_bounds = array<i64: 2, 1, 32>}, {pipeline_mode = #tpu.pipeline_mode<synchronous>, transform_indices = @transform_17, window_bounds = array<i64: 2, 32, 64>}, {pipeline_mode = #tpu.pipeline_mode<synchronous>, transform_indices = @transform_18, window_bounds = array<i64: 2, 1, 64>}, {pipeline_mode = #tpu.pipeline_mode<synchronous>, transform_indices = @transform_19, window_bounds = array<i64: 2, 32, 32>}, {pipeline_mode = #tpu.pipeline_mode<synchronous>, transform_indices = @transform_20, window_bounds = array<i64: 2, 1, 32>}, {pipeline_mode = #tpu.pipeline_mode<synchronous>, transform_indices = @transform_21, window_bounds = array<i64: 2, 1, 32>}, {pipeline_mode = #tpu.pipeline_mode<synchronous>, transform_indices = @transform_22, window_bounds = array<i64: 2, 1, 32>}, {pipeline_mode = #tpu.pipeline_mode<synchronous>, transform_indices = @transform_23, window_bounds = array<i64: 32, 128>}, {transform_indices = @transform_24, window_bounds = array<i64: 16, 128>}]} {
    %c0 = arith.constant 0 : index
    %c0_0 = arith.constant 0 : index
    %0 = vector.load %arg2[%c0, %c0_0] : memref<16x32xf32, #tpu.memory_space<vmem>>, vector<16x32xf32>
    %c0_1 = arith.constant 0 : index
    %c0_2 = arith.constant 0 : index
    %1 = vector.load %arg4[%c0_1, %c0_2] : memref<20x32xbf16, #tpu.memory_space<vmem>>, vector<20x32xbf16>
    %c0_3 = arith.constant 0 : index
    %c0_4 = arith.constant 0 : index
    %2 = vector.load %arg3[%c0_3, %c0_4] : memref<16x1xf32, #tpu.memory_space<vmem>>, vector<16x1xf32>
    %3 = vector.shape_cast %2 : vector<16x1xf32> to vector<16x1xf32>
    %4 = vector.broadcast %3 : vector<16x1xf32> to vector<16x32xf32>
    %5 = tpu.iota {dimensions = array<i32: 1>} : vector<8x10xi32>
    %c2_i32 = arith.constant 2 : i32
    %6 = arith.muli %arg0, %c2_i32 : i32
    %c0_i32 = arith.constant 0 : i32
    %7 = arith.addi %6, %c0_i32 : i32
    %8 = arith.index_cast %7 : i32 to index
    %9 = memref.load %arg1[%8] : memref<2xi32, #tpu.memory_space<smem>>
    %10 = vector.broadcast %9 : i32 to vector<8x10xi32>
    %11 = arith.cmpi sge, %5, %10 : vector<8x10xi32>
    %cst = arith.constant -1.000000e+30 : f32
    %cst_5 = arith.constant 0.000000e+00 : f32
    %12 = vector.broadcast %cst : f32 to vector<8x10xf32>
    %13 = vector.broadcast %cst_5 : f32 to vector<8x10xf32>
    %14 = arith.select %11, %12, %13 : vector<8x10xi1>, vector<8x10xf32>
    %15 = vector.shape_cast %14 : vector<8x10xf32> to vector<1x8x10xf32>
    %16 = vector.shape_cast %15 : vector<1x8x10xf32> to vector<1x8x10xf32>
    %17 = vector.broadcast %16 : vector<1x8x10xf32> to vector<4x8x10xf32>
    %c2_i32_6 = arith.constant 2 : i32
    %18 = arith.muli %arg0, %c2_i32_6 : i32
    %c1_i32 = arith.constant 1 : i32
    %19 = arith.addi %18, %c1_i32 : i32
    %20 = arith.index_cast %19 : i32 to index
    %21 = memref.load %arg1[%20] : memref<2xi32, #tpu.memory_space<smem>>
    %22 = vector.broadcast %21 : i32 to vector<8x10xi32>
    %23 = arith.cmpi sge, %5, %22 : vector<8x10xi32>
    %cst_7 = arith.constant -1.000000e+30 : f32
    %cst_8 = arith.constant 0.000000e+00 : f32
    %24 = vector.broadcast %cst_7 : f32 to vector<8x10xf32>
    %25 = vector.broadcast %cst_8 : f32 to vector<8x10xf32>
    %26 = arith.select %23, %24, %25 : vector<8x10xi1>, vector<8x10xf32>
    %27 = vector.shape_cast %26 : vector<8x10xf32> to vector<1x8x10xf32>
    %28 = vector.shape_cast %27 : vector<1x8x10xf32> to vector<1x8x10xf32>
    %29 = vector.broadcast %28 : vector<1x8x10xf32> to vector<4x8x10xf32>
    %30 = tpu.iota {dimensions = array<i32: 0>} : vector<8x1xi32>
    %31 = tpu.concatenate %30, %30 in 0 : vector<8x1xi32>, vector<8x1xi32> -> vector<16x1xi32>
    %c1_i32_9 = arith.constant 1 : i32
    %32 = vector.broadcast %c1_i32_9 : i32 to vector<16x1xi32>
    %33 = arith.cmpi sge, %31, %32 : vector<16x1xi32>
    %c2_i32_10 = arith.constant 2 : i32
    %34 = vector.broadcast %c2_i32_10 : i32 to vector<16x1xi32>
    %35 = arith.cmpi sge, %31, %34 : vector<16x1xi32>
    %c3_i32 = arith.constant 3 : i32
    %36 = vector.broadcast %c3_i32 : i32 to vector<16x1xi32>
    %37 = arith.cmpi sge, %31, %36 : vector<16x1xi32>
    %c4_i32 = arith.constant 4 : i32
    %38 = vector.broadcast %c4_i32 : i32 to vector<16x1xi32>
    %39 = arith.cmpi sge, %31, %38 : vector<16x1xi32>
    %c5_i32 = arith.constant 5 : i32
    %40 = vector.broadcast %c5_i32 : i32 to vector<16x1xi32>
    %41 = arith.cmpi sge, %31, %40 : vector<16x1xi32>
    %c6_i32 = arith.constant 6 : i32
    %42 = vector.broadcast %c6_i32 : i32 to vector<16x1xi32>
    %43 = arith.cmpi sge, %31, %42 : vector<16x1xi32>
    %c7_i32 = arith.constant 7 : i32
    %44 = vector.broadcast %c7_i32 : i32 to vector<16x1xi32>
    %45 = arith.cmpi sge, %31, %44 : vector<16x1xi32>
    %46 = arith.truncf %0 : vector<16x32xf32> to vector<16x32xbf16>
    %c0_11 = arith.constant 0 : index
    %c0_12 = arith.constant 0 : index
    %c0_13 = arith.constant 0 : index
    %47 = vector.load %arg5[%c0_11, %c0_12, %c0_13] : memref<2x32x64xbf16, #tpu.memory_space<vmem>>, vector<1x32x64xbf16>
    %48 = vector.shape_cast %47 : vector<1x32x64xbf16> to vector<32x64xbf16>
    %cst_14 = arith.constant dense<0.000000e+00> : vector<16x64xf32>
    %49 = tpu.matmul %46, %48, %cst_14 {dimension_numbers = #tpu.dot_dimension_numbers<[1], [0], [0], [1], [0, 0, 1, 1], [], []>} : vector<16x32xbf16>, vector<32x64xbf16>, vector<16x64xf32> -> vector<16x64xf32>
    %c0_15 = arith.constant 0 : index
    %c0_16 = arith.constant 0 : index
    %c0_17 = arith.constant 0 : index
    %50 = vector.load %arg6[%c0_15, %c0_16, %c0_17] : memref<2x1x64xf32, #tpu.memory_space<vmem>>, vector<1x1x64xf32>
    %51 = vector.shape_cast %50 : vector<1x1x64xf32> to vector<1x64xf32>
    %52 = vector.broadcast %51 : vector<1x64xf32> to vector<16x64xf32>
    %53 = arith.addf %49, %52 : vector<16x64xf32>
    %cst_18 = arith.constant 0.000000e+00 : f32
    %54 = vector.broadcast %cst_18 : f32 to vector<16x64xf32>
    %55 = arith.maximumf %53, %54 : vector<16x64xf32>
    %56 = arith.truncf %55 : vector<16x64xf32> to vector<16x64xbf16>
    %c0_19 = arith.constant 0 : index
    %c0_20 = arith.constant 0 : index
    %c0_21 = arith.constant 0 : index
    %57 = vector.load %arg7[%c0_19, %c0_20, %c0_21] : memref<2x64x32xbf16, #tpu.memory_space<vmem>>, vector<1x64x32xbf16>
    %58 = vector.shape_cast %57 : vector<1x64x32xbf16> to vector<64x32xbf16>
    %cst_22 = arith.constant dense<0.000000e+00> : vector<16x32xf32>
    %59 = tpu.matmul %56, %58, %cst_22 {dimension_numbers = #tpu.dot_dimension_numbers<[1], [0], [0], [1], [0, 0, 1, 1], [], []>} : vector<16x64xbf16>, vector<64x32xbf16>, vector<16x32xf32> -> vector<16x32xf32>
    %c0_23 = arith.constant 0 : index
    %c0_24 = arith.constant 0 : index
    %c0_25 = arith.constant 0 : index
    %60 = vector.load %arg8[%c0_23, %c0_24, %c0_25] : memref<2x1x32xf32, #tpu.memory_space<vmem>>, vector<1x1x32xf32>
    %61 = vector.shape_cast %60 : vector<1x1x32xf32> to vector<1x32xf32>
    %62 = vector.broadcast %61 : vector<1x32xf32> to vector<16x32xf32>
    %63 = arith.addf %59, %62 : vector<16x32xf32>
    %64 = arith.addf %63, %0 : vector<16x32xf32>
    %c0_26 = arith.constant 0 : index
    %c0_27 = arith.constant 0 : index
    %c0_28 = arith.constant 0 : index
    %65 = vector.load %arg9[%c0_26, %c0_27, %c0_28] : memref<2x1x32xf32, #tpu.memory_space<vmem>>, vector<1x1x32xf32>
    %66 = vector.shape_cast %65 : vector<1x1x32xf32> to vector<1x32xf32>
    %c0_29 = arith.constant 0 : index
    %c0_30 = arith.constant 0 : index
    %c0_31 = arith.constant 0 : index
    %67 = vector.load %arg10[%c0_29, %c0_30, %c0_31] : memref<2x1x32xf32, #tpu.memory_space<vmem>>, vector<1x1x32xf32>
    %68 = vector.shape_cast %67 : vector<1x1x32xf32> to vector<1x32xf32>
    %cst_32 = arith.constant dense<0.000000e+00> : vector<16xf32>
    %69 = vector.multi_reduction <add>, %64, %cst_32 [1] : vector<16x32xf32> to vector<16xf32>
    %70 = vector.shape_cast %69 : vector<16xf32> to vector<16x1xf32>
    %cst_33 = arith.constant 3.200000e+01 : f32
    %71 = vector.broadcast %cst_33 : f32 to vector<16x1xf32>
    %72 = arith.divf %70, %71 : vector<16x1xf32>
    %73 = vector.broadcast %72 : vector<16x1xf32> to vector<16x32xf32>
    %74 = arith.subf %64, %73 : vector<16x32xf32>
    %75 = arith.mulf %74, %74 : vector<16x32xf32>
    %cst_34 = arith.constant dense<0.000000e+00> : vector<16xf32>
    %76 = vector.multi_reduction <add>, %75, %cst_34 [1] : vector<16x32xf32> to vector<16xf32>
    %77 = vector.shape_cast %76 : vector<16xf32> to vector<16x1xf32>
    %cst_35 = arith.constant 3.200000e+01 : f32
    %78 = vector.broadcast %cst_35 : f32 to vector<16x1xf32>
    %79 = arith.divf %77, %78 : vector<16x1xf32>
    %80 = vector.broadcast %72 : vector<16x1xf32> to vector<16x32xf32>
    %81 = arith.subf %64, %80 : vector<16x32xf32>
    %cst_36 = arith.constant 9.99999974E-6 : f32
    %82 = vector.broadcast %cst_36 : f32 to vector<16x1xf32>
    %83 = arith.addf %79, %82 : vector<16x1xf32>
    %84 = math.rsqrt %83 : vector<16x1xf32>
    %85 = vector.broadcast %84 : vector<16x1xf32> to vector<16x32xf32>
    %86 = arith.mulf %81, %85 : vector<16x32xf32>
    %87 = vector.broadcast %66 : vector<1x32xf32> to vector<16x32xf32>
    %88 = arith.mulf %86, %87 : vector<16x32xf32>
    %89 = vector.broadcast %68 : vector<1x32xf32> to vector<16x32xf32>
    %90 = arith.addf %88, %89 : vector<16x32xf32>
    %91 = arith.mulf %90, %4 : vector<16x32xf32>
    %92 = arith.truncf %91 : vector<16x32xf32> to vector<16x32xbf16>
    %c0_37 = arith.constant 0 : index
    %c0_38 = arith.constant 0 : index
    %c0_39 = arith.constant 0 : index
    %93 = vector.load %arg11[%c0_37, %c0_38, %c0_39] : memref<2x32x64xbf16, #tpu.memory_space<vmem>>, vector<1x32x64xbf16>
    %94 = vector.shape_cast %93 : vector<1x32x64xbf16> to vector<32x64xbf16>
    %cst_40 = arith.constant dense<0.000000e+00> : vector<16x64xf32>
    %95 = tpu.matmul %92, %94, %cst_40 {dimension_numbers = #tpu.dot_dimension_numbers<[1], [0], [0], [1], [0, 0, 1, 1], [], []>} : vector<16x32xbf16>, vector<32x64xbf16>, vector<16x64xf32> -> vector<16x64xf32>
    %c0_41 = arith.constant 0 : index
    %c0_42 = arith.constant 0 : index
    %c0_43 = arith.constant 0 : index
    %96 = vector.load %arg12[%c0_41, %c0_42, %c0_43] : memref<2x1x64xf32, #tpu.memory_space<vmem>>, vector<1x1x64xf32>
    %97 = vector.shape_cast %96 : vector<1x1x64xf32> to vector<1x64xf32>
    %98 = vector.broadcast %97 : vector<1x64xf32> to vector<16x64xf32>
    %99 = arith.addf %95, %98 : vector<16x64xf32>
    %cst_44 = arith.constant 0.000000e+00 : f32
    %100 = vector.broadcast %cst_44 : f32 to vector<16x64xf32>
    %101 = arith.maximumf %99, %100 : vector<16x64xf32>
    %102 = arith.truncf %101 : vector<16x64xf32> to vector<16x64xbf16>
    %c0_45 = arith.constant 0 : index
    %c0_46 = arith.constant 0 : index
    %c0_47 = arith.constant 0 : index
    %103 = vector.load %arg13[%c0_45, %c0_46, %c0_47] : memref<2x64x32xbf16, #tpu.memory_space<vmem>>, vector<1x64x32xbf16>
    %104 = vector.shape_cast %103 : vector<1x64x32xbf16> to vector<64x32xbf16>
    %cst_48 = arith.constant dense<0.000000e+00> : vector<16x32xf32>
    %105 = tpu.matmul %102, %104, %cst_48 {dimension_numbers = #tpu.dot_dimension_numbers<[1], [0], [0], [1], [0, 0, 1, 1], [], []>} : vector<16x64xbf16>, vector<64x32xbf16>, vector<16x32xf32> -> vector<16x32xf32>
    %c0_49 = arith.constant 0 : index
    %c0_50 = arith.constant 0 : index
    %c0_51 = arith.constant 0 : index
    %106 = vector.load %arg14[%c0_49, %c0_50, %c0_51] : memref<2x21x32xf32, #tpu.memory_space<vmem>>, vector<1x21x32xf32>
    %107 = vector.shape_cast %106 : vector<1x21x32xf32> to vector<21x32xf32>
    %108 = vector.extract_strided_slice %107 {offsets = [0, 0], sizes = [1, 32], strides = [1, 1]} : vector<21x32xf32> to vector<1x32xf32>
    %109 = vector.broadcast %108 : vector<1x32xf32> to vector<16x32xf32>
    %110 = arith.mulf %105, %109 : vector<16x32xf32>
    %cst_52 = arith.constant 0.000000e+00 : f32
    %111 = vector.broadcast %cst_52 : f32 to vector<7x32xf32>
    %112 = tpu.concatenate %111, %105 in 0 : vector<7x32xf32>, vector<16x32xf32> -> vector<23x32xf32>
    %113 = vector.extract_strided_slice %112 {offsets = [6, 0], sizes = [16, 32], strides = [1, 1]} : vector<23x32xf32> to vector<16x32xf32>
    %cst_53 = arith.constant 0.000000e+00 : f32
    %114 = vector.shape_cast %33 : vector<16x1xi1> to vector<16x1xi1>
    %115 = vector.broadcast %114 : vector<16x1xi1> to vector<16x32xi1>
    %116 = vector.broadcast %cst_53 : f32 to vector<16x32xf32>
    %117 = arith.select %115, %113, %116 : vector<16x32xi1>, vector<16x32xf32>
    %118 = vector.extract_strided_slice %107 {offsets = [1, 0], sizes = [1, 32], strides = [1, 1]} : vector<21x32xf32> to vector<1x32xf32>
    %119 = vector.broadcast %118 : vector<1x32xf32> to vector<16x32xf32>
    %120 = arith.mulf %117, %119 : vector<16x32xf32>
    %121 = arith.addf %110, %120 : vector<16x32xf32>
    %122 = vector.extract_strided_slice %112 {offsets = [5, 0], sizes = [16, 32], strides = [1, 1]} : vector<23x32xf32> to vector<16x32xf32>
    %cst_54 = arith.constant 0.000000e+00 : f32
    %123 = vector.shape_cast %35 : vector<16x1xi1> to vector<16x1xi1>
    %124 = vector.broadcast %123 : vector<16x1xi1> to vector<16x32xi1>
    %125 = vector.broadcast %cst_54 : f32 to vector<16x32xf32>
    %126 = arith.select %124, %122, %125 : vector<16x32xi1>, vector<16x32xf32>
    %127 = vector.extract_strided_slice %107 {offsets = [2, 0], sizes = [1, 32], strides = [1, 1]} : vector<21x32xf32> to vector<1x32xf32>
    %128 = vector.broadcast %127 : vector<1x32xf32> to vector<16x32xf32>
    %129 = arith.mulf %126, %128 : vector<16x32xf32>
    %130 = arith.addf %121, %129 : vector<16x32xf32>
    %131 = vector.extract_strided_slice %112 {offsets = [4, 0], sizes = [16, 32], strides = [1, 1]} : vector<23x32xf32> to vector<16x32xf32>
    %cst_55 = arith.constant 0.000000e+00 : f32
    %132 = vector.shape_cast %37 : vector<16x1xi1> to vector<16x1xi1>
    %133 = vector.broadcast %132 : vector<16x1xi1> to vector<16x32xi1>
    %134 = vector.broadcast %cst_55 : f32 to vector<16x32xf32>
    %135 = arith.select %133, %131, %134 : vector<16x32xi1>, vector<16x32xf32>
    %136 = vector.extract_strided_slice %107 {offsets = [3, 0], sizes = [1, 32], strides = [1, 1]} : vector<21x32xf32> to vector<1x32xf32>
    %137 = vector.broadcast %136 : vector<1x32xf32> to vector<16x32xf32>
    %138 = arith.mulf %135, %137 : vector<16x32xf32>
    %139 = arith.addf %130, %138 : vector<16x32xf32>
    %140 = vector.extract_strided_slice %112 {offsets = [3, 0], sizes = [16, 32], strides = [1, 1]} : vector<23x32xf32> to vector<16x32xf32>
    %cst_56 = arith.constant 0.000000e+00 : f32
    %141 = vector.shape_cast %39 : vector<16x1xi1> to vector<16x1xi1>
    %142 = vector.broadcast %141 : vector<16x1xi1> to vector<16x32xi1>
    %143 = vector.broadcast %cst_56 : f32 to vector<16x32xf32>
    %144 = arith.select %142, %140, %143 : vector<16x32xi1>, vector<16x32xf32>
    %145 = vector.extract_strided_slice %107 {offsets = [4, 0], sizes = [1, 32], strides = [1, 1]} : vector<21x32xf32> to vector<1x32xf32>
    %146 = vector.broadcast %145 : vector<1x32xf32> to vector<16x32xf32>
    %147 = arith.mulf %144, %146 : vector<16x32xf32>
    %148 = arith.addf %139, %147 : vector<16x32xf32>
    %149 = vector.extract_strided_slice %112 {offsets = [2, 0], sizes = [16, 32], strides = [1, 1]} : vector<23x32xf32> to vector<16x32xf32>
    %cst_57 = arith.constant 0.000000e+00 : f32
    %150 = vector.shape_cast %41 : vector<16x1xi1> to vector<16x1xi1>
    %151 = vector.broadcast %150 : vector<16x1xi1> to vector<16x32xi1>
    %152 = vector.broadcast %cst_57 : f32 to vector<16x32xf32>
    %153 = arith.select %151, %149, %152 : vector<16x32xi1>, vector<16x32xf32>
    %154 = vector.extract_strided_slice %107 {offsets = [5, 0], sizes = [1, 32], strides = [1, 1]} : vector<21x32xf32> to vector<1x32xf32>
    %155 = vector.broadcast %154 : vector<1x32xf32> to vector<16x32xf32>
    %156 = arith.mulf %153, %155 : vector<16x32xf32>
    %157 = arith.addf %148, %156 : vector<16x32xf32>
    %158 = vector.extract_strided_slice %112 {offsets = [1, 0], sizes = [16, 32], strides = [1, 1]} : vector<23x32xf32> to vector<16x32xf32>
    %cst_58 = arith.constant 0.000000e+00 : f32
    %159 = vector.shape_cast %43 : vector<16x1xi1> to vector<16x1xi1>
    %160 = vector.broadcast %159 : vector<16x1xi1> to vector<16x32xi1>
    %161 = vector.broadcast %cst_58 : f32 to vector<16x32xf32>
    %162 = arith.select %160, %158, %161 : vector<16x32xi1>, vector<16x32xf32>
    %163 = vector.extract_strided_slice %107 {offsets = [6, 0], sizes = [1, 32], strides = [1, 1]} : vector<21x32xf32> to vector<1x32xf32>
    %164 = vector.broadcast %163 : vector<1x32xf32> to vector<16x32xf32>
    %165 = arith.mulf %162, %164 : vector<16x32xf32>
    %166 = arith.addf %157, %165 : vector<16x32xf32>
    %167 = vector.extract_strided_slice %112 {offsets = [0, 0], sizes = [16, 32], strides = [1, 1]} : vector<23x32xf32> to vector<16x32xf32>
    %cst_59 = arith.constant 0.000000e+00 : f32
    %168 = vector.shape_cast %45 : vector<16x1xi1> to vector<16x1xi1>
    %169 = vector.broadcast %168 : vector<16x1xi1> to vector<16x32xi1>
    %170 = vector.broadcast %cst_59 : f32 to vector<16x32xf32>
    %171 = arith.select %169, %167, %170 : vector<16x32xi1>, vector<16x32xf32>
    %172 = vector.extract_strided_slice %107 {offsets = [7, 0], sizes = [1, 32], strides = [1, 1]} : vector<21x32xf32> to vector<1x32xf32>
    %173 = vector.broadcast %172 : vector<1x32xf32> to vector<16x32xf32>
    %174 = arith.mulf %171, %173 : vector<16x32xf32>
    %175 = arith.addf %166, %174 : vector<16x32xf32>
    %176 = arith.truncf %175 : vector<16x32xf32> to vector<16x32xbf16>
    %c0_60 = arith.constant 0 : index
    %c0_61 = arith.constant 0 : index
    %c0_62 = arith.constant 0 : index
    %177 = vector.load %arg15[%c0_60, %c0_61, %c0_62] : memref<2x32x32xbf16, #tpu.memory_space<vmem>>, vector<1x32x32xbf16>
    %178 = vector.shape_cast %177 : vector<1x32x32xbf16> to vector<32x32xbf16>
    %cst_63 = arith.constant dense<0.000000e+00> : vector<16x32xf32>
    %179 = tpu.matmul %176, %178, %cst_63 {dimension_numbers = #tpu.dot_dimension_numbers<[1], [0], [0], [1], [0, 0, 1, 1], [], []>} : vector<16x32xbf16>, vector<32x32xbf16>, vector<16x32xf32> -> vector<16x32xf32>
    %c0_64 = arith.constant 0 : index
    %c0_65 = arith.constant 0 : index
    %c0_66 = arith.constant 0 : index
    %180 = vector.load %arg16[%c0_64, %c0_65, %c0_66] : memref<2x1x32xf32, #tpu.memory_space<vmem>>, vector<1x1x32xf32>
    %181 = vector.shape_cast %180 : vector<1x1x32xf32> to vector<1x32xf32>
    %182 = vector.broadcast %181 : vector<1x32xf32> to vector<16x32xf32>
    %183 = arith.addf %179, %182 : vector<16x32xf32>
    %184 = arith.addf %183, %91 : vector<16x32xf32>
    %185 = arith.mulf %184, %4 : vector<16x32xf32>
    %186 = arith.truncf %185 : vector<16x32xf32> to vector<16x32xbf16>
    %c0_67 = arith.constant 0 : index
    %c0_68 = arith.constant 0 : index
    %c0_69 = arith.constant 0 : index
    %187 = vector.load %arg17[%c0_67, %c0_68, %c0_69] : memref<2x32x32xbf16, #tpu.memory_space<vmem>>, vector<1x32x32xbf16>
    %188 = vector.shape_cast %187 : vector<1x32x32xbf16> to vector<32x32xbf16>
    %cst_70 = arith.constant dense<0.000000e+00> : vector<16x32xf32>
    %189 = tpu.matmul %186, %188, %cst_70 {dimension_numbers = #tpu.dot_dimension_numbers<[1], [0], [0], [1], [0, 0, 1, 1], [], []>} : vector<16x32xbf16>, vector<32x32xbf16>, vector<16x32xf32> -> vector<16x32xf32>
    %c0_71 = arith.constant 0 : index
    %c0_72 = arith.constant 0 : index
    %c0_73 = arith.constant 0 : index
    %190 = vector.load %arg18[%c0_71, %c0_72, %c0_73] : memref<2x1x32xf32, #tpu.memory_space<vmem>>, vector<1x1x32xf32>
    %191 = vector.shape_cast %190 : vector<1x1x32xf32> to vector<1x32xf32>
    %192 = vector.broadcast %191 : vector<1x32xf32> to vector<16x32xf32>
    %193 = arith.addf %189, %192 : vector<16x32xf32>
    %c0_74 = arith.constant 0 : index
    %c0_75 = arith.constant 0 : index
    %c0_76 = arith.constant 0 : index
    %194 = vector.load %arg19[%c0_74, %c0_75, %c0_76] : memref<2x32x64xbf16, #tpu.memory_space<vmem>>, vector<1x32x64xbf16>
    %195 = vector.shape_cast %194 : vector<1x32x64xbf16> to vector<32x64xbf16>
    %cst_77 = arith.constant dense<0.000000e+00> : vector<20x64xf32>
    %196 = tpu.matmul %1, %195, %cst_77 {dimension_numbers = #tpu.dot_dimension_numbers<[1], [0], [0], [1], [0, 0, 1, 1], [], []>} : vector<20x32xbf16>, vector<32x64xbf16>, vector<20x64xf32> -> vector<20x64xf32>
    %c0_78 = arith.constant 0 : index
    %c0_79 = arith.constant 0 : index
    %c0_80 = arith.constant 0 : index
    %197 = vector.load %arg20[%c0_78, %c0_79, %c0_80] : memref<2x1x64xf32, #tpu.memory_space<vmem>>, vector<1x1x64xf32>
    %198 = vector.shape_cast %197 : vector<1x1x64xf32> to vector<1x64xf32>
    %199 = vector.broadcast %198 : vector<1x64xf32> to vector<20x64xf32>
    %200 = arith.addf %196, %199 : vector<20x64xf32>
    %201 = vector.extract_strided_slice %193 {offsets = [0, 0], sizes = [8, 32], strides = [1, 1]} : vector<16x32xf32> to vector<8x32xf32>
    %202 = vector.extract_strided_slice %200 {offsets = [0, 0], sizes = [10, 64], strides = [1, 1]} : vector<20x64xf32> to vector<10x64xf32>
    %203 = vector.extract_strided_slice %201 {offsets = [0, 0], sizes = [8, 8], strides = [1, 1]} : vector<8x32xf32> to vector<8x8xf32>
    %204 = vector.extract_strided_slice %201 {offsets = [0, 8], sizes = [8, 8], strides = [1, 1]} : vector<8x32xf32> to vector<8x8xf32>
    %205 = vector.extract_strided_slice %201 {offsets = [0, 16], sizes = [8, 8], strides = [1, 1]} : vector<8x32xf32> to vector<8x8xf32>
    %206 = vector.extract_strided_slice %201 {offsets = [0, 24], sizes = [8, 8], strides = [1, 1]} : vector<8x32xf32> to vector<8x8xf32>
    %207 = vector.shape_cast %203 : vector<8x8xf32> to vector<1x8x8xf32>
    %208 = vector.shape_cast %204 : vector<8x8xf32> to vector<1x8x8xf32>
    %209 = vector.shape_cast %205 : vector<8x8xf32> to vector<1x8x8xf32>
    %210 = vector.shape_cast %206 : vector<8x8xf32> to vector<1x8x8xf32>
    %211 = tpu.concatenate %207, %208, %209, %210 in 0 : vector<1x8x8xf32>, vector<1x8x8xf32>, vector<1x8x8xf32>, vector<1x8x8xf32> -> vector<4x8x8xf32>
    %212 = vector.extract_strided_slice %202 {offsets = [0, 0], sizes = [10, 8], strides = [1, 1]} : vector<10x64xf32> to vector<10x8xf32>
    %213 = vector.extract_strided_slice %202 {offsets = [0, 8], sizes = [10, 8], strides = [1, 1]} : vector<10x64xf32> to vector<10x8xf32>
    %214 = vector.extract_strided_slice %202 {offsets = [0, 16], sizes = [10, 8], strides = [1, 1]} : vector<10x64xf32> to vector<10x8xf32>
    %215 = vector.extract_strided_slice %202 {offsets = [0, 24], sizes = [10, 8], strides = [1, 1]} : vector<10x64xf32> to vector<10x8xf32>
    %216 = vector.shape_cast %212 : vector<10x8xf32> to vector<1x10x8xf32>
    %217 = vector.shape_cast %213 : vector<10x8xf32> to vector<1x10x8xf32>
    %218 = vector.shape_cast %214 : vector<10x8xf32> to vector<1x10x8xf32>
    %219 = vector.shape_cast %215 : vector<10x8xf32> to vector<1x10x8xf32>
    %220 = tpu.concatenate %216, %217, %218, %219 in 0 : vector<1x10x8xf32>, vector<1x10x8xf32>, vector<1x10x8xf32>, vector<1x10x8xf32> -> vector<4x10x8xf32>
    %221 = vector.extract_strided_slice %202 {offsets = [0, 32], sizes = [10, 8], strides = [1, 1]} : vector<10x64xf32> to vector<10x8xf32>
    %222 = vector.extract_strided_slice %202 {offsets = [0, 40], sizes = [10, 8], strides = [1, 1]} : vector<10x64xf32> to vector<10x8xf32>
    %223 = vector.extract_strided_slice %202 {offsets = [0, 48], sizes = [10, 8], strides = [1, 1]} : vector<10x64xf32> to vector<10x8xf32>
    %224 = vector.extract_strided_slice %202 {offsets = [0, 56], sizes = [10, 8], strides = [1, 1]} : vector<10x64xf32> to vector<10x8xf32>
    %225 = vector.shape_cast %221 : vector<10x8xf32> to vector<1x10x8xf32>
    %226 = vector.shape_cast %222 : vector<10x8xf32> to vector<1x10x8xf32>
    %227 = vector.shape_cast %223 : vector<10x8xf32> to vector<1x10x8xf32>
    %228 = vector.shape_cast %224 : vector<10x8xf32> to vector<1x10x8xf32>
    %229 = tpu.concatenate %225, %226, %227, %228 in 0 : vector<1x10x8xf32>, vector<1x10x8xf32>, vector<1x10x8xf32>, vector<1x10x8xf32> -> vector<4x10x8xf32>
    "tpu.trace_start"() <{level = 10 : i32, message = "htd,hkd->htk"}> : () -> ()
    %cst_81 = arith.constant dense<0.000000e+00> : vector<4x8x10xf32>
    %230 = tpu.matmul %211, %220, %cst_81 {dimension_numbers = #tpu.dot_dimension_numbers<[2], [2], [1], [1], [0, 0, 0, 1, 1, 1], [0], [0]>} : vector<4x8x8xf32>, vector<4x10x8xf32>, vector<4x8x10xf32> -> vector<4x8x10xf32>
    "tpu.trace_stop"() : () -> ()
    %231 = arith.addf %230, %17 : vector<4x8x10xf32>
    %cst_82 = arith.constant dense<0xFF800000> : vector<4x8xf32>
    %232 = vector.multi_reduction <maximumf>, %231, %cst_82 [2] : vector<4x8x10xf32> to vector<4x8xf32>
    %233 = vector.shape_cast %232 : vector<4x8xf32> to vector<4x8x1xf32>
    %234 = vector.broadcast %233 : vector<4x8x1xf32> to vector<4x8x10xf32>
    %235 = arith.subf %231, %234 : vector<4x8x10xf32>
    %236 = math.exp %235 : vector<4x8x10xf32>
    %cst_83 = arith.constant dense<0.000000e+00> : vector<4x8xf32>
    %237 = vector.multi_reduction <add>, %236, %cst_83 [2] : vector<4x8x10xf32> to vector<4x8xf32>
    %238 = vector.shape_cast %237 : vector<4x8xf32> to vector<4x8x1xf32>
    %239 = tpu.reciprocal %238 {approx = true} : vector<4x8x1xf32> -> vector<4x8x1xf32>
    %240 = vector.broadcast %239 : vector<4x8x1xf32> to vector<4x8x10xf32>
    %241 = arith.mulf %236, %240 : vector<4x8x10xf32>
    "tpu.trace_start"() <{level = 10 : i32, message = "htk,hkd->htd"}> : () -> ()
    %cst_84 = arith.constant dense<0.000000e+00> : vector<4x8x8xf32>
    %242 = tpu.matmul %241, %229, %cst_84 {dimension_numbers = #tpu.dot_dimension_numbers<[2], [1], [1], [2], [0, 0, 0, 1, 1, 2], [0], [0]>} : vector<4x8x10xf32>, vector<4x10x8xf32>, vector<4x8x8xf32> -> vector<4x8x8xf32>
    "tpu.trace_stop"() : () -> ()
    %243 = vector.extract_strided_slice %242 {offsets = [0, 0, 0], sizes = [1, 8, 8], strides = [1, 1, 1]} : vector<4x8x8xf32> to vector<1x8x8xf32>
    %244 = vector.shape_cast %243 : vector<1x8x8xf32> to vector<8x8xf32>
    %245 = vector.extract_strided_slice %242 {offsets = [1, 0, 0], sizes = [1, 8, 8], strides = [1, 1, 1]} : vector<4x8x8xf32> to vector<1x8x8xf32>
    %246 = vector.shape_cast %245 : vector<1x8x8xf32> to vector<8x8xf32>
    %247 = vector.extract_strided_slice %242 {offsets = [2, 0, 0], sizes = [1, 8, 8], strides = [1, 1, 1]} : vector<4x8x8xf32> to vector<1x8x8xf32>
    %248 = vector.shape_cast %247 : vector<1x8x8xf32> to vector<8x8xf32>
    %249 = vector.extract_strided_slice %242 {offsets = [3, 0, 0], sizes = [1, 8, 8], strides = [1, 1, 1]} : vector<4x8x8xf32> to vector<1x8x8xf32>
    %250 = vector.shape_cast %249 : vector<1x8x8xf32> to vector<8x8xf32>
    %251 = tpu.concatenate %244, %246, %248, %250 in 1 : vector<8x8xf32>, vector<8x8xf32>, vector<8x8xf32>, vector<8x8xf32> -> vector<8x32xf32>
    %252 = vector.extract_strided_slice %193 {offsets = [8, 0], sizes = [8, 32], strides = [1, 1]} : vector<16x32xf32> to vector<8x32xf32>
    %253 = vector.extract_strided_slice %200 {offsets = [10, 0], sizes = [10, 64], strides = [1, 1]} : vector<20x64xf32> to vector<10x64xf32>
    %254 = vector.extract_strided_slice %252 {offsets = [0, 0], sizes = [8, 8], strides = [1, 1]} : vector<8x32xf32> to vector<8x8xf32>
    %255 = vector.extract_strided_slice %252 {offsets = [0, 8], sizes = [8, 8], strides = [1, 1]} : vector<8x32xf32> to vector<8x8xf32>
    %256 = vector.extract_strided_slice %252 {offsets = [0, 16], sizes = [8, 8], strides = [1, 1]} : vector<8x32xf32> to vector<8x8xf32>
    %257 = vector.extract_strided_slice %252 {offsets = [0, 24], sizes = [8, 8], strides = [1, 1]} : vector<8x32xf32> to vector<8x8xf32>
    %258 = vector.shape_cast %254 : vector<8x8xf32> to vector<1x8x8xf32>
    %259 = vector.shape_cast %255 : vector<8x8xf32> to vector<1x8x8xf32>
    %260 = vector.shape_cast %256 : vector<8x8xf32> to vector<1x8x8xf32>
    %261 = vector.shape_cast %257 : vector<8x8xf32> to vector<1x8x8xf32>
    %262 = tpu.concatenate %258, %259, %260, %261 in 0 : vector<1x8x8xf32>, vector<1x8x8xf32>, vector<1x8x8xf32>, vector<1x8x8xf32> -> vector<4x8x8xf32>
    %263 = vector.extract_strided_slice %253 {offsets = [0, 0], sizes = [10, 8], strides = [1, 1]} : vector<10x64xf32> to vector<10x8xf32>
    %264 = vector.extract_strided_slice %253 {offsets = [0, 8], sizes = [10, 8], strides = [1, 1]} : vector<10x64xf32> to vector<10x8xf32>
    %265 = vector.extract_strided_slice %253 {offsets = [0, 16], sizes = [10, 8], strides = [1, 1]} : vector<10x64xf32> to vector<10x8xf32>
    %266 = vector.extract_strided_slice %253 {offsets = [0, 24], sizes = [10, 8], strides = [1, 1]} : vector<10x64xf32> to vector<10x8xf32>
    %267 = vector.shape_cast %263 : vector<10x8xf32> to vector<1x10x8xf32>
    %268 = vector.shape_cast %264 : vector<10x8xf32> to vector<1x10x8xf32>
    %269 = vector.shape_cast %265 : vector<10x8xf32> to vector<1x10x8xf32>
    %270 = vector.shape_cast %266 : vector<10x8xf32> to vector<1x10x8xf32>
    %271 = tpu.concatenate %267, %268, %269, %270 in 0 : vector<1x10x8xf32>, vector<1x10x8xf32>, vector<1x10x8xf32>, vector<1x10x8xf32> -> vector<4x10x8xf32>
    %272 = vector.extract_strided_slice %253 {offsets = [0, 32], sizes = [10, 8], strides = [1, 1]} : vector<10x64xf32> to vector<10x8xf32>
    %273 = vector.extract_strided_slice %253 {offsets = [0, 40], sizes = [10, 8], strides = [1, 1]} : vector<10x64xf32> to vector<10x8xf32>
    %274 = vector.extract_strided_slice %253 {offsets = [0, 48], sizes = [10, 8], strides = [1, 1]} : vector<10x64xf32> to vector<10x8xf32>
    %275 = vector.extract_strided_slice %253 {offsets = [0, 56], sizes = [10, 8], strides = [1, 1]} : vector<10x64xf32> to vector<10x8xf32>
    %276 = vector.shape_cast %272 : vector<10x8xf32> to vector<1x10x8xf32>
    %277 = vector.shape_cast %273 : vector<10x8xf32> to vector<1x10x8xf32>
    %278 = vector.shape_cast %274 : vector<10x8xf32> to vector<1x10x8xf32>
    %279 = vector.shape_cast %275 : vector<10x8xf32> to vector<1x10x8xf32>
    %280 = tpu.concatenate %276, %277, %278, %279 in 0 : vector<1x10x8xf32>, vector<1x10x8xf32>, vector<1x10x8xf32>, vector<1x10x8xf32> -> vector<4x10x8xf32>
    "tpu.trace_start"() <{level = 10 : i32, message = "htd,hkd->htk"}> : () -> ()
    %cst_85 = arith.constant dense<0.000000e+00> : vector<4x8x10xf32>
    %281 = tpu.matmul %262, %271, %cst_85 {dimension_numbers = #tpu.dot_dimension_numbers<[2], [2], [1], [1], [0, 0, 0, 1, 1, 1], [0], [0]>} : vector<4x8x8xf32>, vector<4x10x8xf32>, vector<4x8x10xf32> -> vector<4x8x10xf32>
    "tpu.trace_stop"() : () -> ()
    %282 = arith.addf %281, %29 : vector<4x8x10xf32>
    %cst_86 = arith.constant dense<0xFF800000> : vector<4x8xf32>
    %283 = vector.multi_reduction <maximumf>, %282, %cst_86 [2] : vector<4x8x10xf32> to vector<4x8xf32>
    %284 = vector.shape_cast %283 : vector<4x8xf32> to vector<4x8x1xf32>
    %285 = vector.broadcast %284 : vector<4x8x1xf32> to vector<4x8x10xf32>
    %286 = arith.subf %282, %285 : vector<4x8x10xf32>
    %287 = math.exp %286 : vector<4x8x10xf32>
    %cst_87 = arith.constant dense<0.000000e+00> : vector<4x8xf32>
    %288 = vector.multi_reduction <add>, %287, %cst_87 [2] : vector<4x8x10xf32> to vector<4x8xf32>
    %289 = vector.shape_cast %288 : vector<4x8xf32> to vector<4x8x1xf32>
    %290 = tpu.reciprocal %289 {approx = true} : vector<4x8x1xf32> -> vector<4x8x1xf32>
    %291 = vector.broadcast %290 : vector<4x8x1xf32> to vector<4x8x10xf32>
    %292 = arith.mulf %287, %291 : vector<4x8x10xf32>
    "tpu.trace_start"() <{level = 10 : i32, message = "htk,hkd->htd"}> : () -> ()
    %cst_88 = arith.constant dense<0.000000e+00> : vector<4x8x8xf32>
    %293 = tpu.matmul %292, %280, %cst_88 {dimension_numbers = #tpu.dot_dimension_numbers<[2], [1], [1], [2], [0, 0, 0, 1, 1, 2], [0], [0]>} : vector<4x8x10xf32>, vector<4x10x8xf32>, vector<4x8x8xf32> -> vector<4x8x8xf32>
    "tpu.trace_stop"() : () -> ()
    %294 = vector.extract_strided_slice %293 {offsets = [0, 0, 0], sizes = [1, 8, 8], strides = [1, 1, 1]} : vector<4x8x8xf32> to vector<1x8x8xf32>
    %295 = vector.shape_cast %294 : vector<1x8x8xf32> to vector<8x8xf32>
    %296 = vector.extract_strided_slice %293 {offsets = [1, 0, 0], sizes = [1, 8, 8], strides = [1, 1, 1]} : vector<4x8x8xf32> to vector<1x8x8xf32>
    %297 = vector.shape_cast %296 : vector<1x8x8xf32> to vector<8x8xf32>
    %298 = vector.extract_strided_slice %293 {offsets = [2, 0, 0], sizes = [1, 8, 8], strides = [1, 1, 1]} : vector<4x8x8xf32> to vector<1x8x8xf32>
    %299 = vector.shape_cast %298 : vector<1x8x8xf32> to vector<8x8xf32>
    %300 = vector.extract_strided_slice %293 {offsets = [3, 0, 0], sizes = [1, 8, 8], strides = [1, 1, 1]} : vector<4x8x8xf32> to vector<1x8x8xf32>
    %301 = vector.shape_cast %300 : vector<1x8x8xf32> to vector<8x8xf32>
    %302 = tpu.concatenate %295, %297, %299, %301 in 1 : vector<8x8xf32>, vector<8x8xf32>, vector<8x8xf32>, vector<8x8xf32> -> vector<8x32xf32>
    %303 = tpu.concatenate %251, %302 in 0 : vector<8x32xf32>, vector<8x32xf32> -> vector<16x32xf32>
    %304 = arith.truncf %303 : vector<16x32xf32> to vector<16x32xbf16>
    %c0_89 = arith.constant 0 : index
    %c0_90 = arith.constant 0 : index
    %c0_91 = arith.constant 0 : index
    %305 = vector.load %arg21[%c0_89, %c0_90, %c0_91] : memref<2x32x32xbf16, #tpu.memory_space<vmem>>, vector<1x32x32xbf16>
    %306 = vector.shape_cast %305 : vector<1x32x32xbf16> to vector<32x32xbf16>
    %cst_92 = arith.constant dense<0.000000e+00> : vector<16x32xf32>
    %307 = tpu.matmul %304, %306, %cst_92 {dimension_numbers = #tpu.dot_dimension_numbers<[1], [0], [0], [1], [0, 0, 1, 1], [], []>} : vector<16x32xbf16>, vector<32x32xbf16>, vector<16x32xf32> -> vector<16x32xf32>
    %c0_93 = arith.constant 0 : index
    %c0_94 = arith.constant 0 : index
    %c0_95 = arith.constant 0 : index
    %308 = vector.load %arg22[%c0_93, %c0_94, %c0_95] : memref<2x1x32xf32, #tpu.memory_space<vmem>>, vector<1x1x32xf32>
    %309 = vector.shape_cast %308 : vector<1x1x32xf32> to vector<1x32xf32>
    %310 = vector.broadcast %309 : vector<1x32xf32> to vector<16x32xf32>
    %311 = arith.addf %307, %310 : vector<16x32xf32>
    %312 = arith.addf %311, %185 : vector<16x32xf32>
    %c0_96 = arith.constant 0 : index
    %c0_97 = arith.constant 0 : index
    %c0_98 = arith.constant 0 : index
    %313 = vector.load %arg23[%c0_96, %c0_97, %c0_98] : memref<2x1x32xf32, #tpu.memory_space<vmem>>, vector<1x1x32xf32>
    %314 = vector.shape_cast %313 : vector<1x1x32xf32> to vector<1x32xf32>
    %c0_99 = arith.constant 0 : index
    %c0_100 = arith.constant 0 : index
    %c0_101 = arith.constant 0 : index
    %315 = vector.load %arg24[%c0_99, %c0_100, %c0_101] : memref<2x1x32xf32, #tpu.memory_space<vmem>>, vector<1x1x32xf32>
    %316 = vector.shape_cast %315 : vector<1x1x32xf32> to vector<1x32xf32>
    %cst_102 = arith.constant dense<0.000000e+00> : vector<16xf32>
    %317 = vector.multi_reduction <add>, %312, %cst_102 [1] : vector<16x32xf32> to vector<16xf32>
    %318 = vector.shape_cast %317 : vector<16xf32> to vector<16x1xf32>
    %cst_103 = arith.constant 3.200000e+01 : f32
    %319 = vector.broadcast %cst_103 : f32 to vector<16x1xf32>
    %320 = arith.divf %318, %319 : vector<16x1xf32>
    %321 = vector.broadcast %320 : vector<16x1xf32> to vector<16x32xf32>
    %322 = arith.subf %312, %321 : vector<16x32xf32>
    %323 = arith.mulf %322, %322 : vector<16x32xf32>
    %cst_104 = arith.constant dense<0.000000e+00> : vector<16xf32>
    %324 = vector.multi_reduction <add>, %323, %cst_104 [1] : vector<16x32xf32> to vector<16xf32>
    %325 = vector.shape_cast %324 : vector<16xf32> to vector<16x1xf32>
    %cst_105 = arith.constant 3.200000e+01 : f32
    %326 = vector.broadcast %cst_105 : f32 to vector<16x1xf32>
    %327 = arith.divf %325, %326 : vector<16x1xf32>
    %328 = vector.broadcast %320 : vector<16x1xf32> to vector<16x32xf32>
    %329 = arith.subf %312, %328 : vector<16x32xf32>
    %cst_106 = arith.constant 9.99999974E-6 : f32
    %330 = vector.broadcast %cst_106 : f32 to vector<16x1xf32>
    %331 = arith.addf %327, %330 : vector<16x1xf32>
    %332 = math.rsqrt %331 : vector<16x1xf32>
    %333 = vector.broadcast %332 : vector<16x1xf32> to vector<16x32xf32>
    %334 = arith.mulf %329, %333 : vector<16x32xf32>
    %335 = vector.broadcast %314 : vector<1x32xf32> to vector<16x32xf32>
    %336 = arith.mulf %334, %335 : vector<16x32xf32>
    %337 = vector.broadcast %316 : vector<1x32xf32> to vector<16x32xf32>
    %338 = arith.addf %336, %337 : vector<16x32xf32>
    %339 = arith.mulf %338, %4 : vector<16x32xf32>
    %340 = arith.truncf %339 : vector<16x32xf32> to vector<16x32xbf16>
    %c1 = arith.constant 1 : index
    %c0_107 = arith.constant 0 : index
    %c0_108 = arith.constant 0 : index
    %341 = vector.load %arg5[%c1, %c0_107, %c0_108] : memref<2x32x64xbf16, #tpu.memory_space<vmem>>, vector<1x32x64xbf16>
    %342 = vector.shape_cast %341 : vector<1x32x64xbf16> to vector<32x64xbf16>
    %cst_109 = arith.constant dense<0.000000e+00> : vector<16x64xf32>
    %343 = tpu.matmul %340, %342, %cst_109 {dimension_numbers = #tpu.dot_dimension_numbers<[1], [0], [0], [1], [0, 0, 1, 1], [], []>} : vector<16x32xbf16>, vector<32x64xbf16>, vector<16x64xf32> -> vector<16x64xf32>
    %c1_110 = arith.constant 1 : index
    %c0_111 = arith.constant 0 : index
    %c0_112 = arith.constant 0 : index
    %344 = vector.load %arg6[%c1_110, %c0_111, %c0_112] : memref<2x1x64xf32, #tpu.memory_space<vmem>>, vector<1x1x64xf32>
    %345 = vector.shape_cast %344 : vector<1x1x64xf32> to vector<1x64xf32>
    %346 = vector.broadcast %345 : vector<1x64xf32> to vector<16x64xf32>
    %347 = arith.addf %343, %346 : vector<16x64xf32>
    %cst_113 = arith.constant 0.000000e+00 : f32
    %348 = vector.broadcast %cst_113 : f32 to vector<16x64xf32>
    %349 = arith.maximumf %347, %348 : vector<16x64xf32>
    %350 = arith.truncf %349 : vector<16x64xf32> to vector<16x64xbf16>
    %c1_114 = arith.constant 1 : index
    %c0_115 = arith.constant 0 : index
    %c0_116 = arith.constant 0 : index
    %351 = vector.load %arg7[%c1_114, %c0_115, %c0_116] : memref<2x64x32xbf16, #tpu.memory_space<vmem>>, vector<1x64x32xbf16>
    %352 = vector.shape_cast %351 : vector<1x64x32xbf16> to vector<64x32xbf16>
    %cst_117 = arith.constant dense<0.000000e+00> : vector<16x32xf32>
    %353 = tpu.matmul %350, %352, %cst_117 {dimension_numbers = #tpu.dot_dimension_numbers<[1], [0], [0], [1], [0, 0, 1, 1], [], []>} : vector<16x64xbf16>, vector<64x32xbf16>, vector<16x32xf32> -> vector<16x32xf32>
    %c1_118 = arith.constant 1 : index
    %c0_119 = arith.constant 0 : index
    %c0_120 = arith.constant 0 : index
    %354 = vector.load %arg8[%c1_118, %c0_119, %c0_120] : memref<2x1x32xf32, #tpu.memory_space<vmem>>, vector<1x1x32xf32>
    %355 = vector.shape_cast %354 : vector<1x1x32xf32> to vector<1x32xf32>
    %356 = vector.broadcast %355 : vector<1x32xf32> to vector<16x32xf32>
    %357 = arith.addf %353, %356 : vector<16x32xf32>
    %358 = arith.addf %357, %339 : vector<16x32xf32>
    %c1_121 = arith.constant 1 : index
    %c0_122 = arith.constant 0 : index
    %c0_123 = arith.constant 0 : index
    %359 = vector.load %arg9[%c1_121, %c0_122, %c0_123] : memref<2x1x32xf32, #tpu.memory_space<vmem>>, vector<1x1x32xf32>
    %360 = vector.shape_cast %359 : vector<1x1x32xf32> to vector<1x32xf32>
    %c1_124 = arith.constant 1 : index
    %c0_125 = arith.constant 0 : index
    %c0_126 = arith.constant 0 : index
    %361 = vector.load %arg10[%c1_124, %c0_125, %c0_126] : memref<2x1x32xf32, #tpu.memory_space<vmem>>, vector<1x1x32xf32>
    %362 = vector.shape_cast %361 : vector<1x1x32xf32> to vector<1x32xf32>
    %cst_127 = arith.constant dense<0.000000e+00> : vector<16xf32>
    %363 = vector.multi_reduction <add>, %358, %cst_127 [1] : vector<16x32xf32> to vector<16xf32>
    %364 = vector.shape_cast %363 : vector<16xf32> to vector<16x1xf32>
    %cst_128 = arith.constant 3.200000e+01 : f32
    %365 = vector.broadcast %cst_128 : f32 to vector<16x1xf32>
    %366 = arith.divf %364, %365 : vector<16x1xf32>
    %367 = vector.broadcast %366 : vector<16x1xf32> to vector<16x32xf32>
    %368 = arith.subf %358, %367 : vector<16x32xf32>
    %369 = arith.mulf %368, %368 : vector<16x32xf32>
    %cst_129 = arith.constant dense<0.000000e+00> : vector<16xf32>
    %370 = vector.multi_reduction <add>, %369, %cst_129 [1] : vector<16x32xf32> to vector<16xf32>
    %371 = vector.shape_cast %370 : vector<16xf32> to vector<16x1xf32>
    %cst_130 = arith.constant 3.200000e+01 : f32
    %372 = vector.broadcast %cst_130 : f32 to vector<16x1xf32>
    %373 = arith.divf %371, %372 : vector<16x1xf32>
    %374 = vector.broadcast %366 : vector<16x1xf32> to vector<16x32xf32>
    %375 = arith.subf %358, %374 : vector<16x32xf32>
    %cst_131 = arith.constant 9.99999974E-6 : f32
    %376 = vector.broadcast %cst_131 : f32 to vector<16x1xf32>
    %377 = arith.addf %373, %376 : vector<16x1xf32>
    %378 = math.rsqrt %377 : vector<16x1xf32>
    %379 = vector.broadcast %378 : vector<16x1xf32> to vector<16x32xf32>
    %380 = arith.mulf %375, %379 : vector<16x32xf32>
    %381 = vector.broadcast %360 : vector<1x32xf32> to vector<16x32xf32>
    %382 = arith.mulf %380, %381 : vector<16x32xf32>
    %383 = vector.broadcast %362 : vector<1x32xf32> to vector<16x32xf32>
    %384 = arith.addf %382, %383 : vector<16x32xf32>
    %385 = arith.mulf %384, %4 : vector<16x32xf32>
    %386 = arith.truncf %385 : vector<16x32xf32> to vector<16x32xbf16>
    %c1_132 = arith.constant 1 : index
    %c0_133 = arith.constant 0 : index
    %c0_134 = arith.constant 0 : index
    %387 = vector.load %arg11[%c1_132, %c0_133, %c0_134] : memref<2x32x64xbf16, #tpu.memory_space<vmem>>, vector<1x32x64xbf16>
    %388 = vector.shape_cast %387 : vector<1x32x64xbf16> to vector<32x64xbf16>
    %cst_135 = arith.constant dense<0.000000e+00> : vector<16x64xf32>
    %389 = tpu.matmul %386, %388, %cst_135 {dimension_numbers = #tpu.dot_dimension_numbers<[1], [0], [0], [1], [0, 0, 1, 1], [], []>} : vector<16x32xbf16>, vector<32x64xbf16>, vector<16x64xf32> -> vector<16x64xf32>
    %c1_136 = arith.constant 1 : index
    %c0_137 = arith.constant 0 : index
    %c0_138 = arith.constant 0 : index
    %390 = vector.load %arg12[%c1_136, %c0_137, %c0_138] : memref<2x1x64xf32, #tpu.memory_space<vmem>>, vector<1x1x64xf32>
    %391 = vector.shape_cast %390 : vector<1x1x64xf32> to vector<1x64xf32>
    %392 = vector.broadcast %391 : vector<1x64xf32> to vector<16x64xf32>
    %393 = arith.addf %389, %392 : vector<16x64xf32>
    %cst_139 = arith.constant 0.000000e+00 : f32
    %394 = vector.broadcast %cst_139 : f32 to vector<16x64xf32>
    %395 = arith.maximumf %393, %394 : vector<16x64xf32>
    %396 = arith.truncf %395 : vector<16x64xf32> to vector<16x64xbf16>
    %c1_140 = arith.constant 1 : index
    %c0_141 = arith.constant 0 : index
    %c0_142 = arith.constant 0 : index
    %397 = vector.load %arg13[%c1_140, %c0_141, %c0_142] : memref<2x64x32xbf16, #tpu.memory_space<vmem>>, vector<1x64x32xbf16>
    %398 = vector.shape_cast %397 : vector<1x64x32xbf16> to vector<64x32xbf16>
    %cst_143 = arith.constant dense<0.000000e+00> : vector<16x32xf32>
    %399 = tpu.matmul %396, %398, %cst_143 {dimension_numbers = #tpu.dot_dimension_numbers<[1], [0], [0], [1], [0, 0, 1, 1], [], []>} : vector<16x64xbf16>, vector<64x32xbf16>, vector<16x32xf32> -> vector<16x32xf32>
    %c1_144 = arith.constant 1 : index
    %c0_145 = arith.constant 0 : index
    %c0_146 = arith.constant 0 : index
    %400 = vector.load %arg14[%c1_144, %c0_145, %c0_146] : memref<2x21x32xf32, #tpu.memory_space<vmem>>, vector<1x21x32xf32>
    %401 = vector.shape_cast %400 : vector<1x21x32xf32> to vector<21x32xf32>
    %402 = vector.extract_strided_slice %401 {offsets = [0, 0], sizes = [1, 32], strides = [1, 1]} : vector<21x32xf32> to vector<1x32xf32>
    %403 = vector.broadcast %402 : vector<1x32xf32> to vector<16x32xf32>
    %404 = arith.mulf %399, %403 : vector<16x32xf32>
    %cst_147 = arith.constant 0.000000e+00 : f32
    %405 = vector.broadcast %cst_147 : f32 to vector<7x32xf32>
    %406 = tpu.concatenate %405, %399 in 0 : vector<7x32xf32>, vector<16x32xf32> -> vector<23x32xf32>
    %407 = vector.extract_strided_slice %406 {offsets = [6, 0], sizes = [16, 32], strides = [1, 1]} : vector<23x32xf32> to vector<16x32xf32>
    %cst_148 = arith.constant 0.000000e+00 : f32
    %408 = vector.shape_cast %33 : vector<16x1xi1> to vector<16x1xi1>
    %409 = vector.broadcast %408 : vector<16x1xi1> to vector<16x32xi1>
    %410 = vector.broadcast %cst_148 : f32 to vector<16x32xf32>
    %411 = arith.select %409, %407, %410 : vector<16x32xi1>, vector<16x32xf32>
    %412 = vector.extract_strided_slice %401 {offsets = [1, 0], sizes = [1, 32], strides = [1, 1]} : vector<21x32xf32> to vector<1x32xf32>
    %413 = vector.broadcast %412 : vector<1x32xf32> to vector<16x32xf32>
    %414 = arith.mulf %411, %413 : vector<16x32xf32>
    %415 = arith.addf %404, %414 : vector<16x32xf32>
    %416 = vector.extract_strided_slice %406 {offsets = [5, 0], sizes = [16, 32], strides = [1, 1]} : vector<23x32xf32> to vector<16x32xf32>
    %cst_149 = arith.constant 0.000000e+00 : f32
    %417 = vector.shape_cast %35 : vector<16x1xi1> to vector<16x1xi1>
    %418 = vector.broadcast %417 : vector<16x1xi1> to vector<16x32xi1>
    %419 = vector.broadcast %cst_149 : f32 to vector<16x32xf32>
    %420 = arith.select %418, %416, %419 : vector<16x32xi1>, vector<16x32xf32>
    %421 = vector.extract_strided_slice %401 {offsets = [2, 0], sizes = [1, 32], strides = [1, 1]} : vector<21x32xf32> to vector<1x32xf32>
    %422 = vector.broadcast %421 : vector<1x32xf32> to vector<16x32xf32>
    %423 = arith.mulf %420, %422 : vector<16x32xf32>
    %424 = arith.addf %415, %423 : vector<16x32xf32>
    %425 = vector.extract_strided_slice %406 {offsets = [4, 0], sizes = [16, 32], strides = [1, 1]} : vector<23x32xf32> to vector<16x32xf32>
    %cst_150 = arith.constant 0.000000e+00 : f32
    %426 = vector.shape_cast %37 : vector<16x1xi1> to vector<16x1xi1>
    %427 = vector.broadcast %426 : vector<16x1xi1> to vector<16x32xi1>
    %428 = vector.broadcast %cst_150 : f32 to vector<16x32xf32>
    %429 = arith.select %427, %425, %428 : vector<16x32xi1>, vector<16x32xf32>
    %430 = vector.extract_strided_slice %401 {offsets = [3, 0], sizes = [1, 32], strides = [1, 1]} : vector<21x32xf32> to vector<1x32xf32>
    %431 = vector.broadcast %430 : vector<1x32xf32> to vector<16x32xf32>
    %432 = arith.mulf %429, %431 : vector<16x32xf32>
    %433 = arith.addf %424, %432 : vector<16x32xf32>
    %434 = vector.extract_strided_slice %406 {offsets = [3, 0], sizes = [16, 32], strides = [1, 1]} : vector<23x32xf32> to vector<16x32xf32>
    %cst_151 = arith.constant 0.000000e+00 : f32
    %435 = vector.shape_cast %39 : vector<16x1xi1> to vector<16x1xi1>
    %436 = vector.broadcast %435 : vector<16x1xi1> to vector<16x32xi1>
    %437 = vector.broadcast %cst_151 : f32 to vector<16x32xf32>
    %438 = arith.select %436, %434, %437 : vector<16x32xi1>, vector<16x32xf32>
    %439 = vector.extract_strided_slice %401 {offsets = [4, 0], sizes = [1, 32], strides = [1, 1]} : vector<21x32xf32> to vector<1x32xf32>
    %440 = vector.broadcast %439 : vector<1x32xf32> to vector<16x32xf32>
    %441 = arith.mulf %438, %440 : vector<16x32xf32>
    %442 = arith.addf %433, %441 : vector<16x32xf32>
    %443 = vector.extract_strided_slice %406 {offsets = [2, 0], sizes = [16, 32], strides = [1, 1]} : vector<23x32xf32> to vector<16x32xf32>
    %cst_152 = arith.constant 0.000000e+00 : f32
    %444 = vector.shape_cast %41 : vector<16x1xi1> to vector<16x1xi1>
    %445 = vector.broadcast %444 : vector<16x1xi1> to vector<16x32xi1>
    %446 = vector.broadcast %cst_152 : f32 to vector<16x32xf32>
    %447 = arith.select %445, %443, %446 : vector<16x32xi1>, vector<16x32xf32>
    %448 = vector.extract_strided_slice %401 {offsets = [5, 0], sizes = [1, 32], strides = [1, 1]} : vector<21x32xf32> to vector<1x32xf32>
    %449 = vector.broadcast %448 : vector<1x32xf32> to vector<16x32xf32>
    %450 = arith.mulf %447, %449 : vector<16x32xf32>
    %451 = arith.addf %442, %450 : vector<16x32xf32>
    %452 = vector.extract_strided_slice %406 {offsets = [1, 0], sizes = [16, 32], strides = [1, 1]} : vector<23x32xf32> to vector<16x32xf32>
    %cst_153 = arith.constant 0.000000e+00 : f32
    %453 = vector.shape_cast %43 : vector<16x1xi1> to vector<16x1xi1>
    %454 = vector.broadcast %453 : vector<16x1xi1> to vector<16x32xi1>
    %455 = vector.broadcast %cst_153 : f32 to vector<16x32xf32>
    %456 = arith.select %454, %452, %455 : vector<16x32xi1>, vector<16x32xf32>
    %457 = vector.extract_strided_slice %401 {offsets = [6, 0], sizes = [1, 32], strides = [1, 1]} : vector<21x32xf32> to vector<1x32xf32>
    %458 = vector.broadcast %457 : vector<1x32xf32> to vector<16x32xf32>
    %459 = arith.mulf %456, %458 : vector<16x32xf32>
    %460 = arith.addf %451, %459 : vector<16x32xf32>
    %461 = vector.extract_strided_slice %406 {offsets = [0, 0], sizes = [16, 32], strides = [1, 1]} : vector<23x32xf32> to vector<16x32xf32>
    %cst_154 = arith.constant 0.000000e+00 : f32
    %462 = vector.shape_cast %45 : vector<16x1xi1> to vector<16x1xi1>
    %463 = vector.broadcast %462 : vector<16x1xi1> to vector<16x32xi1>
    %464 = vector.broadcast %cst_154 : f32 to vector<16x32xf32>
    %465 = arith.select %463, %461, %464 : vector<16x32xi1>, vector<16x32xf32>
    %466 = vector.extract_strided_slice %401 {offsets = [7, 0], sizes = [1, 32], strides = [1, 1]} : vector<21x32xf32> to vector<1x32xf32>
    %467 = vector.broadcast %466 : vector<1x32xf32> to vector<16x32xf32>
    %468 = arith.mulf %465, %467 : vector<16x32xf32>
    %469 = arith.addf %460, %468 : vector<16x32xf32>
    %470 = arith.truncf %469 : vector<16x32xf32> to vector<16x32xbf16>
    %c1_155 = arith.constant 1 : index
    %c0_156 = arith.constant 0 : index
    %c0_157 = arith.constant 0 : index
    %471 = vector.load %arg15[%c1_155, %c0_156, %c0_157] : memref<2x32x32xbf16, #tpu.memory_space<vmem>>, vector<1x32x32xbf16>
    %472 = vector.shape_cast %471 : vector<1x32x32xbf16> to vector<32x32xbf16>
    %cst_158 = arith.constant dense<0.000000e+00> : vector<16x32xf32>
    %473 = tpu.matmul %470, %472, %cst_158 {dimension_numbers = #tpu.dot_dimension_numbers<[1], [0], [0], [1], [0, 0, 1, 1], [], []>} : vector<16x32xbf16>, vector<32x32xbf16>, vector<16x32xf32> -> vector<16x32xf32>
    %c1_159 = arith.constant 1 : index
    %c0_160 = arith.constant 0 : index
    %c0_161 = arith.constant 0 : index
    %474 = vector.load %arg16[%c1_159, %c0_160, %c0_161] : memref<2x1x32xf32, #tpu.memory_space<vmem>>, vector<1x1x32xf32>
    %475 = vector.shape_cast %474 : vector<1x1x32xf32> to vector<1x32xf32>
    %476 = vector.broadcast %475 : vector<1x32xf32> to vector<16x32xf32>
    %477 = arith.addf %473, %476 : vector<16x32xf32>
    %478 = arith.addf %477, %385 : vector<16x32xf32>
    %479 = arith.mulf %478, %4 : vector<16x32xf32>
    %480 = arith.truncf %479 : vector<16x32xf32> to vector<16x32xbf16>
    %c1_162 = arith.constant 1 : index
    %c0_163 = arith.constant 0 : index
    %c0_164 = arith.constant 0 : index
    %481 = vector.load %arg17[%c1_162, %c0_163, %c0_164] : memref<2x32x32xbf16, #tpu.memory_space<vmem>>, vector<1x32x32xbf16>
    %482 = vector.shape_cast %481 : vector<1x32x32xbf16> to vector<32x32xbf16>
    %cst_165 = arith.constant dense<0.000000e+00> : vector<16x32xf32>
    %483 = tpu.matmul %480, %482, %cst_165 {dimension_numbers = #tpu.dot_dimension_numbers<[1], [0], [0], [1], [0, 0, 1, 1], [], []>} : vector<16x32xbf16>, vector<32x32xbf16>, vector<16x32xf32> -> vector<16x32xf32>
    %c1_166 = arith.constant 1 : index
    %c0_167 = arith.constant 0 : index
    %c0_168 = arith.constant 0 : index
    %484 = vector.load %arg18[%c1_166, %c0_167, %c0_168] : memref<2x1x32xf32, #tpu.memory_space<vmem>>, vector<1x1x32xf32>
    %485 = vector.shape_cast %484 : vector<1x1x32xf32> to vector<1x32xf32>
    %486 = vector.broadcast %485 : vector<1x32xf32> to vector<16x32xf32>
    %487 = arith.addf %483, %486 : vector<16x32xf32>
    %c1_169 = arith.constant 1 : index
    %c0_170 = arith.constant 0 : index
    %c0_171 = arith.constant 0 : index
    %488 = vector.load %arg19[%c1_169, %c0_170, %c0_171] : memref<2x32x64xbf16, #tpu.memory_space<vmem>>, vector<1x32x64xbf16>
    %489 = vector.shape_cast %488 : vector<1x32x64xbf16> to vector<32x64xbf16>
    %cst_172 = arith.constant dense<0.000000e+00> : vector<20x64xf32>
    %490 = tpu.matmul %1, %489, %cst_172 {dimension_numbers = #tpu.dot_dimension_numbers<[1], [0], [0], [1], [0, 0, 1, 1], [], []>} : vector<20x32xbf16>, vector<32x64xbf16>, vector<20x64xf32> -> vector<20x64xf32>
    %c1_173 = arith.constant 1 : index
    %c0_174 = arith.constant 0 : index
    %c0_175 = arith.constant 0 : index
    %491 = vector.load %arg20[%c1_173, %c0_174, %c0_175] : memref<2x1x64xf32, #tpu.memory_space<vmem>>, vector<1x1x64xf32>
    %492 = vector.shape_cast %491 : vector<1x1x64xf32> to vector<1x64xf32>
    %493 = vector.broadcast %492 : vector<1x64xf32> to vector<20x64xf32>
    %494 = arith.addf %490, %493 : vector<20x64xf32>
    %495 = vector.extract_strided_slice %487 {offsets = [0, 0], sizes = [8, 32], strides = [1, 1]} : vector<16x32xf32> to vector<8x32xf32>
    %496 = vector.extract_strided_slice %494 {offsets = [0, 0], sizes = [10, 64], strides = [1, 1]} : vector<20x64xf32> to vector<10x64xf32>
    %497 = vector.extract_strided_slice %495 {offsets = [0, 0], sizes = [8, 8], strides = [1, 1]} : vector<8x32xf32> to vector<8x8xf32>
    %498 = vector.extract_strided_slice %495 {offsets = [0, 8], sizes = [8, 8], strides = [1, 1]} : vector<8x32xf32> to vector<8x8xf32>
    %499 = vector.extract_strided_slice %495 {offsets = [0, 16], sizes = [8, 8], strides = [1, 1]} : vector<8x32xf32> to vector<8x8xf32>
    %500 = vector.extract_strided_slice %495 {offsets = [0, 24], sizes = [8, 8], strides = [1, 1]} : vector<8x32xf32> to vector<8x8xf32>
    %501 = vector.shape_cast %497 : vector<8x8xf32> to vector<1x8x8xf32>
    %502 = vector.shape_cast %498 : vector<8x8xf32> to vector<1x8x8xf32>
    %503 = vector.shape_cast %499 : vector<8x8xf32> to vector<1x8x8xf32>
    %504 = vector.shape_cast %500 : vector<8x8xf32> to vector<1x8x8xf32>
    %505 = tpu.concatenate %501, %502, %503, %504 in 0 : vector<1x8x8xf32>, vector<1x8x8xf32>, vector<1x8x8xf32>, vector<1x8x8xf32> -> vector<4x8x8xf32>
    %506 = vector.extract_strided_slice %496 {offsets = [0, 0], sizes = [10, 8], strides = [1, 1]} : vector<10x64xf32> to vector<10x8xf32>
    %507 = vector.extract_strided_slice %496 {offsets = [0, 8], sizes = [10, 8], strides = [1, 1]} : vector<10x64xf32> to vector<10x8xf32>
    %508 = vector.extract_strided_slice %496 {offsets = [0, 16], sizes = [10, 8], strides = [1, 1]} : vector<10x64xf32> to vector<10x8xf32>
    %509 = vector.extract_strided_slice %496 {offsets = [0, 24], sizes = [10, 8], strides = [1, 1]} : vector<10x64xf32> to vector<10x8xf32>
    %510 = vector.shape_cast %506 : vector<10x8xf32> to vector<1x10x8xf32>
    %511 = vector.shape_cast %507 : vector<10x8xf32> to vector<1x10x8xf32>
    %512 = vector.shape_cast %508 : vector<10x8xf32> to vector<1x10x8xf32>
    %513 = vector.shape_cast %509 : vector<10x8xf32> to vector<1x10x8xf32>
    %514 = tpu.concatenate %510, %511, %512, %513 in 0 : vector<1x10x8xf32>, vector<1x10x8xf32>, vector<1x10x8xf32>, vector<1x10x8xf32> -> vector<4x10x8xf32>
    %515 = vector.extract_strided_slice %496 {offsets = [0, 32], sizes = [10, 8], strides = [1, 1]} : vector<10x64xf32> to vector<10x8xf32>
    %516 = vector.extract_strided_slice %496 {offsets = [0, 40], sizes = [10, 8], strides = [1, 1]} : vector<10x64xf32> to vector<10x8xf32>
    %517 = vector.extract_strided_slice %496 {offsets = [0, 48], sizes = [10, 8], strides = [1, 1]} : vector<10x64xf32> to vector<10x8xf32>
    %518 = vector.extract_strided_slice %496 {offsets = [0, 56], sizes = [10, 8], strides = [1, 1]} : vector<10x64xf32> to vector<10x8xf32>
    %519 = vector.shape_cast %515 : vector<10x8xf32> to vector<1x10x8xf32>
    %520 = vector.shape_cast %516 : vector<10x8xf32> to vector<1x10x8xf32>
    %521 = vector.shape_cast %517 : vector<10x8xf32> to vector<1x10x8xf32>
    %522 = vector.shape_cast %518 : vector<10x8xf32> to vector<1x10x8xf32>
    %523 = tpu.concatenate %519, %520, %521, %522 in 0 : vector<1x10x8xf32>, vector<1x10x8xf32>, vector<1x10x8xf32>, vector<1x10x8xf32> -> vector<4x10x8xf32>
    "tpu.trace_start"() <{level = 10 : i32, message = "htd,hkd->htk"}> : () -> ()
    %cst_176 = arith.constant dense<0.000000e+00> : vector<4x8x10xf32>
    %524 = tpu.matmul %505, %514, %cst_176 {dimension_numbers = #tpu.dot_dimension_numbers<[2], [2], [1], [1], [0, 0, 0, 1, 1, 1], [0], [0]>} : vector<4x8x8xf32>, vector<4x10x8xf32>, vector<4x8x10xf32> -> vector<4x8x10xf32>
    "tpu.trace_stop"() : () -> ()
    %525 = arith.addf %524, %17 : vector<4x8x10xf32>
    %cst_177 = arith.constant dense<0xFF800000> : vector<4x8xf32>
    %526 = vector.multi_reduction <maximumf>, %525, %cst_177 [2] : vector<4x8x10xf32> to vector<4x8xf32>
    %527 = vector.shape_cast %526 : vector<4x8xf32> to vector<4x8x1xf32>
    %528 = vector.broadcast %527 : vector<4x8x1xf32> to vector<4x8x10xf32>
    %529 = arith.subf %525, %528 : vector<4x8x10xf32>
    %530 = math.exp %529 : vector<4x8x10xf32>
    %cst_178 = arith.constant dense<0.000000e+00> : vector<4x8xf32>
    %531 = vector.multi_reduction <add>, %530, %cst_178 [2] : vector<4x8x10xf32> to vector<4x8xf32>
    %532 = vector.shape_cast %531 : vector<4x8xf32> to vector<4x8x1xf32>
    %533 = tpu.reciprocal %532 {approx = true} : vector<4x8x1xf32> -> vector<4x8x1xf32>
    %534 = vector.broadcast %533 : vector<4x8x1xf32> to vector<4x8x10xf32>
    %535 = arith.mulf %530, %534 : vector<4x8x10xf32>
    "tpu.trace_start"() <{level = 10 : i32, message = "htk,hkd->htd"}> : () -> ()
    %cst_179 = arith.constant dense<0.000000e+00> : vector<4x8x8xf32>
    %536 = tpu.matmul %535, %523, %cst_179 {dimension_numbers = #tpu.dot_dimension_numbers<[2], [1], [1], [2], [0, 0, 0, 1, 1, 2], [0], [0]>} : vector<4x8x10xf32>, vector<4x10x8xf32>, vector<4x8x8xf32> -> vector<4x8x8xf32>
    "tpu.trace_stop"() : () -> ()
    %537 = vector.extract_strided_slice %536 {offsets = [0, 0, 0], sizes = [1, 8, 8], strides = [1, 1, 1]} : vector<4x8x8xf32> to vector<1x8x8xf32>
    %538 = vector.shape_cast %537 : vector<1x8x8xf32> to vector<8x8xf32>
    %539 = vector.extract_strided_slice %536 {offsets = [1, 0, 0], sizes = [1, 8, 8], strides = [1, 1, 1]} : vector<4x8x8xf32> to vector<1x8x8xf32>
    %540 = vector.shape_cast %539 : vector<1x8x8xf32> to vector<8x8xf32>
    %541 = vector.extract_strided_slice %536 {offsets = [2, 0, 0], sizes = [1, 8, 8], strides = [1, 1, 1]} : vector<4x8x8xf32> to vector<1x8x8xf32>
    %542 = vector.shape_cast %541 : vector<1x8x8xf32> to vector<8x8xf32>
    %543 = vector.extract_strided_slice %536 {offsets = [3, 0, 0], sizes = [1, 8, 8], strides = [1, 1, 1]} : vector<4x8x8xf32> to vector<1x8x8xf32>
    %544 = vector.shape_cast %543 : vector<1x8x8xf32> to vector<8x8xf32>
    %545 = tpu.concatenate %538, %540, %542, %544 in 1 : vector<8x8xf32>, vector<8x8xf32>, vector<8x8xf32>, vector<8x8xf32> -> vector<8x32xf32>
    %546 = vector.extract_strided_slice %487 {offsets = [8, 0], sizes = [8, 32], strides = [1, 1]} : vector<16x32xf32> to vector<8x32xf32>
    %547 = vector.extract_strided_slice %494 {offsets = [10, 0], sizes = [10, 64], strides = [1, 1]} : vector<20x64xf32> to vector<10x64xf32>
    %548 = vector.extract_strided_slice %546 {offsets = [0, 0], sizes = [8, 8], strides = [1, 1]} : vector<8x32xf32> to vector<8x8xf32>
    %549 = vector.extract_strided_slice %546 {offsets = [0, 8], sizes = [8, 8], strides = [1, 1]} : vector<8x32xf32> to vector<8x8xf32>
    %550 = vector.extract_strided_slice %546 {offsets = [0, 16], sizes = [8, 8], strides = [1, 1]} : vector<8x32xf32> to vector<8x8xf32>
    %551 = vector.extract_strided_slice %546 {offsets = [0, 24], sizes = [8, 8], strides = [1, 1]} : vector<8x32xf32> to vector<8x8xf32>
    %552 = vector.shape_cast %548 : vector<8x8xf32> to vector<1x8x8xf32>
    %553 = vector.shape_cast %549 : vector<8x8xf32> to vector<1x8x8xf32>
    %554 = vector.shape_cast %550 : vector<8x8xf32> to vector<1x8x8xf32>
    %555 = vector.shape_cast %551 : vector<8x8xf32> to vector<1x8x8xf32>
    %556 = tpu.concatenate %552, %553, %554, %555 in 0 : vector<1x8x8xf32>, vector<1x8x8xf32>, vector<1x8x8xf32>, vector<1x8x8xf32> -> vector<4x8x8xf32>
    %557 = vector.extract_strided_slice %547 {offsets = [0, 0], sizes = [10, 8], strides = [1, 1]} : vector<10x64xf32> to vector<10x8xf32>
    %558 = vector.extract_strided_slice %547 {offsets = [0, 8], sizes = [10, 8], strides = [1, 1]} : vector<10x64xf32> to vector<10x8xf32>
    %559 = vector.extract_strided_slice %547 {offsets = [0, 16], sizes = [10, 8], strides = [1, 1]} : vector<10x64xf32> to vector<10x8xf32>
    %560 = vector.extract_strided_slice %547 {offsets = [0, 24], sizes = [10, 8], strides = [1, 1]} : vector<10x64xf32> to vector<10x8xf32>
    %561 = vector.shape_cast %557 : vector<10x8xf32> to vector<1x10x8xf32>
    %562 = vector.shape_cast %558 : vector<10x8xf32> to vector<1x10x8xf32>
    %563 = vector.shape_cast %559 : vector<10x8xf32> to vector<1x10x8xf32>
    %564 = vector.shape_cast %560 : vector<10x8xf32> to vector<1x10x8xf32>
    %565 = tpu.concatenate %561, %562, %563, %564 in 0 : vector<1x10x8xf32>, vector<1x10x8xf32>, vector<1x10x8xf32>, vector<1x10x8xf32> -> vector<4x10x8xf32>
    %566 = vector.extract_strided_slice %547 {offsets = [0, 32], sizes = [10, 8], strides = [1, 1]} : vector<10x64xf32> to vector<10x8xf32>
    %567 = vector.extract_strided_slice %547 {offsets = [0, 40], sizes = [10, 8], strides = [1, 1]} : vector<10x64xf32> to vector<10x8xf32>
    %568 = vector.extract_strided_slice %547 {offsets = [0, 48], sizes = [10, 8], strides = [1, 1]} : vector<10x64xf32> to vector<10x8xf32>
    %569 = vector.extract_strided_slice %547 {offsets = [0, 56], sizes = [10, 8], strides = [1, 1]} : vector<10x64xf32> to vector<10x8xf32>
    %570 = vector.shape_cast %566 : vector<10x8xf32> to vector<1x10x8xf32>
    %571 = vector.shape_cast %567 : vector<10x8xf32> to vector<1x10x8xf32>
    %572 = vector.shape_cast %568 : vector<10x8xf32> to vector<1x10x8xf32>
    %573 = vector.shape_cast %569 : vector<10x8xf32> to vector<1x10x8xf32>
    %574 = tpu.concatenate %570, %571, %572, %573 in 0 : vector<1x10x8xf32>, vector<1x10x8xf32>, vector<1x10x8xf32>, vector<1x10x8xf32> -> vector<4x10x8xf32>
    "tpu.trace_start"() <{level = 10 : i32, message = "htd,hkd->htk"}> : () -> ()
    %cst_180 = arith.constant dense<0.000000e+00> : vector<4x8x10xf32>
    %575 = tpu.matmul %556, %565, %cst_180 {dimension_numbers = #tpu.dot_dimension_numbers<[2], [2], [1], [1], [0, 0, 0, 1, 1, 1], [0], [0]>} : vector<4x8x8xf32>, vector<4x10x8xf32>, vector<4x8x10xf32> -> vector<4x8x10xf32>
    "tpu.trace_stop"() : () -> ()
    %576 = arith.addf %575, %29 : vector<4x8x10xf32>
    %cst_181 = arith.constant dense<0xFF800000> : vector<4x8xf32>
    %577 = vector.multi_reduction <maximumf>, %576, %cst_181 [2] : vector<4x8x10xf32> to vector<4x8xf32>
    %578 = vector.shape_cast %577 : vector<4x8xf32> to vector<4x8x1xf32>
    %579 = vector.broadcast %578 : vector<4x8x1xf32> to vector<4x8x10xf32>
    %580 = arith.subf %576, %579 : vector<4x8x10xf32>
    %581 = math.exp %580 : vector<4x8x10xf32>
    %cst_182 = arith.constant dense<0.000000e+00> : vector<4x8xf32>
    %582 = vector.multi_reduction <add>, %581, %cst_182 [2] : vector<4x8x10xf32> to vector<4x8xf32>
    %583 = vector.shape_cast %582 : vector<4x8xf32> to vector<4x8x1xf32>
    %584 = tpu.reciprocal %583 {approx = true} : vector<4x8x1xf32> -> vector<4x8x1xf32>
    %585 = vector.broadcast %584 : vector<4x8x1xf32> to vector<4x8x10xf32>
    %586 = arith.mulf %581, %585 : vector<4x8x10xf32>
    "tpu.trace_start"() <{level = 10 : i32, message = "htk,hkd->htd"}> : () -> ()
    %cst_183 = arith.constant dense<0.000000e+00> : vector<4x8x8xf32>
    %587 = tpu.matmul %586, %574, %cst_183 {dimension_numbers = #tpu.dot_dimension_numbers<[2], [1], [1], [2], [0, 0, 0, 1, 1, 2], [0], [0]>} : vector<4x8x10xf32>, vector<4x10x8xf32>, vector<4x8x8xf32> -> vector<4x8x8xf32>
    "tpu.trace_stop"() : () -> ()
    %588 = vector.extract_strided_slice %587 {offsets = [0, 0, 0], sizes = [1, 8, 8], strides = [1, 1, 1]} : vector<4x8x8xf32> to vector<1x8x8xf32>
    %589 = vector.shape_cast %588 : vector<1x8x8xf32> to vector<8x8xf32>
    %590 = vector.extract_strided_slice %587 {offsets = [1, 0, 0], sizes = [1, 8, 8], strides = [1, 1, 1]} : vector<4x8x8xf32> to vector<1x8x8xf32>
    %591 = vector.shape_cast %590 : vector<1x8x8xf32> to vector<8x8xf32>
    %592 = vector.extract_strided_slice %587 {offsets = [2, 0, 0], sizes = [1, 8, 8], strides = [1, 1, 1]} : vector<4x8x8xf32> to vector<1x8x8xf32>
    %593 = vector.shape_cast %592 : vector<1x8x8xf32> to vector<8x8xf32>
    %594 = vector.extract_strided_slice %587 {offsets = [3, 0, 0], sizes = [1, 8, 8], strides = [1, 1, 1]} : vector<4x8x8xf32> to vector<1x8x8xf32>
    %595 = vector.shape_cast %594 : vector<1x8x8xf32> to vector<8x8xf32>
    %596 = tpu.concatenate %589, %591, %593, %595 in 1 : vector<8x8xf32>, vector<8x8xf32>, vector<8x8xf32>, vector<8x8xf32> -> vector<8x32xf32>
    %597 = tpu.concatenate %545, %596 in 0 : vector<8x32xf32>, vector<8x32xf32> -> vector<16x32xf32>
    %598 = arith.truncf %597 : vector<16x32xf32> to vector<16x32xbf16>
    %c1_184 = arith.constant 1 : index
    %c0_185 = arith.constant 0 : index
    %c0_186 = arith.constant 0 : index
    %599 = vector.load %arg21[%c1_184, %c0_185, %c0_186] : memref<2x32x32xbf16, #tpu.memory_space<vmem>>, vector<1x32x32xbf16>
    %600 = vector.shape_cast %599 : vector<1x32x32xbf16> to vector<32x32xbf16>
    %cst_187 = arith.constant dense<0.000000e+00> : vector<16x32xf32>
    %601 = tpu.matmul %598, %600, %cst_187 {dimension_numbers = #tpu.dot_dimension_numbers<[1], [0], [0], [1], [0, 0, 1, 1], [], []>} : vector<16x32xbf16>, vector<32x32xbf16>, vector<16x32xf32> -> vector<16x32xf32>
    %c1_188 = arith.constant 1 : index
    %c0_189 = arith.constant 0 : index
    %c0_190 = arith.constant 0 : index
    %602 = vector.load %arg22[%c1_188, %c0_189, %c0_190] : memref<2x1x32xf32, #tpu.memory_space<vmem>>, vector<1x1x32xf32>
    %603 = vector.shape_cast %602 : vector<1x1x32xf32> to vector<1x32xf32>
    %604 = vector.broadcast %603 : vector<1x32xf32> to vector<16x32xf32>
    %605 = arith.addf %601, %604 : vector<16x32xf32>
    %606 = arith.addf %605, %479 : vector<16x32xf32>
    %c1_191 = arith.constant 1 : index
    %c0_192 = arith.constant 0 : index
    %c0_193 = arith.constant 0 : index
    %607 = vector.load %arg23[%c1_191, %c0_192, %c0_193] : memref<2x1x32xf32, #tpu.memory_space<vmem>>, vector<1x1x32xf32>
    %608 = vector.shape_cast %607 : vector<1x1x32xf32> to vector<1x32xf32>
    %c1_194 = arith.constant 1 : index
    %c0_195 = arith.constant 0 : index
    %c0_196 = arith.constant 0 : index
    %609 = vector.load %arg24[%c1_194, %c0_195, %c0_196] : memref<2x1x32xf32, #tpu.memory_space<vmem>>, vector<1x1x32xf32>
    %610 = vector.shape_cast %609 : vector<1x1x32xf32> to vector<1x32xf32>
    %cst_197 = arith.constant dense<0.000000e+00> : vector<16xf32>
    %611 = vector.multi_reduction <add>, %606, %cst_197 [1] : vector<16x32xf32> to vector<16xf32>
    %612 = vector.shape_cast %611 : vector<16xf32> to vector<16x1xf32>
    %cst_198 = arith.constant 3.200000e+01 : f32
    %613 = vector.broadcast %cst_198 : f32 to vector<16x1xf32>
    %614 = arith.divf %612, %613 : vector<16x1xf32>
    %615 = vector.broadcast %614 : vector<16x1xf32> to vector<16x32xf32>
    %616 = arith.subf %606, %615 : vector<16x32xf32>
    %617 = arith.mulf %616, %616 : vector<16x32xf32>
    %cst_199 = arith.constant dense<0.000000e+00> : vector<16xf32>
    %618 = vector.multi_reduction <add>, %617, %cst_199 [1] : vector<16x32xf32> to vector<16xf32>
    %619 = vector.shape_cast %618 : vector<16xf32> to vector<16x1xf32>
    %cst_200 = arith.constant 3.200000e+01 : f32
    %620 = vector.broadcast %cst_200 : f32 to vector<16x1xf32>
    %621 = arith.divf %619, %620 : vector<16x1xf32>
    %622 = vector.broadcast %614 : vector<16x1xf32> to vector<16x32xf32>
    %623 = arith.subf %606, %622 : vector<16x32xf32>
    %cst_201 = arith.constant 9.99999974E-6 : f32
    %624 = vector.broadcast %cst_201 : f32 to vector<16x1xf32>
    %625 = arith.addf %621, %624 : vector<16x1xf32>
    %626 = math.rsqrt %625 : vector<16x1xf32>
    %627 = vector.broadcast %626 : vector<16x1xf32> to vector<16x32xf32>
    %628 = arith.mulf %623, %627 : vector<16x32xf32>
    %629 = vector.broadcast %608 : vector<1x32xf32> to vector<16x32xf32>
    %630 = arith.mulf %628, %629 : vector<16x32xf32>
    %631 = vector.broadcast %610 : vector<1x32xf32> to vector<16x32xf32>
    %632 = arith.addf %630, %631 : vector<16x32xf32>
    %633 = arith.mulf %632, %4 : vector<16x32xf32>
    %634 = arith.truncf %633 : vector<16x32xf32> to vector<16x32xbf16>
    %c0_202 = arith.constant 0 : index
    %c0_203 = arith.constant 0 : index
    %635 = vector.load %arg25[%c0_202, %c0_203] : memref<32x128xbf16, #tpu.memory_space<vmem>>, vector<32x128xbf16>
    %cst_204 = arith.constant dense<0.000000e+00> : vector<16x128xf32>
    %636 = tpu.matmul %634, %635, %cst_204 {dimension_numbers = #tpu.dot_dimension_numbers<[1], [0], [0], [1], [0, 0, 1, 1], [], []>} : vector<16x32xbf16>, vector<32x128xbf16>, vector<16x128xf32> -> vector<16x128xf32>
    %c0_205 = arith.constant 0 : index
    %c0_206 = arith.constant 0 : index
    %637 = vector.load %arg26[%c0_205, %c0_206] : memref<16x128xf32, #tpu.memory_space<vmem>>, vector<16x128xf32>
    tpu.vector_store %arg26[%c0_205, %c0_206], %636 {strides = array<i32>} : memref<16x128xf32, #tpu.memory_space<vmem>>, vector<16x128xf32>,
    return
  }
  func.func @transform_0(%arg0: i32, %arg1: memref<2xi32, #tpu.memory_space<smem>>) -> (i32, i32) {
    %c0_i32 = arith.constant 0 : i32
    %c0_i32_0 = arith.constant 0 : i32
    return %arg0, %c0_i32 : i32, i32
  }
  func.func @transform_1(%arg0: i32, %arg1: memref<2xi32, #tpu.memory_space<smem>>) -> (i32, i32) {
    %c0_i32 = arith.constant 0 : i32
    %c0_i32_0 = arith.constant 0 : i32
    return %arg0, %c0_i32 : i32, i32
  }
  func.func @transform_2(%arg0: i32, %arg1: memref<2xi32, #tpu.memory_space<smem>>) -> (i32, i32) {
    %c0_i32 = arith.constant 0 : i32
    %c0_i32_0 = arith.constant 0 : i32
    return %arg0, %c0_i32 : i32, i32
  }
  func.func @transform_3(%arg0: i32, %arg1: memref<2xi32, #tpu.memory_space<smem>>) -> (i32, i32, i32) {
    %c0_i32 = arith.constant 0 : i32
    %c0_i32_0 = arith.constant 0 : i32
    %c0_i32_1 = arith.constant 0 : i32
    %c0_i32_2 = arith.constant 0 : i32
    return %c0_i32, %c0_i32_0, %c0_i32_1 : i32, i32, i32
  }
  func.func @transform_4(%arg0: i32, %arg1: memref<2xi32, #tpu.memory_space<smem>>) -> (i32, i32, i32) {
    %c0_i32 = arith.constant 0 : i32
    %c0_i32_0 = arith.constant 0 : i32
    %c0_i32_1 = arith.constant 0 : i32
    %c0_i32_2 = arith.constant 0 : i32
    return %c0_i32, %c0_i32_0, %c0_i32_1 : i32, i32, i32
  }
  func.func @transform_5(%arg0: i32, %arg1: memref<2xi32, #tpu.memory_space<smem>>) -> (i32, i32, i32) {
    %c0_i32 = arith.constant 0 : i32
    %c0_i32_0 = arith.constant 0 : i32
    %c0_i32_1 = arith.constant 0 : i32
    %c0_i32_2 = arith.constant 0 : i32
    return %c0_i32, %c0_i32_0, %c0_i32_1 : i32, i32, i32
  }
  func.func @transform_6(%arg0: i32, %arg1: memref<2xi32, #tpu.memory_space<smem>>) -> (i32, i32, i32) {
    %c0_i32 = arith.constant 0 : i32
    %c0_i32_0 = arith.constant 0 : i32
    %c0_i32_1 = arith.constant 0 : i32
    %c0_i32_2 = arith.constant 0 : i32
    return %c0_i32, %c0_i32_0, %c0_i32_1 : i32, i32, i32
  }
  func.func @transform_7(%arg0: i32, %arg1: memref<2xi32, #tpu.memory_space<smem>>) -> (i32, i32, i32) {
    %c0_i32 = arith.constant 0 : i32
    %c0_i32_0 = arith.constant 0 : i32
    %c0_i32_1 = arith.constant 0 : i32
    %c0_i32_2 = arith.constant 0 : i32
    return %c0_i32, %c0_i32_0, %c0_i32_1 : i32, i32, i32
  }
  func.func @transform_8(%arg0: i32, %arg1: memref<2xi32, #tpu.memory_space<smem>>) -> (i32, i32, i32) {
    %c0_i32 = arith.constant 0 : i32
    %c0_i32_0 = arith.constant 0 : i32
    %c0_i32_1 = arith.constant 0 : i32
    %c0_i32_2 = arith.constant 0 : i32
    return %c0_i32, %c0_i32_0, %c0_i32_1 : i32, i32, i32
  }
  func.func @transform_9(%arg0: i32, %arg1: memref<2xi32, #tpu.memory_space<smem>>) -> (i32, i32, i32) {
    %c0_i32 = arith.constant 0 : i32
    %c0_i32_0 = arith.constant 0 : i32
    %c0_i32_1 = arith.constant 0 : i32
    %c0_i32_2 = arith.constant 0 : i32
    return %c0_i32, %c0_i32_0, %c0_i32_1 : i32, i32, i32
  }
  func.func @transform_10(%arg0: i32, %arg1: memref<2xi32, #tpu.memory_space<smem>>) -> (i32, i32, i32) {
    %c0_i32 = arith.constant 0 : i32
    %c0_i32_0 = arith.constant 0 : i32
    %c0_i32_1 = arith.constant 0 : i32
    %c0_i32_2 = arith.constant 0 : i32
    return %c0_i32, %c0_i32_0, %c0_i32_1 : i32, i32, i32
  }
  func.func @transform_11(%arg0: i32, %arg1: memref<2xi32, #tpu.memory_space<smem>>) -> (i32, i32, i32) {
    %c0_i32 = arith.constant 0 : i32
    %c0_i32_0 = arith.constant 0 : i32
    %c0_i32_1 = arith.constant 0 : i32
    %c0_i32_2 = arith.constant 0 : i32
    return %c0_i32, %c0_i32_0, %c0_i32_1 : i32, i32, i32
  }
  func.func @transform_12(%arg0: i32, %arg1: memref<2xi32, #tpu.memory_space<smem>>) -> (i32, i32, i32) {
    %c0_i32 = arith.constant 0 : i32
    %c0_i32_0 = arith.constant 0 : i32
    %c0_i32_1 = arith.constant 0 : i32
    %c0_i32_2 = arith.constant 0 : i32
    return %c0_i32, %c0_i32_0, %c0_i32_1 : i32, i32, i32
  }
  func.func @transform_13(%arg0: i32, %arg1: memref<2xi32, #tpu.memory_space<smem>>) -> (i32, i32, i32) {
    %c0_i32 = arith.constant 0 : i32
    %c0_i32_0 = arith.constant 0 : i32
    %c0_i32_1 = arith.constant 0 : i32
    %c0_i32_2 = arith.constant 0 : i32
    return %c0_i32, %c0_i32_0, %c0_i32_1 : i32, i32, i32
  }
  func.func @transform_14(%arg0: i32, %arg1: memref<2xi32, #tpu.memory_space<smem>>) -> (i32, i32, i32) {
    %c0_i32 = arith.constant 0 : i32
    %c0_i32_0 = arith.constant 0 : i32
    %c0_i32_1 = arith.constant 0 : i32
    %c0_i32_2 = arith.constant 0 : i32
    return %c0_i32, %c0_i32_0, %c0_i32_1 : i32, i32, i32
  }
  func.func @transform_15(%arg0: i32, %arg1: memref<2xi32, #tpu.memory_space<smem>>) -> (i32, i32, i32) {
    %c0_i32 = arith.constant 0 : i32
    %c0_i32_0 = arith.constant 0 : i32
    %c0_i32_1 = arith.constant 0 : i32
    %c0_i32_2 = arith.constant 0 : i32
    return %c0_i32, %c0_i32_0, %c0_i32_1 : i32, i32, i32
  }
  func.func @transform_16(%arg0: i32, %arg1: memref<2xi32, #tpu.memory_space<smem>>) -> (i32, i32, i32) {
    %c0_i32 = arith.constant 0 : i32
    %c0_i32_0 = arith.constant 0 : i32
    %c0_i32_1 = arith.constant 0 : i32
    %c0_i32_2 = arith.constant 0 : i32
    return %c0_i32, %c0_i32_0, %c0_i32_1 : i32, i32, i32
  }
  func.func @transform_17(%arg0: i32, %arg1: memref<2xi32, #tpu.memory_space<smem>>) -> (i32, i32, i32) {
    %c0_i32 = arith.constant 0 : i32
    %c0_i32_0 = arith.constant 0 : i32
    %c0_i32_1 = arith.constant 0 : i32
    %c0_i32_2 = arith.constant 0 : i32
    return %c0_i32, %c0_i32_0, %c0_i32_1 : i32, i32, i32
  }
  func.func @transform_18(%arg0: i32, %arg1: memref<2xi32, #tpu.memory_space<smem>>) -> (i32, i32, i32) {
    %c0_i32 = arith.constant 0 : i32
    %c0_i32_0 = arith.constant 0 : i32
    %c0_i32_1 = arith.constant 0 : i32
    %c0_i32_2 = arith.constant 0 : i32
    return %c0_i32, %c0_i32_0, %c0_i32_1 : i32, i32, i32
  }
  func.func @transform_19(%arg0: i32, %arg1: memref<2xi32, #tpu.memory_space<smem>>) -> (i32, i32, i32) {
    %c0_i32 = arith.constant 0 : i32
    %c0_i32_0 = arith.constant 0 : i32
    %c0_i32_1 = arith.constant 0 : i32
    %c0_i32_2 = arith.constant 0 : i32
    return %c0_i32, %c0_i32_0, %c0_i32_1 : i32, i32, i32
  }
  func.func @transform_20(%arg0: i32, %arg1: memref<2xi32, #tpu.memory_space<smem>>) -> (i32, i32, i32) {
    %c0_i32 = arith.constant 0 : i32
    %c0_i32_0 = arith.constant 0 : i32
    %c0_i32_1 = arith.constant 0 : i32
    %c0_i32_2 = arith.constant 0 : i32
    return %c0_i32, %c0_i32_0, %c0_i32_1 : i32, i32, i32
  }
  func.func @transform_21(%arg0: i32, %arg1: memref<2xi32, #tpu.memory_space<smem>>) -> (i32, i32, i32) {
    %c0_i32 = arith.constant 0 : i32
    %c0_i32_0 = arith.constant 0 : i32
    %c0_i32_1 = arith.constant 0 : i32
    %c0_i32_2 = arith.constant 0 : i32
    return %c0_i32, %c0_i32_0, %c0_i32_1 : i32, i32, i32
  }
  func.func @transform_22(%arg0: i32, %arg1: memref<2xi32, #tpu.memory_space<smem>>) -> (i32, i32, i32) {
    %c0_i32 = arith.constant 0 : i32
    %c0_i32_0 = arith.constant 0 : i32
    %c0_i32_1 = arith.constant 0 : i32
    %c0_i32_2 = arith.constant 0 : i32
    return %c0_i32, %c0_i32_0, %c0_i32_1 : i32, i32, i32
  }
  func.func @transform_23(%arg0: i32, %arg1: memref<2xi32, #tpu.memory_space<smem>>) -> (i32, i32) {
    %c0_i32 = arith.constant 0 : i32
    %c0_i32_0 = arith.constant 0 : i32
    %c0_i32_1 = arith.constant 0 : i32
    return %c0_i32, %c0_i32_0 : i32, i32
  }
  func.func @transform_24(%arg0: i32, %arg1: memref<2xi32, #tpu.memory_space<smem>>) -> (i32, i32) {
    %c0_i32 = arith.constant 0 : i32
    %c0_i32_0 = arith.constant 0 : i32
    return %arg0, %c0_i32 : i32, i32
  }
}

</mosaic_0001>

<bundles_post_ra>
// kernel: decoder_forward.1
= control target key start
LH: loop header
LB: loop body
LE: loop exit
PB: predicated region body
PF: predicated region fallthrough
CT: control target
= control target key end

     0   :  { %s3200_s30 = smov [#allocation3]   ;;  %s4241_s0 = inlined_call_operand.vmem [shape: s32[2], index: 0, kind: input, shape index: {}]   ;;  %s4242_s1 = inlined_call_operand.vmem [shape: f32[16,32], index: 1, kind: input, shape index: {}]   ;;  %s4243_s2 = inlined_call_operand.vmem [shape: f32[16,1], index: 2, kind: input, shape index: {}]   ;;  %s4244_s3 = inlined_call_operand.vmem [shape: bf16[20,32], index: 3, kind: input, shape index: {}]   ;;  %s4245_s4 = inlined_call_operand.vmem [shape: bf16[2,32,64], index: 4, kind: input, shape index: {}]   ;;  %s4246_s5 = inlined_call_operand.vmem [shape: f32[2,1,64], index: 5, kind: input, shape index: {}]   ;;  %s4247_s6 = inlined_call_operand.vmem [shape: bf16[2,64,32], index: 6, kind: input, shape index: {}]   ;;  %s4248_s7 = inlined_call_operand.vmem [shape: f32[2,1,32], index: 7, kind: input, shape index: {}]   ;;  %s4249_s8 = inlined_call_operand.vmem [shape: f32[2,1,32], index: 8, kind: input, shape index: {}]   ;;  %s4250_s9 = inlined_call_operand.vmem [shape: f32[2,1,32], index: 9, kind: input, shape index: {}]   ;;  %s4251_s10 = inlined_call_operand.vmem [shape: bf16[2,32,64], index: 10, kind: input, shape index: {}]   ;;  %s4252_s11 = inlined_call_operand.vmem [shape: f32[2,1,64], index: 11, kind: input, shape index: {}]   ;;  %s4253_s12 = inlined_call_operand.vmem [shape: bf16[2,64,32], index: 12, kind: input, shape index: {}]   ;;  %s4254_s13 = inlined_call_operand.vmem [shape: f32[2,21,32], index: 13, kind: input, shape index: {}]   ;;  %s4255_s14 = inlined_call_operand.vmem [shape: bf16[2,32,32], index: 14, kind: input, shape index: {}]   ;;  %s4256_s15 = inlined_call_operand.vmem [shape: f32[2,1,32], index: 15, kind: input, shape index: {}]   ;;  %s4257_s16 = inlined_call_operand.vmem [shape: bf16[2,32,32], index: 16, kind: input, shape index: {}]   ;;  %s4258_s17 = inlined_call_operand.vmem [shape: f32[2,1,32], index: 17, kind: input, shape index: {}]   ;;  %s4259_s18 = inlined_call_operand.vmem [shape: bf16[2,32,64], index: 18, kind: input, shape index: {}]   ;;  %s4260_s19 = inlined_call_operand.vmem [shape: f32[2,1,64], index: 19, kind: input, shape index: {}]   ;;  %s4261_s20 = inlined_call_operand.vmem [shape: bf16[2,32,32], index: 20, kind: input, shape index: {}]   ;;  %s4262_s21 = inlined_call_operand.vmem [shape: f32[2,1,32], index: 21, kind: input, shape index: {}]   ;;  %s4263_s22 = inlined_call_operand.vmem [shape: f32[2,1,32], index: 22, kind: input, shape index: {}]   ;;  %s4264_s23 = inlined_call_operand.vmem [shape: f32[2,1,32], index: 23, kind: input, shape index: {}]   ;;  %s4265_s24 = inlined_call_operand.vmem [shape: bf16[32,128], index: 24, kind: input, shape index: {}]   ;;  %s4266_s25 = inlined_call_operand.hbm [shape: f32[16,128], index: 25, kind: output, shape index: {}]  }
   0x1   :  { %4298 = sst [smem:[#allocation8_spill]] %s4241_s0 }
   0x2   :  { %4299 = sst [smem:[#allocation9_spill]] %s4242_s1 }
   0x3   :  { %4300 = sst [smem:[#allocation10_spill]] %s4243_s2 }
   0x4   :  { %4301 = sst [smem:[#allocation11_spill]] %s4244_s3 }
   0x5   :  { %4302 = sst [smem:[#allocation12_spill]] %s4245_s4 }
   0x6   :  { %4303 = sst [smem:[#allocation13_spill]] %s4246_s5 }
   0x7   :  { %4304 = sst [smem:[#allocation14_spill]] %s4247_s6 }
   0x8   :  { %4305 = sst [smem:[#allocation15_spill]] %s4248_s7 }
   0x9   :  { %4306 = sst [smem:[#allocation16_spill]] %s4249_s8 }
   0xa   :  { %4307 = sst [smem:[#allocation17_spill]] %s4250_s9 }
   0xb   :  { %4308 = sst [smem:[#allocation18_spill]] %s4258_s17 }
   0xc   :  { %s4309_s6 = sld [smem:[#allocation8_spill]] }
  0x12   :  { %s31_s17 = sshll.u32 %s4309_s6, 4  ;;  %s32_s17 = int_to_ptr.vmem [resolvable:$true] %s31_s17 }
  0x13   :  { %34 = dma.vmem_to_smem %s32_s17, 16, %s3200_s30, [#allocation2] }
  0x14   :  { %3196 = dma.done.wait [#allocation2], 16 }
  0x15   :  { %3197 = vsyncadd [#allocation2], 4294967280 }
  0x16   :  { %37 = sfence }
  0x17   :  { %s4310_s26 = sld [smem:[#allocation12_spill]]  ;;  %vm147_vm0 = vcmask 261120  }
  0x18   :  { %s4311_s28 = sld [smem:[#allocation9_spill]] }
  0x1d   :  { %v2948_v0 = vld [vmem:[%s4310_s26 + $0x8] sm:$0xff]  ;;  %v2947_v1 = vld [vmem:[%s4310_s26] sm:$0xff] }
  0x1e   :  { %v88_v2 = vld [vmem:[%s4311_s28] sm:$0xff]  ;;  %v89_v3 = vld [vmem:[%s4311_s28 + $0x8] sm:$0xff]  ;;  %157 = vmatpush.bf16.msra.mxu0 %v2948_v0 }
  0x1f   :  { %v126_v4 = vpack.c.bf16 %v89_v3, %v88_v2 }
  0x22   :  { %158 = vmatpush.bf16.msra.mxu0 %v2947_v1 }
  0x25   :  { %2631 = vmatmul.msk.bf16.vlgmr.msra.gmra.mxu0 %vm147_vm0, %v126_v4 }
  0x26   :  { %38 = vsyncpa [#allocation5], 0  ;;  %s4312_s29 = sld [smem:[#allocation14_spill]]  ;;  %vm204_vm1 = vcmask 523264   ;;  %v3201_v26 = vmov 32.0   ;;  %v3202_v30 = vmov 0   ;;  %v105_v32 = vlaneseq }
  0x27   :  { %s4313_s4 = sld [smem:[#allocation13_spill]]  ;;  %3077 = vrcp.f32 %v3201_v26  ;;  %3002 = vset.pattern.permute.xlu2 %v3202_v30  ;;  %3004 = vset.pattern.permute.xlu1 %v3202_v30  ;;  %v2954_v52 = vld [vmem:[%s4251_s10 + $0x8] sm:$0xff]  ;;  %v2953_v55 = vld [vmem:[%s4251_s10] sm:$0xff]  ;;  %s4283_s30 = smov 112  }
  0x28   :  { %s4314_s5 = sld [smem:[#allocation15_spill]]  ;;  %3003 = vset.pattern.permute.xlu0 %v3202_v30  ;;  %v3390_v35 = vshrl.u32 %v105_v32, 7  ;;  %319 = vmatpush.bf16.msra.mxu2 %v2954_v52  ;;  %v2955_v26 = vld [vmem:[%s4253_s12] sm:$0xff]  ;;  %s4296_s3 = smov 104  }
  0x29   :  { %s4315_s2 = sld [smem:[#allocation10_spill]]  ;;  %v2963_v52 = vld [vmem:[%s4259_s18] sm:$0xff]  ;;  %s4281_s27 = smov 120  }
  0x2a   :  { %vm121_vm3 = vcmp.ge.s32.totalorder %v3390_v35, 3  ;;  %vm122_vm4 = vcmp.ge.s32.totalorder %v3390_v35, 4  ;;  %vm123_vm5 = vcmp.ge.s32.totalorder %v3390_v35, 5  ;;  %vm124_vm6 = vcmp.ge.s32.totalorder %v3390_v35, 6  ;;  %s4316_s9 = sld [smem:[#allocation16_spill]]  ;;  %s4279_s6 = smov 96  }
  0x2b   :  { %v433_v38 = vsel %vm121_vm3, 1, %v3202_v30  ;;  %v453_v44 = vsel %vm122_vm4, 1, %v3202_v30  ;;  %v473_v50 = vsel %vm123_vm5, 1, %v3202_v30  ;;  %v493_v51 = vsel %vm124_vm6, 1, %v3202_v30  ;;  %s4318_s7 = sld [smem:[#allocation11_spill]]  ;;  %s4293_s28 = smov 16  }
  0x2c   :  { %v2952_v5 = vld [vmem:[%s4312_s29 + $0x18] sm:$0xff]  ;;  %v2951_v6 = vld [vmem:[%s4312_s29 + $0x10] sm:$0xff]  ;;  %v2950_v7 = vld [vmem:[%s4312_s29 + $0x8] sm:$0xff]  ;;  %320 = vmatpush.bf16.msra.mxu2 %v2953_v55  ;;  %vm120_vm13 = vcmp.ge.s32.totalorder %v3390_v35, 2  ;;  %vm119_vm14 = vcmp.ge.s32.totalorder %v3390_v35, 1  ;;  %vm125_vm15 = vcmp.ge.s32.totalorder %v3390_v35, 7 }
  0x2d   :  { %212 = vmatpush.bf16.msra.mxu1 %v2952_v5  ;;  %v2949_v8 = vld [vmem:[%s4312_s29] sm:$0xff]  ;;  %v3078_v27 = vpop.eup %3077  ;;  %vm398_vm4 = vcmask 1041408   ;;  %vm418_vm5 = vcmask 1042432   ;;  %vm438_vm6 = vcmask 1043456   ;;  %s4319_s0 = sld [smem:[#allocation18_spill]]  ;;  %s4294_s17 = smov 8  }
  0x2e   :  { %v3055_v10 = vld [vmem:[%s4313_s4] ss:$0 sm:$0xff]  ;;  %v233_v28 = vmul.f32 32.0, %v3078_v27  ;;  %vm237_vm2 = vweird.f32 %v3078_v27  ;;  %s108_s1 = sld [smem:[#allocation3]] }
  0x2f   :  { %v3056_v17 = vld [vmem:[%s4314_s5] ss:$0 sm:$0xff]  ;;  %v94_v34 = vld [vmem:[%s4315_s2 + $0x8] sm:$0xff]  ;;  %s2622_s8 = sld [smem:[#allocation3 + $0x1]] }
  0x30   :  { %v93_v29 = vld [vmem:[%s4315_s2] sm:$0xff]  ;;  %v234_v31 = vsub.f32 1.0, %v233_v28  ;;  %s4317_s2 = sld [smem:[#allocation17_spill]]  ;;  %v392_v28 = vsel %vm119_vm14, 1, %v3202_v30 }
  0x31   :  { %213 = vmatpush.bf16.msra.mxu1 %v2951_v6  ;;  %97 = vperm.xlu2 %3002, %v93_v29   ;;  %v512_v29 = vsel %vm125_vm15, 1, %v3202_v30  ;;  %v2959_v35 = vld [vmem:[%s4255_s14] sm:$0xff]  ;;  %vm4288_vm15 = vcmask 64512  }
  0x32   :  { %v235_v33 = vmul.f32 %v3078_v27, %v234_v31 }
  0x34   :  { %v236_v36 = vadd.f32 %v3078_v27, %v235_v33  ;;  %v3059_v33 = vld [vmem:[%s4252_s11] ss:$0 sm:$0xff] }
  0x35   :  { %214 = vmatpush.bf16.msra.mxu1 %v2950_v7 }
  0x36   :  { %v3393_v37 = vsel %vm237_vm2, %v3078_v27, %v236_v36  ;;  %v413_v27 = vsel %vm120_vm13, 1, %v3202_v30  ;;  %v2960_v30 = vld [vmem:[%s4255_s14 + $0x8] sm:$0xff]  ;;  %vm385_vm2 = vcmask 1046528  }
  0x37   :  { %554 = vmatpush.bf16.msrb.mxu0 %v2960_v30 }
  0x39   :  { %215 = vmatpush.bf16.msra.mxu1 %v2949_v8  ;;  %102 = vperm.xlu2 %3002, %v94_v34   ;;  %v3057_v8 = vld [vmem:[%s4316_s9] ss:$0 sm:$0xff] }
  0x3b   :  { %555 = vmatpush.bf16.msrb.mxu0 %v2959_v35 }
  0x41   :  { %435 = vperm.xlu2 %3002, %v433_v38  }
  0x49   :  { %455 = vperm.xlu2 %3002, %v453_v44  }
  0x51   :  { %475 = vperm.xlu2 %3002, %v473_v50  }
  0x59   :  { %495 = vperm.xlu2 %3002, %v493_v51  }
  0xa2   :  { %v160_v9 = vpop.f32.mrf.mxu0 }
  0xa3   :  { %v161_v11 = vadd.f32 %v3055_v10, %v160_v9  ;;  %v3417_v9 = vpop.permute.xlu2 %97 }
  0xa5   :  { %v165_v14 = vmax.f32 %v161_v11, 0.0 }
  0xaa   :  { %v162_v12 = vpop.f32.mrf.mxu0 }
  0xab   :  { %v163_v13 = vadd.f32 %v3055_v10, %v162_v12 }
  0xad   :  { %v166_v15 = vmax.f32 %v163_v13, 0.0  ;;  %v3058_v13 = vld [vmem:[%s4317_s2] ss:$0 sm:$0xff] }
  0xaf   :  { %v167_v16 = vpack.c.bf16 %v166_v15, %v165_v14 }
  0xb1   :  { %2648 = vmatmul.msk.bf16.vlgmr.msra.gmra.mxu1 %vm204_vm1, %v167_v16 }
 0x12e   :  { %v217_v18 = vpop.f32.mrf.mxu1 }
 0x12f   :  { %v218_v19 = vadd.f32 %v3056_v17, %v217_v18 }
 0x131   :  { %v222_v20 = vadd.f32 %v218_v19, %v88_v2  ;;  %v3422_v19 = vpop.permute.xlu2 %102 }
 0x133   :  { %v226_v21 = vsel %vm147_vm0, %v222_v20, 0.0 }
 0x134   :  { %227 = vadd.xlane.f32.xlu0 %v226_v21 }
 0x136   :  { %v219_v22 = vpop.f32.mrf.mxu1 }
 0x137   :  { %v220_v23 = vadd.f32 %v3056_v17, %v219_v22 }
 0x139   :  { %v223_v24 = vadd.f32 %v220_v23, %v89_v3  ;;  %v2958_v23 = vld [vmem:[%s4253_s12 + $0x18] sm:$0xff] }
 0x13a   :  { %369 = vmatpush.bf16.msra.mxu3 %v2958_v23 }
 0x13b   :  { %v229_v25 = vsel %vm147_vm0, %v223_v24, 0.0 }
 0x13c   :  { %230 = vadd.xlane.f32.xlu0 %v229_v25  ;;  %v2956_v25 = vld [vmem:[%s4253_s12 + $0x8] sm:$0xff] }
 0x150   :  { %394 = vperm.xlu0 %3003, %v392_v28  }
 0x1a7   :  { %v228_v39 = vpop.xlane.xlu0 %227 }
 0x1a8   :  { %v239_v40 = vmul.f32 %v3393_v37, %v228_v39 }
 0x1aa   :  { %v241_v41 = vsub.f32 %v222_v20, %v239_v40 }
 0x1ac   :  { %v243_v42 = vmul.f32 %v241_v41, %v241_v41 }
 0x1ae   :  { %v245_v43 = vsel %vm147_vm0, %v243_v42, 0.0  ;;  %v3455_v42 = vpop.permute.xlu2 %435 }
 0x1af   :  { %246 = vadd.xlane.f32.xlu1 %v245_v43  ;;  %v231_v45 = vpop.xlane.xlu0 %230 }
 0x1b0   :  { %v240_v46 = vmul.f32 %v3393_v37, %v231_v45 }
 0x1b2   :  { %v242_v47 = vsub.f32 %v223_v24, %v240_v46  ;;  %v2957_v24 = vld [vmem:[%s4253_s12 + $0x10] sm:$0xff]  ;;  %v3470_v46 = vld [vmem:[%s4254_s13] sm:$0xff] }
 0x1b3   :  { %370 = vmatpush.bf16.msra.mxu3 %v2957_v24  ;;  %v380_v50 = vperm.slane %v3470_v46, 0 }
 0x1b4   :  { %v244_v48 = vmul.f32 %v242_v47, %v242_v47 }
 0x1b6   :  { %v248_v49 = vsel %vm147_vm0, %v244_v48, 0.0  ;;  %v3457_v43 = vpop.permute.xlu2 %455  ;;  %v2964_v48 = vld [vmem:[%s4259_s18 + $0x8] sm:$0xff] }
 0x1b7   :  { %249 = vadd.xlane.f32.xlu1 %v248_v49  ;;  %371 = vmatpush.bf16.msra.mxu3 %v2956_v25 }
 0x1b8   :  { %644 = vmatpush.bf16.msrb.mxu1 %v2964_v48 }
 0x1bb   :  { %372 = vmatpush.bf16.msra.mxu3 %v2955_v26 }
 0x1bc   :  { %645 = vmatpush.bf16.msrb.mxu1 %v2963_v52 }
 0x1be   :  { %v3465_v45 = vpop.permute.xlu2 %475 }
 0x1c2   :  { %v3479_v51 = vpop.permute.xlu0 %394 }
 0x1d0   :  { %415 = vperm.xlu1 %3004, %v413_v27  }
 0x1d8   :  { %514 = vperm.xlu1 %3004, %v512_v29  }
 0x222   :  { %v247_v53 = vpop.xlane.xlu1 %246 }
 0x223   :  { %v251_v54 = vmul.f32 %v247_v53, %v3393_v37 }
 0x225   :  { %v253_v56 = vadd.f32 1e-05, %v251_v54  ;;  %v408_v54 = vperm.slane %v3470_v46, 1 }
 0x227   :  { %3079 = vrsqrt.f32 %v253_v56  ;;  %vm261_vm8 = vweird.f32 %v253_v56 }
 0x22a   :  { %v250_v57 = vpop.xlane.xlu1 %249 }
 0x22b   :  { %v252_v58 = vmul.f32 %v250_v57, %v3393_v37  ;;  %v428_v57 = vperm.slane %v3470_v46, 2 }
 0x22d   :  { %v3080_v59 = vpop.eup %3079  ;;  %v254_v60 = vadd.f32 1e-05, %v252_v58  ;;  %v448_v58 = vperm.slane %v3470_v46, 3 }
 0x22e   :  { %v256_v61 = vmul.f32 %v3080_v59, %v253_v56  ;;  %vm262_vm7 = vweird.f32 %v3080_v59 }
 0x22f   :  { %3081 = vrsqrt.f32 %v254_v60  ;;  %vm263_vm9 = vmor %vm261_vm8, %vm262_vm7  ;;  %vm271_vm11 = vweird.f32 %v254_v60  ;;  %vm437_vm7 = vcmp.eq.s32.totalorder %v3455_v42, 1  ;;  %vm458_vm8 = vcmask 1044480  }
 0x230   :  { %v257_v62 = vmul.f32 %v3080_v59, %v256_v61 }
 0x232   :  { %v258_v63 = vmul.f32 0.5, %v257_v62 }
 0x234   :  { %v259_v0 = vsub.f32 1.5, %v258_v63 }
 0x235   :  { %v3082_v1 = vpop.eup %3081 }
 0x236   :  { %v260_v2 = vmul.f32 %v3080_v59, %v259_v0  ;;  %v266_v3 = vmul.f32 %v3082_v1, %v254_v60  ;;  %vm272_vm10 = vweird.f32 %v3082_v1  ;;  %v2946_v60 = vld [vmem:[%s4318_s7] sm:$0xff] }
 0x237   :  { %vm273_vm12 = vmor %vm271_vm11, %vm272_vm10  ;;  %vm4290_vm10 = vcmask 1045504   ;;  %vm4291_vm11 = vcmp.eq.s32.totalorder %v3457_v43, 1  ;;  %2705 = vmatmul.msk.bf16.vlgmr.msrb.gmra.mxu1 %vm147_vm0, %v2946_v60 }
 0x238   :  { %v264_v4 = vsel %vm263_vm9, %v3080_v59, %v260_v2  ;;  %v267_v5 = vmul.f32 %v3082_v1, %v266_v3  ;;  %v468_v59 = vperm.slane %v3470_v46, 4  ;;  %vm396_vm9 = vcmp.eq.s32.totalorder %v3479_v51, 1 }
 0x239   :  { %v275_v7 = vmul.f32 %v264_v4, %v241_v41 }
 0x23a   :  { %v268_v6 = vmul.f32 0.5, %v267_v5 }
 0x23b   :  { %v280_v12 = vmul.f32 %v3057_v8, %v275_v7 }
 0x23c   :  { %v269_v10 = vsub.f32 1.5, %v268_v6 }
 0x23d   :  { %v285_v17 = vadd.f32 %v3058_v13, %v280_v12 }
 0x23e   :  { %v270_v11 = vmul.f32 %v3082_v1, %v269_v10  ;;  %v3513_v10 = vpop.permute.xlu2 %495 }
 0x23f   :  { %v3425_v20 = vmul.f32 %v285_v17, %v3417_v9  ;;  %vm4278_vm13 = vcmp.eq.s32.totalorder %v3513_v10, 1 }
 0x240   :  { %v274_v14 = vsel %vm273_vm12, %v3082_v1, %v270_v11  ;;  %vm4289_vm12 = vcmp.eq.s32.totalorder %v3465_v45, 1 }
 0x241   :  { %v276_v15 = vmul.f32 %v274_v14, %v242_v47 }
 0x242   :  { %v3475_v49 = vpop.permute.xlu1 %415 }
 0x243   :  { %v281_v16 = vmul.f32 %v3057_v8, %v276_v15  ;;  %vm417_vm3 = vcmp.eq.s32.totalorder %v3475_v49, 1  ;;  %v488_v8 = vperm.slane %v3470_v46, 5 }
 0x245   :  { %v286_v18 = vadd.f32 %v3058_v13, %v281_v16 }
 0x247   :  { %v3428_v21 = vmul.f32 %v286_v18, %v3422_v19 }
 0x249   :  { %v289_v22 = vpack.c.bf16 %v3428_v21, %v3425_v20 }
 0x24a   :  { %v3547_v48 = vpop.permute.xlu1 %514 }
 0x24b   :  { %2657 = vmatmul.msk.bf16.vlgmr.msra.gmra.mxu2 %vm147_vm0, %v289_v22  ;;  %vm4277_vm14 = vcmp.eq.s32.totalorder %v3547_v48, 1 }
 0x2ce   :  { %v322_v31 = vpop.f32.mrf.mxu2 }
 0x2cf   :  { %v323_v34 = vadd.f32 %v3059_v33, %v322_v31 }
 0x2d1   :  { %v327_v39 = vmax.f32 %v323_v34, 0.0 }
 0x2d6   :  { %v324_v36 = vpop.f32.mrf.mxu2 }
 0x2d7   :  { %v325_v38 = vadd.f32 %v3059_v33, %v324_v36 }
 0x2d9   :  { %v328_v40 = vmax.f32 %v325_v38, 0.0 }
 0x2db   :  { %v329_v41 = vpack.c.bf16 %v328_v40, %v327_v39 }
 0x2dd   :  { %2674 = vmatmul.msk.bf16.vlgmr.msra.gmra.mxu3 %vm204_vm1, %v329_v41 }
 0x360   :  { %v374_v44 = vpop.f32.mrf.mxu3 }
 0x361   :  { %v386_v47 = vrot.slane %v374_v44, 1  ;;  %v381_v5 = vmul.f32 %v380_v50, %v374_v44 }
 0x363   :  { %v3487_v55 = vsel %vm385_vm2, 0.0, %v386_v47 }
 0x364   :  { %v419_v1 = vrot.slane %v3487_v55, 5  ;;  %v439_v6 = vrot.slane %v3487_v55, 4  ;;  %v399_v7 = vrot.slane %v3487_v55, 6  ;;  %v459_v22 = vrot.slane %v3487_v55, 3 }
 0x365   :  { %v479_v23 = vrot.slane %v3487_v55, 2  ;;  %v498_v30 = vrot.slane %v3487_v55, 1 }
 0x368   :  { %v376_v53 = vpop.f32.mrf.mxu3 }
 0x369   :  { %v3489_v56 = vrot.slane %v376_v53, 1  ;;  %v382_v24 = vmul.f32 %v380_v50, %v376_v53 }
 0x36b   :  { %v3500_v61 = vsel %vm385_vm2, %v386_v47, %v3489_v56  ;;  %v402_v62 = vrot.slane %v3489_v56, 6  ;;  %v422_v63 = vrot.slane %v3489_v56, 5  ;;  %v442_v0 = vrot.slane %v3489_v56, 4 }
 0x36c   :  { %v400_v2 = vrot.slane %v3500_v61, 6  ;;  %v420_v3 = vrot.slane %v3500_v61, 5  ;;  %v440_v4 = vrot.slane %v3500_v61, 4  ;;  %v460_v13 = vrot.slane %v3500_v61, 3 }
 0x36d   :  { %v462_v14 = vrot.slane %v3489_v56, 3  ;;  %v480_v25 = vrot.slane %v3500_v61, 2  ;;  %v482_v28 = vrot.slane %v3489_v56, 2  ;;  %v499_v29 = vrot.slane %v3500_v61, 1 }
 0x36e   :  { %v421_v11 = vsel %vm418_vm5, %v419_v1, %v420_v3  ;;  %v423_v12 = vsel %vm418_vm5, %v420_v3, %v422_v63  ;;  %v401_v15 = vsel %vm398_vm4, %v399_v7, %v400_v2  ;;  %v403_v16 = vsel %vm398_vm4, %v400_v2, %v402_v62 }
 0x36f   :  { %v441_v17 = vsel %vm438_vm6, %v439_v6, %v440_v4  ;;  %v443_v18 = vsel %vm438_vm6, %v440_v4, %v442_v0  ;;  %v426_v26 = vsel %vm417_vm3, %v421_v11, 0.0  ;;  %v427_v27 = vsel %vm417_vm3, %v423_v12, 0.0 }
 0x370   :  { %v446_v31 = vsel %vm437_vm7, %v441_v17, 0.0  ;;  %v447_v33 = vsel %vm437_vm7, %v443_v18, 0.0  ;;  %v406_v34 = vsel %vm396_vm9, %v401_v15, 0.0  ;;  %v407_v36 = vsel %vm396_vm9, %v403_v16, 0.0 }
 0x371   :  { %v461_v38 = vsel %vm458_vm8, %v459_v22, %v460_v13  ;;  %v463_v39 = vsel %vm458_vm8, %v460_v13, %v462_v14  ;;  %v409_v40 = vmul.f32 %v408_v54, %v406_v34  ;;  %v410_v41 = vmul.f32 %v408_v54, %v407_v36  ;;  %v3591_v36 = vld [vmem:[%s4260_s19] ss:$0 sm:$0xff] }
 0x372   :  { %v429_v35 = vmul.f32 %v428_v57, %v426_v26  ;;  %v430_v44 = vmul.f32 %v428_v57, %v427_v27  ;;  %v501_v47 = vrot.slane %v3489_v56, 1  ;;  %v481_v53 = vsel %vm4290_vm10, %v479_v23, %v480_v25 }
 0x373   :  { %v411_v50 = vadd.f32 %v409_v40, %v381_v5  ;;  %v412_v52 = vadd.f32 %v410_v41, %v382_v24  ;;  %v483_v60 = vsel %vm4290_vm10, %v480_v25, %v482_v28  ;;  %v449_v62 = vmul.f32 %v448_v58, %v446_v31 }
 0x374   :  { %v450_v63 = vmul.f32 %v448_v58, %v447_v33  ;;  %v466_v0 = vsel %vm4291_vm11, %v461_v38, 0.0  ;;  %v467_v54 = vsel %vm4291_vm11, %v463_v39, 0.0  ;;  %v500_v56 = vsel %vm385_vm2, %v498_v30, %v499_v29  ;;  %v647_v38 = vpop.f32.mrf.mxu1 }
 0x375   :  { %v431_v1 = vadd.f32 %v429_v35, %v411_v50  ;;  %v432_v57 = vadd.f32 %v430_v44, %v412_v52  ;;  %v502_v2 = vsel %vm385_vm2, %v499_v29, %v501_v47  ;;  %v486_v3 = vsel %vm4289_vm12, %v481_v53, 0.0  ;;  %v3060_v47 = vld [vmem:[%s4256_s15] ss:$0 sm:$0xff] }
 0x376   :  { %v487_v58 = vsel %vm4289_vm12, %v483_v60, 0.0  ;;  %v507_v4 = vperm.slane %v3470_v46, 6  ;;  %v469_v5 = vmul.f32 %v468_v59, %v466_v0  ;;  %v470_v6 = vmul.f32 %v468_v59, %v467_v54 }
 0x377   :  { %v451_v7 = vadd.f32 %v449_v62, %v431_v1  ;;  %v452_v11 = vadd.f32 %v450_v63, %v432_v57  ;;  %v519_v12 = vperm.slane %v3470_v46, 7  ;;  %v505_v13 = vsel %vm4278_vm13, %v500_v56, 0.0 }
 0x378   :  { %v506_v14 = vsel %vm4278_vm13, %v502_v2, 0.0  ;;  %v489_v17 = vmul.f32 %v488_v8, %v486_v3  ;;  %v490_v18 = vmul.f32 %v488_v8, %v487_v58  ;;  %v517_v22 = vsel %vm4277_vm14, %v3487_v55, 0.0  ;;  %v2962_v55 = vld [vmem:[%s4257_s16 + $0x8] sm:$0xff]  ;;  %v3062_v3 = vld [vmem:[%s4319_s0] ss:$0 sm:$0xff] }
 0x379   :  { %v471_v15 = vadd.f32 %v469_v5, %v451_v7  ;;  %v472_v16 = vadd.f32 %v470_v6, %v452_v11  ;;  %v518_v59 = vsel %vm4277_vm14, %v3500_v61, 0.0  ;;  %v508_v24 = vmul.f32 %v507_v4, %v505_v13  ;;  %596 = vmatpush.bf16.msrb.mxu2 %v2962_v55  ;;  %v2961_v61 = vld [vmem:[%s4257_s16] sm:$0xff]  ;;  %v92_v8 = vld [vmem:[%s4318_s7 + $0x8] sm:$0x3] }
 0x37a   :  { %v509_v25 = vmul.f32 %v507_v4, %v506_v14  ;;  %v520_v26 = vmul.f32 %v519_v12, %v517_v22  ;;  %v521_v29 = vmul.f32 %v519_v12, %v518_v59  ;;  %v617_v39 = vunpack.c.l.b16 %v92_v8 }
 0x37b   :  { %v491_v23 = vadd.f32 %v489_v17, %v471_v15  ;;  %v492_v46 = vadd.f32 %v490_v18, %v472_v16  ;;  %v3594_v40 = vadd.f32 %v3591_v36, %v647_v38  ;;  %v3667_v12 = vand.u32 127, %v105_v32 }
 0x37c   :  { %v3596_v41 = vpack.c.b16 %v617_v39, %v617_v39  ;;  %v649_v30 = vpop.f32.mrf.mxu1  ;;  %v109_v13 = vstv %s108_s1  ;;  %v3207_v14 = vmov 0.0   ;;  %vm4285_vm13 = vcmask 80896   ;;  %s4292_s1 = smov 24  }
 0x37d   :  { %v510_v27 = vadd.f32 %v508_v24, %v491_v23  ;;  %v511_v28 = vadd.f32 %v509_v25, %v492_v46  ;;  %597 = vmatpush.bf16.msrb.mxu2 %v2961_v61  ;;  %669 = vrot.lane.b32.xlu1 %v3594_v40, %s4283_s30  ;;  %v3603_v35 = vadd.f32 %v3591_v36, %v649_v30 }
 0x37e   :  { %2706 = vmatmul.msk.bf16.gmra.mxu1 %vm147_vm0, %v3596_v41  ;;  %vm110_vm14 = vcmp.ge.s32.totalorder %v3667_v12, %v109_v13 }
 0x37f   :  { %v522_v31 = vadd.f32 %v520_v26, %v510_v27  ;;  %v523_v33 = vadd.f32 %v521_v29, %v511_v28  ;;  %671 = vrot.lane.b32.xlu2 %v3603_v35, %s4283_s30  ;;  %2707 = vmatpush.xpose.msk.msrb.mxu3 %vm4288_vm15, %v3603_v35  ;;  %v3672_v15 = vsel %vm110_vm14, -1e+30, %v3207_v14 }
 0x381   :  { %v524_v34 = vpack.c.bf16 %v523_v33, %v522_v31 }
 0x383   :  { %2683 = vmatmul.msk.bf16.vlgmr.msrb.gmra.mxu0 %vm147_vm0, %v524_v34  ;;  %2708 = vmatpush.xpose.msk.msrb.mxu3 %vm4288_vm15, %v3594_v40 }
 0x385   :  { %673 = vrot.lane.b32.xlu1 %v3594_v40, %s4296_s3 }
 0x387   :  { %675 = vrot.lane.b32.xlu2 %v3603_v35, %s4296_s3 }
 0x38d   :  { %665 = vrot.lane.b32.xlu1 %v3594_v40, %s4281_s27 }
 0x38f   :  { %667 = vrot.lane.b32.xlu2 %v3603_v35, %s4281_s27 }
 0x3ef   :  { %v3635_v57 = vpop.permute.xlu1 %669 }
 0x3f7   :  { %v3645_v2 = vpop.permute.xlu1 %673 }
 0x3fb   :  { %v3633_v1 = vpop.f32.mrf.mxu1 }
 0x3fc   :  { %v653_v38 = vadd.f32 %v3591_v36, %v3633_v1 }
 0x3ff   :  { %v666_v6 = vpop.permute.xlu1 %665 }
 0x400   :  { %v557_v44 = vpop.f32.mrf.mxu0 }
 0x401   :  { %v558_v50 = vadd.f32 %v3060_v47, %v557_v44 }
 0x403   :  { %v562_v53 = vadd.f32 %v558_v50, %v3425_v20  ;;  %v654_v20 = vpop.f32.mrf.mxu1 }
 0x405   :  { %v3625_v63 = vmul.f32 %v562_v53, %v3417_v9 }
 0x408   :  { %v559_v52 = vpop.f32.mrf.mxu0 }
 0x409   :  { %v560_v60 = vadd.f32 %v3060_v47, %v559_v52 }
 0x40b   :  { %v563_v62 = vadd.f32 %v560_v60, %v3428_v21  ;;  %v3637_v21 = vpop.permute.xlu2 %671 }
 0x40c   :  { %2713 = vmatpush.xpose.msk.msra.mxu2 %vm4288_vm15, %v3637_v21 }
 0x40d   :  { %v3628_v0 = vmul.f32 %v563_v62, %v3422_v19 }
 0x40f   :  { %v566_v54 = vpack.c.bf16 %v3628_v0, %v3625_v63 }
 0x410   :  { %2714 = vmatpush.xpose.msk.msra.mxu2 %vm4288_vm15, %v3635_v57 }
 0x411   :  { %2692 = vmatmul.msk.bf16.vlgmr.msrb.gmra.mxu2 %vm147_vm0, %v566_v54 }
 0x413   :  { %v3643_v56 = vpop.permute.xlu2 %675 }
 0x414   :  { %2716 = vmatpush.xpose.msk.msra.mxu3 %vm4288_vm15, %v3643_v56 }
 0x418   :  { %2717 = vmatpush.xpose.msk.msra.mxu3 %vm4288_vm15, %v3645_v2 }
 0x41b   :  { %v3656_v5 = vpop.permute.xlu2 %667 }
 0x41c   :  { %2710 = vmatpush.xpose.msk.msra.mxu0 %vm4288_vm15, %v3656_v5 }
 0x420   :  { %2711 = vmatpush.xpose.msk.msra.mxu0 %vm4288_vm15, %v666_v6 }
 0x494   :  { %v599_v58 = vpop.f32.mrf.mxu2 }
 0x495   :  { %v600_v4 = vadd.f32 %v3062_v3, %v599_v58 }
 0x497   :  { %659 = vrot.lane.b32.xlu0 %v600_v4, %s4283_s30  ;;  %2709 = vmatmul.msk.f32.vlgmr.msrb.gmra.mxu3 %vm4288_vm15, %v600_v4 }
 0x49c   :  { %v601_v59 = vpop.f32.mrf.mxu2 }
 0x49d   :  { %v602_v39 = vadd.f32 %v3062_v3, %v601_v59 }
 0x49f   :  { %661 = vrot.lane.b32.xlu0 %v600_v4, %s4296_s3 }
 0x4a7   :  { %657 = vrot.lane.b32.xlu0 %v600_v4, %s4281_s27  ;;  %v3005_v4 = vpack.i.bf16 %v3594_v40, %v3635_v57 }
 0x4af   :  { %889 = vrot.lane.b32.xlu0 %v3637_v21, %s4279_s6 }
 0x509   :  { %v660_v7 = vpop.permute.xlu0 %659 }
 0x50a   :  { %2715 = vmatmul.msk.f32.vlgmr.msra.gmra.mxu2 %vm4288_vm15, %v660_v7 }
 0x511   :  { %v662_v11 = vpop.permute.xlu0 %661 }
 0x512   :  { %2718 = vmatmul.msk.f32.vlgmr.msra.gmra.mxu3 %vm4288_vm15, %v662_v11  ;;  %v3717_v11 = vrot.slane %v653_v38, 2 }
 0x519   :  { %v658_v16 = vpop.permute.xlu0 %657 }
 0x51a   :  { %v701_v17 = vpop.f32.mrf.mxu3  ;;  %2712 = vmatmul.msk.f32.vlgmr.msra.gmra.mxu0 %vm4288_vm15, %v658_v16  ;;  %v978_v16 = vrot.slane %v3603_v35, 2 }
 0x51b   :  { %v702_v18 = vadd.f32 %v701_v17, %v3672_v15 }
 0x51c   :  { %v3725_v40 = vsel %vm4290_vm10, %v978_v16, %v3717_v11 }
 0x51d   :  { %v783_v22 = vsel %vm4285_vm13, %v702_v18, -inf }
 0x51e   :  { %784 = vmax.xlane.f32.xlu1 %v783_v22 }
 0x521   :  { %v890_v32 = vpop.permute.xlu0 %889 }
 0x522   :  { %2723 = vmatpush.msk.msrb.mxu3 %vm398_vm4, %v890_v32 }
 0x58d   :  { %v753_v31 = vpop.f32.mrf.mxu2 }
 0x58e   :  { %v754_v34 = vadd.f32 %v753_v31, %v3672_v15 }
 0x590   :  { %v789_v55 = vsel %vm4285_vm13, %v754_v34, -inf }
 0x591   :  { %v785_v46 = vpop.xlane.xlu1 %784 }
 0x592   :  { %v795_v28 = vsub.f32 %v702_v18, %v785_v46 }
 0x594   :  { %v799_v33 = vmul.f32 1.442695, %v795_v28 }
 0x595   :  { %v779_v23 = vpop.f32.mrf.mxu3 }
 0x596   :  { %v3679_v24 = vadd.f32 %v779_v23, %v3672_v15  ;;  %3083 = vpow2.f32 %v799_v33 }
 0x597   :  { %v727_v25 = vpop.f32.mrf.mxu0 }
 0x598   :  { %v728_v26 = vadd.f32 %v727_v25, %v3672_v15  ;;  %v792_v27 = vsel %vm4285_vm13, %v3679_v24, -inf }
 0x599   :  { %793 = vmax.xlane.f32.xlu0 %v792_v27 }
 0x59a   :  { %v786_v29 = vsel %vm4285_vm13, %v728_v26, -inf }
 0x59b   :  { %787 = vmax.xlane.f32.xlu2 %v786_v29 }
 0x59c   :  { %v3687_v61 = vpop.eup %3083 }
 0x59d   :  { %v807_v8 = vsel %vm4285_vm13, %v3687_v61, 0.0 }
 0x5a3   :  { %790 = vmax.xlane.f32.xlu2 %v789_v55 }
 0x5ab   :  { %808 = vadd.xlane.f32.xlu2 %v807_v8 }
 0x5ad   :  { %829 = vrot.lane.b32.xlu0 %v3603_v35, %s4279_s6 }
 0x5b5   :  { %976 = vrot.lane.b32.xlu0 %v653_v38, %s4296_s3 }
 0x5bd   :  { %919 = vrot.lane.b32.xlu0 %v3643_v56, %s4279_s6 }
 0x5c3   :  { %972 = vrot.lane.b32.xlu2 %v653_v38, %s4281_s27 }
 0x5c5   :  { %974 = vrot.lane.b32.xlu0 %v653_v38, %s4283_s30 }
 0x5cb   :  { %965 = vrot.lane.b32.xlu2 %v602_v39, %s4281_s27 }
 0x5cd   :  { %967 = vrot.lane.b32.xlu0 %v602_v39, %s4283_s30 }
 0x5d3   :  { %917 = vrot.lane.b32.xlu2 %v3645_v2, %s4279_s6 }
 0x5d5   :  { %859 = vrot.lane.b32.xlu0 %v3656_v5, %s4279_s6 }
 0x5db   :  { %969 = vrot.lane.b32.xlu2 %v602_v39, %s4296_s3 }
 0x5dd   :  { %857 = vrot.lane.b32.xlu0 %v666_v6, %s4279_s6 }
 0x60c   :  { %v794_v50 = vpop.xlane.xlu0 %793 }
 0x60d   :  { %v798_v17 = vsub.f32 %v3679_v24, %v794_v50 }
 0x60e   :  { %v788_v36 = vpop.xlane.xlu2 %787 }
 0x60f   :  { %v796_v30 = vsub.f32 %v728_v26, %v788_v36  ;;  %v805_v57 = vmul.f32 1.442695, %v798_v17 }
 0x611   :  { %v801_v44 = vmul.f32 1.442695, %v796_v30 }
 0x613   :  { %3085 = vpow2.f32 %v801_v44  ;;  %v1036_v44 = vrot.slane %v3637_v21, 2 }
 0x616   :  { %v791_v47 = vpop.xlane.xlu2 %790 }
 0x617   :  { %v797_v52 = vsub.f32 %v754_v34, %v791_v47  ;;  %v1065_v47 = vrot.slane %v3643_v56, 2 }
 0x619   :  { %v3086_v53 = vpop.eup %3085  ;;  %v803_v60 = vmul.f32 1.442695, %v797_v52 }
 0x61a   :  { %v810_v62 = vsel %vm4285_vm13, %v3086_v53, 0.0 }
 0x61b   :  { %3087 = vpow2.f32 %v803_v60  ;;  %811 = vadd.xlane.f32.xlu2 %v810_v62  ;;  %v114_v60 = vstv %s2622_s8 }
 0x61c   :  { %3089 = vpow2.f32 %v805_v57  ;;  %vm115_vm14 = vcmp.ge.s32.totalorder %v3667_v12, %v114_v60 }
 0x61d   :  { %v3760_v62 = vsel %vm115_vm14, -1e+30, %v3207_v14  ;;  %vm4287_vm14 = vcmask 130048  }
 0x61e   :  { %v809_v18 = vpop.xlane.xlu2 %808 }
 0x61f   :  { %v830_v54 = vpop.permute.xlu0 %829 }
 0x620   :  { %2719 = vmatpush.msk.msrb.mxu0 %vm398_vm4, %v830_v54 }
 0x621   :  { %v3088_v1 = vpop.eup %3087 }
 0x622   :  { %v813_v20 = vsel %vm4285_vm13, %v3088_v1, 0.0  ;;  %v3090_v22 = vpop.eup %3089 }
 0x623   :  { %814 = vadd.xlane.f32.xlu1 %v813_v20  ;;  %v816_v32 = vsel %vm4285_vm13, %v3090_v22, 0.0 }
 0x626   :  { %v973_v35 = vpop.permute.xlu2 %972 }
 0x627   :  { %v977_v2 = vpop.permute.xlu0 %976  ;;  %v1008_v38 = vrot.slane %v973_v35, 2 }
 0x628   :  { %v1066_v30 = vrot.slane %v977_v2, 2 }
 0x62e   :  { %v966_v59 = vpop.permute.xlu2 %965 }
 0x62f   :  { %v920_v3 = vpop.permute.xlu0 %919 }
 0x636   :  { %v918_v23 = vpop.permute.xlu2 %917 }
 0x637   :  { %v975_v58 = vpop.permute.xlu0 %974 }
 0x638   :  { %v1037_v36 = vrot.slane %v975_v58, 2 }
 0x63a   :  { %v1038_v50 = vsel %vm4290_vm10, %v1036_v44, %v1037_v36 }
 0x63c   :  { %3006 = vrot.lane.b32.xlu1 %v3005_v4, %s4279_s6 }
 0x63e   :  { %v970_v46 = vpop.permute.xlu2 %969 }
 0x63f   :  { %v3714_v6 = vpop.permute.xlu0 %967 }
 0x647   :  { %v860_v7 = vpop.permute.xlu0 %859 }
 0x648   :  { %2721 = vmatpush.msk.msrb.mxu2 %vm398_vm4, %v860_v7 }
 0x64f   :  { %v858_v13 = vpop.permute.xlu0 %857 }
 0x650   :  { %882 = vmatpush.msrb.mxu2 %v858_v13 }
 0x652   :  { %2727 = vmatpush.xpose.msk.msra.mxu2 %vm4288_vm15, %v3717_v11 }
 0x656   :  { %2728 = vmatpush.xpose.msk.msra.mxu2 %vm4288_vm15, %v3725_v40 }
 0x666   :  { %817 = vadd.xlane.f32.xlu1 %v816_v32 }
 0x68e   :  { %v812_v25 = vpop.xlane.xlu2 %811 }
 0x68f   :  { %3091 = vrcp.f32 %v812_v25 }
 0x690   :  { %3093 = vrcp.f32 %v809_v18 }
 0x695   :  { %v3092_v24 = vpop.eup %3091 }
 0x696   :  { %v824_v26 = vmul.f32 %v3092_v24, %v3086_v53  ;;  %v815_v27 = vpop.xlane.xlu1 %814  ;;  %v3094_v28 = vpop.eup %3093 }
 0x697   :  { %3095 = vrcp.f32 %v815_v27  ;;  %v823_v55 = vmul.f32 %v3094_v28, %v3687_v61 }
 0x698   :  { %2722 = vmatmul.msk.f32.vlgmr.msrb.gmra.mxu2 %vm4285_vm13, %v824_v26 }
 0x69d   :  { %v3096_v29 = vpop.eup %3095 }
 0x69e   :  { %v825_v8 = vmul.f32 %v3096_v29, %v3088_v1 }
 0x6a0   :  { %2729 = vmatmul.msk.f32.vlgmr.msra.gmra.mxu2 %vm4288_vm15, %v602_v39  ;;  %v1007_v39 = vrot.slane %v3656_v5, 2  ;;  %v1067_v5 = vsel %vm4290_vm10, %v1065_v47, %v1066_v30 }
 0x6a1   :  { %v3010_v27 = vpack.i.bf16 %v1067_v5, %v1038_v50 }
 0x6a2   :  { %v3740_v61 = vsel %vm4290_vm10, %v1007_v39, %v1008_v38 }
 0x6ae   :  { %v3007_v31 = vpop.permute.xlu1 %3006 }
 0x6af   :  { %v3009_v33 = vunpack.i.h.bf16 %v3007_v31  ;;  %v3008_v34 = vunpack.i.l.bf16 %v3007_v31 }
 0x6b1   :  { %852 = vmatpush.msrb.mxu0 %v3009_v33  ;;  %912 = vmatpush.msrb.mxu3 %v3008_v34 }
 0x6b2   :  { %2720 = vmatmul.msk.f32.vlgmr.msrb.gmra.mxu0 %vm4285_vm13, %v823_v55  ;;  %2724 = vmatmul.msk.f32.vlgmr.msrb.gmra.mxu3 %vm4285_vm13, %v825_v8 }
 0x6b3   :  { %2725 = vmatpush.msk.msra.mxu0 %vm398_vm4, %v920_v3  ;;  %2730 = vmatpush.xpose.msk.msra.mxu3 %vm4288_vm15, %v1008_v38 }
 0x6b5   :  { %942 = vmatpush.msra.mxu0 %v918_v23 }
 0x6b7   :  { %2733 = vmatpush.xpose.msk.msrb.mxu0 %vm4288_vm15, %v1037_v36  ;;  %2731 = vmatpush.xpose.msk.msra.mxu3 %vm4288_vm15, %v3740_v61 }
 0x6ba   :  { %2732 = vmatmul.msk.f32.vlgmr.msra.gmra.mxu3 %vm4288_vm15, %v966_v59 }
 0x6bb   :  { %2736 = vmatpush.xpose.msk.msrb.mxu3 %vm4288_vm15, %v1066_v30  ;;  %2734 = vmatpush.xpose.msk.msrb.mxu0 %vm4288_vm15, %v1038_v50 }
 0x6bf   :  { %2737 = vmatpush.xpose.msk.msrb.mxu3 %vm4288_vm15, %v1067_v5 }
 0x6c2   :  { %2738 = vmatmul.msk.f32.vlgmr.msrb.gmra.mxu3 %vm4288_vm15, %v970_v46 }
 0x6d9   :  { %v818_v21 = vpop.xlane.xlu1 %817 }
 0x6da   :  { %3097 = vrcp.f32 %v818_v21 }
 0x6e0   :  { %v3098_v52 = vpop.eup %3097 }
 0x6e1   :  { %v826_v53 = vmul.f32 %v3098_v52, %v3090_v22 }
 0x6e3   :  { %2726 = vmatmul.msk.f32.vlgmr.msra.gmra.mxu0 %vm4285_vm13, %v826_v53 }
 0x6eb   :  { %2735 = vmatmul.msk.f32.vlgmr.msrb.gmra.mxu0 %vm4288_vm15, %v3714_v6 }
 0x71b   :  { %v3756_v56 = vpop.f32.mrf.mxu2 }
 0x723   :  { %v1004_v54 = vpop.f32.mrf.mxu2 }
 0x724   :  { %v1005_v1 = vadd.f32 %v1004_v54, %v3760_v62 }
 0x726   :  { %v1094_v20 = vsel %vm4285_vm13, %v1005_v1, -inf }
 0x727   :  { %1095 = vmax.xlane.f32.xlu1 %v1094_v20 }
 0x72f   :  { %v3770_v7 = vpop.f32.mrf.mxu0 }
 0x735   :  { %v3764_v2 = vpop.f32.mrf.mxu3 }
 0x73d   :  { %v1033_v3 = vpop.f32.mrf.mxu3 }
 0x73e   :  { %v1034_v58 = vadd.f32 %v1033_v3, %v3760_v62 }
 0x740   :  { %v1097_v4 = vsel %vm4285_vm13, %v1034_v58, -inf }
 0x741   :  { %1098 = vmax.xlane.f32.xlu1 %v1097_v4 }
 0x745   :  { %v1091_v6 = vpop.f32.mrf.mxu3 }
 0x746   :  { %v1092_v12 = vadd.f32 %v1091_v6, %v3760_v62 }
 0x748   :  { %v1103_v14 = vsel %vm4285_vm13, %v1092_v12, -inf }
 0x749   :  { %1104 = vmax.xlane.f32.xlu1 %v1103_v14 }
 0x760   :  { %v3772_v13 = vpop.f32.mrf.mxu0 }
 0x762   :  { %1170 = vrot.lane.b32.xlu1 %v1008_v38, %s4279_s6 }
 0x768   :  { %v1062_v16 = vpop.f32.mrf.mxu0 }
 0x769   :  { %v1063_v17 = vadd.f32 %v1062_v16, %v3760_v62 }
 0x76b   :  { %v1100_v57 = vsel %vm4285_vm13, %v1063_v17, -inf }
 0x76c   :  { %1101 = vmax.xlane.f32.xlu0 %v1100_v57 }
 0x780   :  { %1200 = vrot.lane.b32.xlu0 %v1037_v36, %s4279_s6 }
 0x788   :  { %1140 = vrot.lane.b32.xlu0 %v3717_v11, %s4279_s6 }
 0x79a   :  { %v1096_v18 = vpop.xlane.xlu1 %1095 }
 0x79b   :  { %v1106_v39 = vsub.f32 %v1005_v1, %v1096_v18 }
 0x79d   :  { %v1110_v36 = vmul.f32 1.442695, %v1106_v39 }
 0x7b4   :  { %v1099_v22 = vpop.xlane.xlu1 %1098 }
 0x7b5   :  { %v1107_v32 = vsub.f32 %v1034_v58, %v1099_v22 }
 0x7b7   :  { %v1112_v35 = vmul.f32 1.442695, %v1107_v32 }
 0x7b9   :  { %3099 = vpow2.f32 %v1112_v35  ;;  %v2966_v35 = vld [vmem:[%s4261_s20 + $0x8] sm:$0xff] }
 0x7bc   :  { %v1105_v46 = vpop.xlane.xlu1 %1104 }
 0x7bd   :  { %v1109_v28 = vsub.f32 %v1092_v12, %v1105_v46 }
 0x7bf   :  { %v3100_v59 = vpop.eup %3099  ;;  %v1116_v29 = vmul.f32 1.442695, %v1109_v28 }
 0x7c0   :  { %v1121_v23 = vsel %vm4285_vm13, %v3100_v59, 0.0 }
 0x7c1   :  { %1122 = vadd.xlane.f32.xlu1 %v1121_v23 }
 0x7d4   :  { %v1171_v25 = vpop.permute.xlu1 %1170 }
 0x7d5   :  { %2741 = vmatpush.msk.msra.mxu3 %vm398_vm4, %v1171_v25 }
 0x7da   :  { %1230 = vrot.lane.b32.xlu1 %v1066_v30, %s4279_s6 }
 0x7df   :  { %v1102_v24 = vpop.xlane.xlu0 %1101 }
 0x7e0   :  { %v1108_v26 = vsub.f32 %v1063_v17, %v1102_v24 }
 0x7e2   :  { %v1114_v11 = vmul.f32 1.442695, %v1108_v26  ;;  %3011 = vrot.lane.b32.xlu1 %v3010_v27, %s4279_s6 }
 0x7e4   :  { %3101 = vpow2.f32 %v1114_v11 }
 0x7e5   :  { %3103 = vpow2.f32 %v1116_v29 }
 0x7e6   :  { %3105 = vpow2.f32 %v1110_v36 }
 0x7ea   :  { %v3102_v31 = vpop.eup %3101  ;;  %1138 = vrot.lane.b32.xlu1 %v3725_v40, %s4279_s6 }
 0x7eb   :  { %v1124_v33 = vsel %vm4285_vm13, %v3102_v31, 0.0  ;;  %v3104_v34 = vpop.eup %3103 }
 0x7ec   :  { %1125 = vadd.xlane.f32.xlu2 %v1124_v33  ;;  %v1127_v8 = vsel %vm4285_vm13, %v3104_v34, 0.0  ;;  %v3106_v40 = vpop.eup %3105 }
 0x7ed   :  { %v1118_v30 = vsel %vm4285_vm13, %v3106_v40, 0.0 }
 0x7f2   :  { %v1201_v55 = vpop.permute.xlu0 %1200 }
 0x7f3   :  { %2743 = vmatpush.msk.msra.mxu0 %vm398_vm4, %v1201_v55 }
 0x7f4   :  { %1128 = vadd.xlane.f32.xlu2 %v1127_v8 }
 0x7fa   :  { %v1141_v38 = vpop.permute.xlu0 %1140 }
 0x7fb   :  { %2739 = vmatpush.msk.msrb.mxu2 %vm398_vm4, %v1141_v38 }
 0x80c   :  { %1168 = vrot.lane.b32.xlu2 %v3740_v61, %s4279_s6 }
 0x834   :  { %v1123_v44 = vpop.xlane.xlu1 %1122 }
 0x835   :  { %1119 = vadd.xlane.f32.xlu2 %v1118_v30 }
 0x84c   :  { %v1231_v47 = vpop.permute.xlu1 %1230 }
 0x84d   :  { %2745 = vmatpush.msk.msra.mxu1 %vm398_vm4, %v1231_v47 }
 0x854   :  { %v3012_v50 = vpop.permute.xlu1 %3011 }
 0x855   :  { %v3014_v5 = vunpack.i.h.bf16 %v3012_v50  ;;  %v3013_v21 = vunpack.i.l.bf16 %v3012_v50 }
 0x857   :  { %1223 = vmatpush.msra.mxu0 %v3013_v21  ;;  %1253 = vmatpush.msra.mxu1 %v3014_v5 }
 0x85c   :  { %v1139_v52 = vpop.permute.xlu1 %1138 }
 0x85d   :  { %1163 = vmatpush.msrb.mxu2 %v1139_v52 }
 0x85f   :  { %v1126_v53 = vpop.xlane.xlu2 %1125  ;;  %1303 = vmatpush.bf16.msra.mxu2 %v2966_v35 }
 0x860   :  { %3107 = vrcp.f32 %v1126_v53 }
 0x861   :  { %3109 = vrcp.f32 %v1123_v44 }
 0x866   :  { %v3108_v61 = vpop.eup %3107 }
 0x867   :  { %v1136_v60 = vmul.f32 %v3108_v61, %v3102_v31  ;;  %v1129_v54 = vpop.xlane.xlu2 %1128  ;;  %v3110_v1 = vpop.eup %3109 }
 0x868   :  { %3111 = vrcp.f32 %v1129_v54  ;;  %v1135_v3 = vmul.f32 %v3110_v1, %v3100_v59 }
 0x869   :  { %2744 = vmatmul.msk.f32.vlgmr.msra.gmra.mxu0 %vm4285_vm13, %v1136_v60 }
 0x86e   :  { %v3112_v20 = vpop.eup %3111 }
 0x86f   :  { %v1137_v58 = vmul.f32 %v3112_v20, %v3104_v34  ;;  %v1169_v4 = vpop.permute.xlu2 %1168 }
 0x870   :  { %1193 = vmatpush.msra.mxu3 %v1169_v4  ;;  %v2968_v4 = vld [vmem:[%s4310_s26 + $0x18] sm:$0xff] }
 0x871   :  { %2742 = vmatmul.msk.f32.vlgmr.msra.gmra.mxu3 %vm4285_vm13, %v1135_v3  ;;  %2746 = vmatmul.msk.f32.vlgmr.msra.gmra.mxu1 %vm4285_vm13, %v1137_v58 }
 0x872   :  { %1403 = vmatpush.bf16.msrb.mxu3 %v2968_v4 }
 0x8a8   :  { %v1120_v6 = vpop.xlane.xlu2 %1119 }
 0x8a9   :  { %3113 = vrcp.f32 %v1120_v6  ;;  %v2967_v6 = vld [vmem:[%s4310_s26 + $0x10] sm:$0xff]  ;;  %s4331_s26 = smov 112  }
 0x8aa   :  { %1404 = vmatpush.bf16.msrb.mxu3 %v2967_v6 }
 0x8af   :  { %v3114_v12 = vpop.eup %3113 }
 0x8b0   :  { %v1134_v14 = vmul.f32 %v3114_v12, %v3106_v40 }
 0x8b2   :  { %2740 = vmatmul.msk.f32.vlgmr.msrb.gmra.mxu2 %vm4285_vm13, %v1134_v14  ;;  %vm4286_vm13 = vcmask 195584  }
 0x8e6   :  { %v1225_v16 = vpop.f32.mrf.mxu0 }
 0x8e7   :  { %v3015_v17 = vpack.i.bf16 %v1225_v16, %v3764_v2  ;;  %v2965_v2 = vld [vmem:[%s4261_s20] sm:$0xff] }
 0x8e8   :  { %1304 = vmatpush.bf16.msra.mxu2 %v2965_v2 }
 0x8e9   :  { %3016 = vrot.lane.b32.xlu1 %v3015_v17, %s4293_s28  ;;  %s4384_s28 = smov 16  }
 0x8ee   :  { %v1255_v22 = vpop.f32.mrf.mxu1 }
 0x8ef   :  { %v3025_v32 = vpack.i.bf16 %v1255_v22, %v3772_v13 }
 0x8f4   :  { %v1195_v57 = vpop.f32.mrf.mxu3 }
 0x8f5   :  { %v3020_v18 = vpack.i.bf16 %v1195_v57, %v3756_v56 }
 0x8f7   :  { %3021 = vrot.lane.b32.xlu0 %v3020_v18, %s4294_s17 }
 0x8ff   :  { %3026 = vrot.lane.b32.xlu0 %v3025_v32, %s4292_s1  ;;  %s3211_s1 = smov [#allocation4]  }
 0x935   :  { %v1165_v25 = vpop.f32.mrf.mxu2 }
 0x95b   :  { %v3017_v46 = vpop.permute.xlu1 %3016 }
 0x95c   :  { %v3019_v26 = vunpack.i.h.bf16 %v3017_v46  ;;  %v3018_v27 = vunpack.i.l.bf16 %v3017_v46 }
 0x969   :  { %v3022_v56 = vpop.permute.xlu0 %3021 }
 0x96a   :  { %v3024_v59 = vunpack.i.h.bf16 %v3022_v56  ;;  %v3023_v23 = vunpack.i.l.bf16 %v3022_v56 }
 0x96c   :  { %v959_v13 = vsel %vm4288_vm15, %v3770_v7, %v3023_v23  ;;  %v1270_v24 = vsel %vm4288_vm15, %v1165_v25, %v3024_v59  ;;  %v3063_v7 = vld [vmem:[%s4262_s21] ss:$0 sm:$0xff] }
 0x96d   :  { %v961_v31 = vsel %vm4287_vm14, %v959_v13, %v3018_v27  ;;  %v1271_v33 = vsel %vm4287_vm14, %v1270_v24, %v3019_v26  ;;  %v3064_v25 = vld [vmem:[%s4263_s22] ss:$0 sm:$0xff] }
 0x96e   :  { %v3065_v27 = vld [vmem:[%s4264_s23] ss:$0 sm:$0xff] }
 0x971   :  { %v3027_v28 = vpop.permute.xlu0 %3026 }
 0x972   :  { %v3029_v11 = vunpack.i.h.bf16 %v3027_v28  ;;  %v3028_v29 = vunpack.i.l.bf16 %v3027_v28 }
 0x974   :  { %v963_v34 = vsel %vm4286_vm13, %v961_v31, %v3028_v29  ;;  %v1272_v55 = vsel %vm4286_vm13, %v1271_v33, %v3029_v11 }
 0x975   :  { %v1273_v8 = vpack.c.bf16 %v1272_v55, %v963_v34 }
 0x977   :  { %2755 = vmatmul.msk.bf16.vlgmr.msra.gmra.mxu2 %vm147_vm0, %v1273_v8 }
 0x9fa   :  { %v1306_v38 = vpop.f32.mrf.mxu2 }
 0x9fb   :  { %v1307_v39 = vadd.f32 %v3063_v7, %v1306_v38  ;;  %v2972_v38 = vld [vmem:[%s4312_s29 + $0x38] sm:$0xff] }
 0x9fc   :  { %1459 = vmatpush.bf16.msrb.mxu0 %v2972_v38 }
 0x9fd   :  { %v1311_v36 = vadd.f32 %v1307_v39, %v3625_v63  ;;  %v2971_v39 = vld [vmem:[%s4312_s29 + $0x30] sm:$0xff] }
 0x9ff   :  { %v1315_v40 = vsel %vm147_vm0, %v1311_v36, 0.0 }
 0xa00   :  { %1316 = vadd.xlane.f32.xlu1 %v1315_v40  ;;  %1460 = vmatpush.bf16.msrb.mxu0 %v2971_v39  ;;  %v2969_v40 = vld [vmem:[%s4312_s29 + $0x20] sm:$0xff] }
 0xa02   :  { %v1308_v30 = vpop.f32.mrf.mxu2 }
 0xa03   :  { %v1309_v44 = vadd.f32 %v3063_v7, %v1308_v30 }
 0xa05   :  { %v1312_v47 = vadd.f32 %v1309_v44, %v3628_v0  ;;  %v3066_v44 = vld [vmem:[%s4313_s4 + $0x1] ss:$0 sm:$0xff]  ;;  %s4334_s4 = smov 120  }
 0xa07   :  { %v1318_v50 = vsel %vm147_vm0, %v1312_v47, 0.0 }
 0xa08   :  { %1319 = vadd.xlane.f32.xlu0 %v1318_v50 }
 0xa73   :  { %v1317_v5 = vpop.xlane.xlu1 %1316 }
 0xa74   :  { %v1321_v21 = vmul.f32 %v1317_v5, %v3393_v37 }
 0xa76   :  { %v1323_v52 = vsub.f32 %v1311_v36, %v1321_v21  ;;  %v2970_v36 = vld [vmem:[%s4312_s29 + $0x28] sm:$0xff] }
 0xa77   :  { %1461 = vmatpush.bf16.msrb.mxu0 %v2970_v36 }
 0xa78   :  { %v1325_v53 = vmul.f32 %v1323_v52, %v1323_v52 }
 0xa7a   :  { %v1327_v61 = vsel %vm147_vm0, %v1325_v53, 0.0 }
 0xa7b   :  { %v1320_v60 = vpop.xlane.xlu0 %1319  ;;  %1328 = vadd.xlane.f32.xlu2 %v1327_v61  ;;  %1462 = vmatpush.bf16.msrb.mxu0 %v2969_v40  ;;  %v3067_v61 = vld [vmem:[%s4314_s5 + $0x1] ss:$0 sm:$0xff] }
 0xa7c   :  { %v1322_v63 = vmul.f32 %v1320_v60, %v3393_v37  ;;  %v3069_v40 = vld [vmem:[%s4317_s2 + $0x1] ss:$0 sm:$0xff] }
 0xa7e   :  { %v1324_v54 = vsub.f32 %v1312_v47, %v1322_v63 }
 0xa80   :  { %v1326_v1 = vmul.f32 %v1324_v54, %v1324_v54 }
 0xa82   :  { %v1330_v20 = vsel %vm147_vm0, %v1326_v1, 0.0 }
 0xa83   :  { %1331 = vadd.xlane.f32.xlu2 %v1330_v20 }
 0xaee   :  { %v1329_v0 = vpop.xlane.xlu2 %1328 }
 0xaef   :  { %v1333_v3 = vmul.f32 %v1329_v0, %v3393_v37 }
 0xaf1   :  { %v1335_v58 = vadd.f32 1e-05, %v1333_v3 }
 0xaf3   :  { %3115 = vrsqrt.f32 %v1335_v58  ;;  %vm1343_vm14 = vweird.f32 %v1335_v58 }
 0xaf6   :  { %v1332_v12 = vpop.xlane.xlu2 %1331 }
 0xaf7   :  { %v1334_v14 = vmul.f32 %v1332_v12, %v3393_v37 }
 0xaf9   :  { %v3116_v16 = vpop.eup %3115  ;;  %v1336_v17 = vadd.f32 1e-05, %v1334_v14 }
 0xafa   :  { %v1338_v57 = vmul.f32 %v3116_v16, %v1335_v58  ;;  %vm1344_vm13 = vweird.f32 %v3116_v16 }
 0xafb   :  { %3117 = vrsqrt.f32 %v1336_v17  ;;  %vm1345_vm15 = vmor %vm1343_vm14, %vm1344_vm13  ;;  %vm1353_vm10 = vweird.f32 %v1336_v17 }
 0xafc   :  { %v1339_v18 = vmul.f32 %v3116_v16, %v1338_v57 }
 0xafe   :  { %v1340_v22 = vmul.f32 0.5, %v1339_v18 }
 0xb00   :  { %v1341_v32 = vsub.f32 1.5, %v1340_v22 }
 0xb01   :  { %v3118_v35 = vpop.eup %3117 }
 0xb02   :  { %v1342_v2 = vmul.f32 %v3116_v16, %v1341_v32  ;;  %v1348_v56 = vmul.f32 %v3118_v35, %v1336_v17  ;;  %vm1354_vm12 = vweird.f32 %v3118_v35 }
 0xb03   :  { %vm1355_vm11 = vmor %vm1353_vm10, %vm1354_vm12 }
 0xb04   :  { %v1346_v59 = vsel %vm1345_vm15, %v3116_v16, %v1342_v2  ;;  %v1349_v23 = vmul.f32 %v3118_v35, %v1348_v56 }
 0xb05   :  { %v1357_v13 = vmul.f32 %v1346_v59, %v1323_v52  ;;  %v2974_v59 = vld [vmem:[%s4251_s10 + $0x18] sm:$0xff] }
 0xb06   :  { %v1350_v46 = vmul.f32 0.5, %v1349_v23  ;;  %1563 = vmatpush.bf16.msrb.mxu1 %v2974_v59  ;;  %v2973_v23 = vld [vmem:[%s4251_s10 + $0x10] sm:$0xff] }
 0xb07   :  { %v1362_v28 = vmul.f32 %v3064_v25, %v1357_v13 }
 0xb08   :  { %v1351_v24 = vsub.f32 1.5, %v1350_v46 }
 0xb09   :  { %v1367_v31 = vadd.f32 %v3065_v27, %v1362_v28 }
 0xb0a   :  { %v1352_v26 = vmul.f32 %v3118_v35, %v1351_v24  ;;  %1564 = vmatpush.bf16.msrb.mxu1 %v2973_v23 }
 0xb0b   :  { %v1369_v55 = vmul.f32 %v1367_v31, %v3417_v9 }
 0xb0c   :  { %v1356_v11 = vsel %vm1355_vm11, %v3118_v35, %v1352_v26 }
 0xb0d   :  { %v1358_v29 = vmul.f32 %v1356_v11, %v1324_v54 }
 0xb0f   :  { %v1363_v33 = vmul.f32 %v3064_v25, %v1358_v29 }
 0xb11   :  { %v1368_v34 = vadd.f32 %v3065_v27, %v1363_v33 }
 0xb13   :  { %v1370_v8 = vmul.f32 %v1368_v34, %v3422_v19 }
 0xb15   :  { %v1371_v7 = vpack.c.bf16 %v1370_v8, %v1369_v55 }
 0xb17   :  { %2769 = vmatmul.msk.bf16.vlgmr.msrb.gmra.mxu3 %vm147_vm0, %v1371_v7  ;;  %v3068_v7 = vld [vmem:[%s4316_s9 + $0x1] ss:$0 sm:$0xff] }
 0xb9a   :  { %v1406_v30 = vpop.f32.mrf.mxu3 }
 0xb9b   :  { %v1407_v47 = vadd.f32 %v3066_v44, %v1406_v30 }
 0xb9d   :  { %v1411_v21 = vmax.f32 %v1407_v47, 0.0 }
 0xba2   :  { %v1408_v50 = vpop.f32.mrf.mxu3 }
 0xba3   :  { %v1409_v5 = vadd.f32 %v3066_v44, %v1408_v50 }
 0xba5   :  { %v1412_v52 = vmax.f32 %v1409_v5, 0.0 }
 0xba7   :  { %v1413_v53 = vpack.c.bf16 %v1412_v52, %v1411_v21 }
 0xba9   :  { %2795 = vmatmul.msk.bf16.vlgmr.msrb.gmra.mxu0 %vm204_vm1, %v1413_v53 }
 0xc26   :  { %v1464_v60 = vpop.f32.mrf.mxu0 }
 0xc27   :  { %v1465_v63 = vadd.f32 %v3067_v61, %v1464_v60  ;;  %v2978_v60 = vld [vmem:[%s4253_s12 + $0x38] sm:$0xff] }
 0xc28   :  { %1614 = vmatpush.bf16.msrb.mxu2 %v2978_v60 }
 0xc29   :  { %v1469_v54 = vadd.f32 %v1465_v63, %v1369_v55  ;;  %v2977_v63 = vld [vmem:[%s4253_s12 + $0x30] sm:$0xff] }
 0xc2b   :  { %v1475_v1 = vsel %vm147_vm0, %v1469_v54, 0.0 }
 0xc2c   :  { %1476 = vadd.xlane.f32.xlu2 %v1475_v1  ;;  %1615 = vmatpush.bf16.msrb.mxu2 %v2977_v63  ;;  %v2975_v1 = vld [vmem:[%s4253_s12 + $0x20] sm:$0xff] }
 0xc2e   :  { %v1466_v20 = vpop.f32.mrf.mxu0 }
 0xc2f   :  { %v1467_v0 = vadd.f32 %v3067_v61, %v1466_v20 }
 0xc31   :  { %v1470_v3 = vadd.f32 %v1467_v0, %v1370_v8  ;;  %v3070_v0 = vld [vmem:[%s4252_s11 + $0x1] ss:$0 sm:$0xff] }
 0xc33   :  { %v1478_v58 = vsel %vm147_vm0, %v1470_v3, 0.0 }
 0xc34   :  { %1479 = vadd.xlane.f32.xlu1 %v1478_v58 }
 0xc9f   :  { %v1477_v4 = vpop.xlane.xlu2 %1476 }
 0xca0   :  { %v1481_v6 = vmul.f32 %v1477_v4, %v3393_v37 }
 0xca2   :  { %v1483_v12 = vsub.f32 %v1469_v54, %v1481_v6  ;;  %v2976_v54 = vld [vmem:[%s4253_s12 + $0x28] sm:$0xff]  ;;  %s4385_s12 = smov 24  }
 0xca3   :  { %1616 = vmatpush.bf16.msrb.mxu2 %v2976_v54 }
 0xca4   :  { %v1485_v14 = vmul.f32 %v1483_v12, %v1483_v12 }
 0xca6   :  { %v1487_v16 = vsel %vm147_vm0, %v1485_v14, 0.0 }
 0xca7   :  { %v1480_v17 = vpop.xlane.xlu1 %1479  ;;  %1488 = vadd.xlane.f32.xlu2 %v1487_v16  ;;  %1617 = vmatpush.bf16.msrb.mxu2 %v2975_v1  ;;  %v2980_v16 = vld [vmem:[%s4255_s14 + $0x18] sm:$0xff] }
 0xca8   :  { %v1482_v57 = vmul.f32 %v1480_v17, %v3393_v37  ;;  %v2984_v17 = vld [vmem:[%s4259_s18 + $0x18] sm:$0xff]  ;;  %1761 = vmatpush.bf16.msra.mxu3 %v2980_v16 }
 0xca9   :  { %1841 = vmatpush.bf16.msra.mxu0 %v2984_v17 }
 0xcaa   :  { %v1484_v18 = vsub.f32 %v1470_v3, %v1482_v57  ;;  %v2983_v57 = vld [vmem:[%s4259_s18 + $0x10] sm:$0xff]  ;;  %s4330_s18 = smov 104  }
 0xcac   :  { %v1486_v22 = vmul.f32 %v1484_v18, %v1484_v18 }
 0xcad   :  { %1842 = vmatpush.bf16.msra.mxu0 %v2983_v57 }
 0xcae   :  { %v1490_v32 = vsel %vm147_vm0, %v1486_v22, 0.0 }
 0xcaf   :  { %1491 = vadd.xlane.f32.xlu0 %v1490_v32  ;;  %v3925_v32 = vld [vmem:[%s4254_s13 + $0x18] sm:$0xff] }
 0xcb0   :  { %v1647_v23 = vperm.slane %v3925_v32, 1 }
 0xd1a   :  { %v1489_v35 = vpop.xlane.xlu2 %1488 }
 0xd1b   :  { %v1493_v2 = vmul.f32 %v1489_v35, %v3393_v37 }
 0xd1d   :  { %v1495_v56 = vadd.f32 1e-05, %v1493_v2  ;;  %v1626_v2 = vperm.slane %v3925_v32, 0 }
 0xd1f   :  { %3119 = vrsqrt.f32 %v1495_v56  ;;  %vm1503_vm11 = vweird.f32 %v1495_v56 }
 0xd22   :  { %v1492_v46 = vpop.xlane.xlu0 %1491 }
 0xd23   :  { %v1494_v25 = vmul.f32 %v1492_v46, %v3393_v37  ;;  %v1661_v46 = vperm.slane %v3925_v32, 2 }
 0xd25   :  { %v3120_v13 = vpop.eup %3119  ;;  %v1496_v24 = vadd.f32 1e-05, %v1494_v25  ;;  %v1675_v25 = vperm.slane %v3925_v32, 3 }
 0xd26   :  { %v1498_v26 = vmul.f32 %v3120_v13, %v1495_v56  ;;  %vm1504_vm10 = vweird.f32 %v3120_v13  ;;  %v3159_v56 = vld [vmem:[%s4318_s7] sm:$0xff] }
 0xd27   :  { %3121 = vrsqrt.f32 %v1496_v24  ;;  %vm1505_vm12 = vmor %vm1503_vm11, %vm1504_vm10  ;;  %vm1513_vm15 = vweird.f32 %v1496_v24  ;;  %2879 = vmatmul.msk.bf16.vlgmr.msra.gmra.mxu0 %vm147_vm0, %v3159_v56  ;;  %vm4328_vm11 = vcmp.eq.s32.totalorder %v3547_v48, 1  ;;  %v3071_v48 = vld [vmem:[%s4260_s19 + $0x1] ss:$0 sm:$0xff]  ;;  %s3212_s19 = smov 128  }
 0xd28   :  { %v1499_v27 = vmul.f32 %v3120_v13, %v1498_v26  ;;  %v1689_v26 = vperm.slane %v3925_v32, 4 }
 0xd2a   :  { %v1500_v28 = vmul.f32 0.5, %v1499_v27  ;;  %v1703_v27 = vperm.slane %v3925_v32, 5 }
 0xd2c   :  { %v1501_v11 = vsub.f32 1.5, %v1500_v28  ;;  %v1717_v28 = vperm.slane %v3925_v32, 6 }
 0xd2d   :  { %v3122_v29 = vpop.eup %3121 }
 0xd2e   :  { %v1502_v31 = vmul.f32 %v3120_v13, %v1501_v11  ;;  %v1508_v33 = vmul.f32 %v3122_v29, %v1496_v24  ;;  %vm1514_vm13 = vweird.f32 %v3122_v29 }
 0xd2f   :  { %vm1515_vm14 = vmor %vm1513_vm15, %vm1514_vm13 }
 0xd30   :  { %v1506_v34 = vsel %vm1505_vm12, %v3120_v13, %v1502_v31  ;;  %v1509_v55 = vmul.f32 %v3122_v29, %v1508_v33  ;;  %vm4329_vm12 = vmmov %vm4328_vm11 }
 0xd31   :  { %v1517_v38 = vmul.f32 %v1506_v34, %v1483_v12 }
 0xd32   :  { %v1510_v8 = vmul.f32 0.5, %v1509_v55 }
 0xd33   :  { %v1522_v30 = vmul.f32 %v3068_v7, %v1517_v38 }
 0xd34   :  { %v1511_v39 = vsub.f32 1.5, %v1510_v8 }
 0xd35   :  { %v1527_v50 = vadd.f32 %v3069_v40, %v1522_v30 }
 0xd36   :  { %v1512_v36 = vmul.f32 %v3122_v29, %v1511_v39 }
 0xd37   :  { %v3886_v52 = vmul.f32 %v1527_v50, %v3417_v9  ;;  %2880 = vmatmul.msk.bf16.gmra.mxu0 %vm147_vm0, %v3596_v41 }
 0xd38   :  { %v1516_v44 = vsel %vm1515_vm14, %v3122_v29, %v1512_v36 }
 0xd39   :  { %v1518_v47 = vmul.f32 %v1516_v44, %v1484_v18  ;;  %v2979_v18 = vld [vmem:[%s4255_s14 + $0x10] sm:$0xff] }
 0xd3a   :  { %1762 = vmatpush.bf16.msra.mxu3 %v2979_v18 }
 0xd3b   :  { %v1523_v5 = vmul.f32 %v3068_v7, %v1518_v47 }
 0xd3d   :  { %v1528_v21 = vadd.f32 %v3069_v40, %v1523_v5 }
 0xd3f   :  { %v3889_v53 = vmul.f32 %v1528_v21, %v3422_v19 }
 0xd41   :  { %v1531_v61 = vpack.c.bf16 %v3889_v53, %v3886_v52 }
 0xd43   :  { %2811 = vmatmul.msk.bf16.vlgmr.msrb.gmra.mxu1 %vm147_vm0, %v1531_v61 }
 0xdc0   :  { %v1566_v20 = vpop.f32.mrf.mxu1 }
 0xdc1   :  { %v1567_v3 = vadd.f32 %v3070_v0, %v1566_v20 }
 0xdc3   :  { %v1571_v6 = vmax.f32 %v1567_v3, 0.0 }
 0xdc8   :  { %v1568_v58 = vpop.f32.mrf.mxu1 }
 0xdc9   :  { %v1569_v4 = vadd.f32 %v3070_v0, %v1568_v58 }
 0xdcb   :  { %v1572_v12 = vmax.f32 %v1569_v4, 0.0 }
 0xdcd   :  { %v1573_v14 = vpack.c.bf16 %v1572_v12, %v1571_v6 }
 0xdcf   :  { %2836 = vmatmul.msk.bf16.vlgmr.msrb.gmra.mxu2 %vm204_vm1, %v1573_v14  ;;  %vm4320_vm1 = vcmp.eq.s32.totalorder %v3457_v43, 1 }
 0xe52   :  { %v1619_v22 = vpop.f32.mrf.mxu2 }
 0xe53   :  { %v1631_v35 = vrot.slane %v1619_v22, 1  ;;  %v1627_v13 = vmul.f32 %v1626_v2, %v1619_v22 }
 0xe55   :  { %v3933_v59 = vsel %vm385_vm2, 0.0, %v1631_v35 }
 0xe56   :  { %v1638_v11 = vrot.slane %v3933_v59, 6  ;;  %v1652_v29 = vrot.slane %v3933_v59, 5  ;;  %v1666_v31 = vrot.slane %v3933_v59, 4  ;;  %v1680_v34 = vrot.slane %v3933_v59, 3 }
 0xe57   :  { %v1694_v55 = vrot.slane %v3933_v59, 2  ;;  %v1708_v8 = vrot.slane %v3933_v59, 1 }
 0xe5a   :  { %v1621_v24 = vpop.f32.mrf.mxu2 }
 0xe5b   :  { %v1632_v33 = vrot.slane %v1621_v24, 1  ;;  %v1628_v7 = vmul.f32 %v1626_v2, %v1621_v24 }
 0xe5d   :  { %v1633_v38 = vsel %vm385_vm2, %v1631_v35, %v1632_v33  ;;  %v1641_v39 = vrot.slane %v1632_v33, 6  ;;  %v1655_v36 = vrot.slane %v1632_v33, 5  ;;  %v1669_v40 = vrot.slane %v1632_v33, 4 }
 0xe5e   :  { %v1639_v30 = vrot.slane %v1633_v38, 6  ;;  %v1653_v44 = vrot.slane %v1633_v38, 5  ;;  %v1667_v47 = vrot.slane %v1633_v38, 4  ;;  %v1681_v50 = vrot.slane %v1633_v38, 3 }
 0xe5f   :  { %v1683_v5 = vrot.slane %v1632_v33, 3  ;;  %v1695_v21 = vrot.slane %v1633_v38, 2  ;;  %v1697_v61 = vrot.slane %v1632_v33, 2  ;;  %v1709_v60 = vrot.slane %v1633_v38, 1 }
 0xe60   :  { %v1640_v63 = vsel %vm398_vm4, %v1638_v11, %v1639_v30  ;;  %v1642_v54 = vsel %vm398_vm4, %v1639_v30, %v1641_v39  ;;  %v1654_v1 = vsel %vm418_vm5, %v1652_v29, %v1653_v44  ;;  %v1656_v20 = vsel %vm418_vm5, %v1653_v44, %v1655_v36 }
 0xe61   :  { %v1645_v0 = vsel %vm396_vm9, %v1640_v63, 0.0  ;;  %v1646_v3 = vsel %vm396_vm9, %v1642_v54, 0.0  ;;  %v1659_v58 = vsel %vm417_vm3, %v1654_v1, 0.0  ;;  %v1660_v4 = vsel %vm417_vm3, %v1656_v20, 0.0  ;;  %vm4321_vm3 = vmmov %vm4320_vm1 }
 0xe62   :  { %v1648_v6 = vmul.f32 %v1647_v23, %v1645_v0  ;;  %v1649_v12 = vmul.f32 %v1647_v23, %v1646_v3  ;;  %v1662_v14 = vmul.f32 %v1661_v46, %v1659_v58  ;;  %v1663_v16 = vmul.f32 %v1661_v46, %v1660_v4  ;;  %v2981_v58 = vld [vmem:[%s4257_s16 + $0x10] sm:$0xff] }
 0xe63   :  { %v1668_v17 = vsel %vm438_vm6, %v1666_v31, %v1667_v47  ;;  %v1670_v57 = vsel %vm438_vm6, %v1667_v47, %v1669_v40  ;;  %v1682_v18 = vsel %vm458_vm8, %v1680_v34, %v1681_v50  ;;  %v1684_v22 = vsel %vm458_vm8, %v1681_v50, %v1683_v5 }
 0xe64   :  { %v1650_v51 = vadd.f32 %v1648_v6, %v1627_v13  ;;  %v1651_v35 = vadd.f32 %v1649_v12, %v1628_v7  ;;  %v1673_v2 = vsel %vm437_vm7, %v1668_v17, 0.0  ;;  %v1674_v49 = vsel %vm437_vm7, %v1670_v57, 0.0  ;;  %v3072_v6 = vld [vmem:[%s4256_s15 + $0x1] ss:$0 sm:$0xff]  ;;  %s4335_s15 = smov 96  }
 0xe65   :  { %v1676_v56 = vmul.f32 %v1675_v25, %v1673_v2  ;;  %v1677_v23 = vmul.f32 %v1675_v25, %v1674_v49  ;;  %v1687_v46 = vsel %vm4320_vm1, %v1682_v18, 0.0  ;;  %v1688_v24 = vsel %vm4321_vm3, %v1684_v22, 0.0 }
 0xe66   :  { %v1664_v11 = vadd.f32 %v1662_v14, %v1650_v51  ;;  %v1665_v29 = vadd.f32 %v1663_v16, %v1651_v35  ;;  %v1690_v31 = vmul.f32 %v1689_v26, %v1687_v46  ;;  %v1691_v34 = vmul.f32 %v1689_v26, %v1688_v24 }
 0xe67   :  { %vm4322_vm5 = vcmask 1045504   ;;  %v1711_v39 = vrot.slane %v1632_v33, 1  ;;  %v1710_v42 = vsel %vm385_vm2, %v1708_v8, %v1709_v60  ;;  %vm4324_vm7 = vcmp.eq.s32.totalorder %v3465_v45, 1 }
 0xe68   :  { %v1696_v13 = vsel %vm4322_vm5, %v1694_v55, %v1695_v21  ;;  %vm4323_vm6 = vmmov %vm4322_vm5  ;;  %v1678_v25 = vadd.f32 %v1676_v56, %v1664_v11  ;;  %v1679_v36 = vadd.f32 %v1677_v23, %v1665_v29  ;;  %vm4326_vm9 = vcmp.eq.s32.totalorder %v3513_v10, 1  ;;  %v3073_v23 = vld [vmem:[%s4319_s0 + $0x1] ss:$0 sm:$0xff]  ;;  %s4383_s0 = smov 8  }
 0xe69   :  { %v1698_v7 = vsel %vm4323_vm6, %v1695_v21, %v1697_v61  ;;  %v1701_v43 = vsel %vm4324_vm7, %v1696_v13, 0.0  ;;  %vm4325_vm8 = vmmov %vm4324_vm7  ;;  %v1712_v55 = vsel %vm385_vm2, %v1709_v60, %v1711_v39  ;;  %v1715_v33 = vsel %vm4326_vm9, %v1710_v42, 0.0 }
 0xe6a   :  { %v1702_v40 = vsel %vm4325_vm8, %v1698_v7, 0.0  ;;  %v1704_v26 = vmul.f32 %v1703_v27, %v1701_v43  ;;  %v1724_v8 = vperm.slane %v3925_v32, 7  ;;  %v1692_v30 = vadd.f32 %v1690_v31, %v1678_v25  ;;  %vm4327_vm10 = vmmov %vm4326_vm9  ;;  %v2982_v32 = vld [vmem:[%s4257_s16 + $0x18] sm:$0xff] }
 0xe6b   :  { %v1693_v41 = vadd.f32 %v1691_v34, %v1679_v36  ;;  %v1705_v44 = vmul.f32 %v1703_v27, %v1702_v40  ;;  %v1716_v47 = vsel %vm4327_vm10, %v1712_v55, 0.0  ;;  %v1722_v45 = vsel %vm4328_vm11, %v3933_v59, 0.0  ;;  %v1844_v59 = vpop.f32.mrf.mxu0  ;;  %1805 = vmatpush.bf16.msra.mxu1 %v2982_v32 }
 0xe6c   :  { %v1723_v50 = vsel %vm4329_vm12, %v1633_v38, 0.0  ;;  %v1719_v21 = vmul.f32 %v1717_v28, %v1716_v47  ;;  %v1706_v61 = vadd.f32 %v1704_v26, %v1692_v30  ;;  %v1718_v60 = vmul.f32 %v1717_v28, %v1715_v33 }
 0xe6d   :  { %v1707_v5 = vadd.f32 %v1705_v44, %v1693_v41  ;;  %v1725_v54 = vmul.f32 %v1724_v8, %v1722_v45  ;;  %v1726_v10 = vmul.f32 %v1724_v8, %v1723_v50  ;;  %v1845_v38 = vadd.f32 %v3071_v48, %v1844_v59 }
 0xe6e   :  { %v1720_v27 = vadd.f32 %v1718_v60, %v1706_v61  ;;  %vm4332_vm2 = vcmask 64512   ;;  %vm4345_vm10 = vcmask 1045504  }
 0xe6f   :  { %v1721_v63 = vadd.f32 %v1719_v21, %v1707_v5  ;;  %1870 = vrot.lane.b32.xlu2 %v1845_v38, %s4330_s18  ;;  %vm4333_vm13 = vmmov %vm4332_vm2  ;;  %1806 = vmatpush.bf16.msra.mxu1 %v2981_v58 }
 0xe70   :  { %v1727_v1 = vadd.f32 %v1725_v54, %v1720_v27  ;;  %vm4336_vm15 = vmmov %vm4332_vm2 }
 0xe71   :  { %v1728_v20 = vadd.f32 %v1726_v10, %v1721_v63  ;;  %vm4337_vm14 = vmmov %vm4332_vm2 }
 0xe72   :  { %vm4338_vm1 = vmmov %vm4332_vm2 }
 0xe73   :  { %v1729_v0 = vpack.c.bf16 %v1728_v20, %v1727_v1  ;;  %v1846_v3 = vpop.f32.mrf.mxu0  ;;  %vm4339_vm3 = vmmov %vm4338_vm1 }
 0xe74   :  { %v4008_v28 = vadd.f32 %v3071_v48, %v1846_v3  ;;  %vm4340_vm5 = vmmov %vm4338_vm1 }
 0xe75   :  { %2851 = vmatmul.msk.bf16.vlgmr.msra.gmra.mxu3 %vm147_vm0, %v1729_v0  ;;  %vm4341_vm6 = vmmov %vm4338_vm1 }
 0xe76   :  { %1872 = vrot.lane.b32.xlu1 %v4008_v28, %s4330_s18  ;;  %1868 = vrot.lane.b32.xlu0 %v4008_v28, %s4331_s26  ;;  %vm4342_vm7 = vmmov %vm4338_vm1 }
 0xe77   :  { %2881 = vmatpush.xpose.msk.msra.mxu2 %vm4332_vm2, %v4008_v28  ;;  %vm4343_vm8 = vmmov %vm4338_vm1 }
 0xe78   :  { %vm4344_vm9 = vmmov %vm4338_vm1 }
 0xe79   :  { %vm4346_vm11 = vmmov %vm4338_vm1 }
 0xe7a   :  { %vm4347_vm12 = vmmov %vm4338_vm1 }
 0xe7b   :  { %2882 = vmatpush.xpose.msk.msra.mxu2 %vm4333_vm13, %v1845_v38  ;;  %v1849_v35 = vpop.f32.mrf.mxu0  ;;  %vm4348_vm2 = vmmov %vm4338_vm1  ;;  %vm4349_vm13 = vcmask 80896  }
 0xe7c   :  { %v4060_v29 = vadd.f32 %v3071_v48, %v1849_v35 }
 0xe7e   :  { %1866 = vrot.lane.b32.xlu1 %v1845_v38, %s4331_s26 }
 0xe83   :  { %v1851_v2 = vpop.f32.mrf.mxu0 }
 0xe86   :  { %1862 = vrot.lane.b32.xlu1 %v1845_v38, %s4334_s4 }
 0xee8   :  { %v4036_v49 = vpop.permute.xlu1 %1872  ;;  %v4038_v56 = vpop.permute.xlu0 %1868 }
 0xee9   :  { %2084 = vrot.lane.b32.xlu1 %v4038_v56, %s4335_s15  ;;  %2890 = vmatpush.xpose.msk.msrb.mxu2 %vm4336_vm15, %v4036_v49  ;;  %vm4350_vm15 = vmmov %vm4349_vm13 }
 0xeea   :  { %2887 = vmatpush.xpose.msk.msrb.mxu1 %vm4337_vm14, %v4038_v56  ;;  %vm4351_vm14 = vmmov %vm4349_vm13 }
 0xef8   :  { %v1764_v4 = vpop.f32.mrf.mxu3 }
 0xef9   :  { %v1765_v12 = vadd.f32 %v3072_v6, %v1764_v4 }
 0xefb   :  { %v1769_v16 = vadd.f32 %v1765_v12, %v3886_v52  ;;  %v1867_v52 = vpop.permute.xlu1 %1866 }
 0xefc   :  { %2888 = vmatpush.xpose.msk.msrb.mxu1 %vm4338_vm1, %v1867_v52  ;;  %v3030_v11 = vpack.i.bf16 %v1867_v52, %v1845_v38  ;;  %vm4352_vm1 = vmmov %vm4349_vm13 }
 0xefd   :  { %v4028_v18 = vmul.f32 %v1769_v16, %v3417_v9 }
 0xf00   :  { %v1766_v14 = vpop.f32.mrf.mxu3 }
 0xf01   :  { %v1767_v17 = vadd.f32 %v3072_v6, %v1766_v14 }
 0xf03   :  { %v1770_v57 = vadd.f32 %v1767_v17, %v3889_v53  ;;  %v1871_v53 = vpop.permute.xlu2 %1870  ;;  %v4066_v31 = vpop.permute.xlu1 %1862 }
 0xf04   :  { %2891 = vmatpush.xpose.msk.msrb.mxu2 %vm4339_vm3, %v1871_v53  ;;  %vm4353_vm3 = vmmov %vm4352_vm1 }
 0xf05   :  { %v4031_v22 = vmul.f32 %v1770_v57, %v3422_v19 }
 0xf07   :  { %v1773_v51 = vpack.c.bf16 %v4031_v22, %v4028_v18 }
 0xf09   :  { %2865 = vmatmul.msk.bf16.vlgmr.msra.gmra.mxu1 %vm147_vm0, %v1773_v51 }
 0xf5b   :  { %v2085_v34 = vpop.permute.xlu1 %2084 }
 0xf86   :  { %v1808_v46 = vpop.f32.mrf.mxu1 }
 0xf87   :  { %v1809_v24 = vadd.f32 %v3073_v23, %v1808_v46 }
 0xf89   :  { %1856 = vrot.lane.b32.xlu2 %v1809_v24, %s4331_s26  ;;  %1858 = vrot.lane.b32.xlu0 %v1809_v24, %s4330_s18 }
 0xf8a   :  { %2883 = vmatmul.msk.f32.vlgmr.msra.gmra.mxu2 %vm4340_vm5, %v1809_v24  ;;  %vm4354_vm5 = vmmov %vm4352_vm1 }
 0xf8b   :  { %2897 = vmatpush.msk.msra.mxu2 %vm398_vm4, %v2085_v34 }
 0xf8e   :  { %v1810_v45 = vpop.f32.mrf.mxu1 }
 0xf8f   :  { %v4092_v61 = vadd.f32 %v3073_v23, %v1810_v45  ;;  %v2229_v23 = vrot.slane %v4038_v56, 2 }
 0xf91   :  { %1854 = vrot.lane.b32.xlu2 %v1809_v24, %s4334_s4  ;;  %1864 = vrot.lane.b32.xlu0 %v4008_v28, %s4334_s4 }
 0xf99   :  { %3031 = vrot.lane.b32.xlu2 %v3030_v11, %s4335_s15  ;;  %2024 = vrot.lane.b32.xlu0 %v4008_v28, %s4335_s15 }
 0xfa1   :  { %2165 = vrot.lane.b32.xlu2 %v4060_v29, %s4334_s4  ;;  %2114 = vrot.lane.b32.xlu0 %v4036_v49, %s4335_s15 }
 0xfe3   :  { %v1857_v13 = vpop.permute.xlu2 %1856 }
 0xfe4   :  { %2889 = vmatmul.msk.f32.vlgmr.msrb.gmra.mxu1 %vm4341_vm6, %v1857_v13  ;;  %vm4355_vm6 = vmmov %vm4352_vm1 }
 0xfeb   :  { %v1855_v7 = vpop.permute.xlu2 %1854 }
 0xff3   :  { %v3032_v39 = vpop.permute.xlu2 %3031 }
 0xff4   :  { %v3034_v42 = vunpack.i.h.bf16 %v3032_v39  ;;  %v3033_v8 = vunpack.i.l.bf16 %v3032_v39 }
 0xff6   :  { %2107 = vmatpush.msra.mxu2 %v3034_v42 }
 0xffb   :  { %v1859_v25 = vpop.permute.xlu0 %1858  ;;  %v2166_v36 = vpop.permute.xlu2 %2165 }
 0xffc   :  { %2892 = vmatmul.msk.f32.vlgmr.msrb.gmra.mxu2 %vm4342_vm7, %v1859_v25  ;;  %v4071_v43 = vrot.slane %v2166_v36, 2  ;;  %vm4356_vm7 = vmmov %vm4352_vm1 }
 0xffe   :  { %2904 = vmatpush.xpose.msk.msrb.mxu2 %vm4343_vm8, %v4071_v43  ;;  %vm4357_vm8 = vmmov %vm4348_vm2 }
0x1003   :  { %v1865_v40 = vpop.permute.xlu0 %1864 }
0x1004   :  { %v2200_v26 = vrot.slane %v1865_v40, 2  ;;  %2884 = vmatpush.xpose.msk.msrb.mxu3 %vm4344_vm9, %v1865_v40  ;;  %vm4358_vm9 = vmmov %vm4345_vm10 }
0x1006   :  { %v4078_v55 = vsel %vm4345_vm10, %v2200_v26, %v4071_v43  ;;  %vm4359_vm10 = vmmov %vm4348_vm2  ;;  %v2258_v26 = vrot.slane %v4036_v49, 2  ;;  %v4138_v49 = vrot.slane %v4060_v29, 2 }
0x1007   :  { %2905 = vmatpush.xpose.msk.msrb.mxu2 %vm4346_vm11, %v4078_v55  ;;  %vm4360_vm11 = vmmov %vm4352_vm1 }
0x1008   :  { %2885 = vmatpush.xpose.msk.msrb.mxu3 %vm4347_vm12, %v4066_v31  ;;  %vm4361_vm12 = vmmov %vm4352_vm1 }
0x100b   :  { %v2025_v33 = vpop.permute.xlu0 %2024  ;;  %2886 = vmatmul.msk.f32.vlgmr.msrb.gmra.mxu3 %vm4348_vm2, %v1855_v7 }
0x100c   :  { %2893 = vmatpush.msk.msra.mxu3 %vm398_vm4, %v2025_v33 }
0x100d   :  { %v1897_v30 = vpop.f32.mrf.mxu2 }
0x100e   :  { %v1898_v41 = vadd.f32 %v1897_v30, %v3672_v15  ;;  %2047 = vmatpush.msra.mxu3 %v3033_v8 }
0x1010   :  { %v1978_v44 = vsel %vm4349_vm13, %v1898_v41, -inf  ;;  %vm4362_vm13 = vmmov %vm4358_vm9 }
0x1011   :  { %1979 = vmax.xlane.f32.xlu0 %v1978_v44 }
0x1013   :  { %v2115_v47 = vpop.permute.xlu0 %2114 }
0x1014   :  { %2899 = vmatpush.msk.msrb.mxu3 %vm398_vm4, %v2115_v47 }
0x1025   :  { %2112 = vrot.lane.b32.xlu0 %v1871_v53, %s4335_s15 }
0x1061   :  { %v1949_v50 = vpop.f32.mrf.mxu1 }
0x1062   :  { %v1950_v5 = vadd.f32 %v1949_v50, %v3672_v15  ;;  %v2171_v50 = vrot.slane %v4008_v28, 2 }
0x1064   :  { %v1984_v21 = vsel %vm4350_vm15, %v1950_v5, -inf  ;;  %vm4363_vm15 = vmmov %vm4348_vm2 }
0x1065   :  { %1985 = vmax.xlane.f32.xlu1 %v1984_v21 }
0x107e   :  { %2158 = vrot.lane.b32.xlu1 %v4092_v61, %s4334_s4 }
0x107f   :  { %v1975_v60 = vpop.f32.mrf.mxu2 }
0x1080   :  { %v1976_v63 = vadd.f32 %v1975_v60, %v3672_v15 }
0x1082   :  { %v1987_v27 = vsel %vm4351_vm14, %v1976_v63, -inf  ;;  %vm4364_vm14 = vmmov %vm4348_vm2 }
0x1083   :  { %1988 = vmax.xlane.f32.xlu2 %v1987_v27 }
0x1084   :  { %v1980_v54 = vpop.xlane.xlu0 %1979 }
0x1085   :  { %v1990_v10 = vsub.f32 %v1898_v41, %v1980_v54 }
0x1087   :  { %v1994_v1 = vmul.f32 1.442695, %v1990_v10 }
0x1089   :  { %3123 = vpow2.f32 %v1994_v1 }
0x108e   :  { %v1923_v59 = vpop.f32.mrf.mxu3 }
0x108f   :  { %v3124_v20 = vpop.eup %3123  ;;  %v1924_v38 = vadd.f32 %v1923_v59, %v3672_v15 }
0x1090   :  { %v2002_v0 = vsel %vm4352_vm1, %v3124_v20, 0.0 }
0x1091   :  { %2003 = vadd.xlane.f32.xlu0 %v2002_v0  ;;  %v1981_v3 = vsel %vm4353_vm3, %v1924_v38, -inf  ;;  %vm4365_vm3 = vmmov %vm4348_vm2 }
0x1097   :  { %v2113_v48 = vpop.permute.xlu0 %2112 }
0x1098   :  { %2137 = vmatpush.msrb.mxu3 %v2113_v48 }
0x109b   :  { %2167 = vrot.lane.b32.xlu2 %v4060_v29, %s4331_s26 }
0x10a5   :  { %2160 = vrot.lane.b32.xlu0 %v4092_v61, %s4331_s26  ;;  %s2608_s26 = sshll.u32 %s3211_s1, 4  ;;  %s2609_s26 = int_to_ptr.vmem [resolvable:$true] %s2608_s26 }
0x10a8   :  { %1982 = vmax.xlane.f32.xlu1 %v1981_v3 }
0x10d8   :  { %v1986_v32 = vpop.xlane.xlu1 %1985 }
0x10d9   :  { %v1992_v58 = vsub.f32 %v1950_v5, %v1986_v32 }
0x10db   :  { %v1998_v4 = vmul.f32 1.442695, %v1992_v58 }
0x10dd   :  { %3125 = vpow2.f32 %v1998_v4 }
0x10e3   :  { %v3126_v6 = vpop.eup %3125 }
0x10e4   :  { %v2008_v12 = vsel %vm4354_vm5, %v3126_v6, 0.0  ;;  %vm4366_vm5 = vmmov %vm4348_vm2 }
0x10e5   :  { %2009 = vadd.xlane.f32.xlu2 %v2008_v12 }
0x10f0   :  { %v2159_v24 = vpop.permute.xlu1 %2158 }
0x10f6   :  { %v1989_v14 = vpop.xlane.xlu2 %1988 }
0x10f7   :  { %v1993_v16 = vsub.f32 %v1976_v63, %v1989_v14 }
0x10f9   :  { %v2000_v17 = vmul.f32 1.442695, %v1993_v16 }
0x10fb   :  { %3127 = vpow2.f32 %v2000_v17 }
0x10fd   :  { %2169 = vrot.lane.b32.xlu2 %v4060_v29, %s4330_s18 }
0x10fe   :  { %v2168_v35 = vpop.permute.xlu2 %2167 }
0x10ff   :  { %v4110_v53 = vrot.slane %v2168_v35, 2 }
0x1101   :  { %v3128_v15 = vpop.eup %3127  ;;  %v4118_v46 = vsel %vm4358_vm9, %v2229_v23, %v4110_v53 }
0x1102   :  { %v2011_v57 = vsel %vm4355_vm6, %v3128_v15, 0.0  ;;  %vm4367_vm6 = vmmov %vm4348_vm2 }
0x1103   :  { %2012 = vadd.xlane.f32.xlu1 %v2011_v57 }
0x1104   :  { %v2004_v51 = vpop.xlane.xlu0 %2003 }
0x1105   :  { %3129 = vrcp.f32 %v2004_v51  ;;  %2054 = vrot.lane.b32.xlu2 %v1865_v40, %s4335_s15 }
0x110b   :  { %v3130_v2 = vpop.eup %3129 }
0x110c   :  { %v2018_v52 = vmul.f32 %v3130_v2, %v3124_v20 }
0x110e   :  { %2894 = vmatmul.msk.f32.vlgmr.msra.gmra.mxu3 %vm4356_vm7, %v2018_v52  ;;  %vm4368_vm7 = vmmov %vm4358_vm9 }
0x110f   :  { %2907 = vmatpush.xpose.msk.msra.mxu3 %vm4357_vm8, %v4110_v53  ;;  %v2173_v21 = vsel %vm4368_vm7, %v2171_v50, %v4138_v49  ;;  %vm4369_vm8 = vmmov %vm4348_vm2 }
0x1110   :  { %vm4370_vm9 = vmmov %vm4352_vm1 }
0x1111   :  { %vm4381_vm7 = vmmov %vm4352_vm1 }
0x1113   :  { %2908 = vmatpush.xpose.msk.msra.mxu3 %vm4359_vm10, %v4118_v46  ;;  %vm4371_vm10 = vmmov %vm4348_vm2 }
0x1117   :  { %v2161_v44 = vpop.permute.xlu0 %2160 }
0x111b   :  { %v1983_v11 = vpop.xlane.xlu1 %1982 }
0x111c   :  { %v1991_v34 = vsub.f32 %v1924_v38, %v1983_v11  ;;  %2162 = vrot.lane.b32.xlu1 %v4092_v61, %s4330_s18 }
0x111e   :  { %v1996_v13 = vmul.f32 1.442695, %v1991_v34  ;;  %v3035_v34 = vpack.i.bf16 %v4118_v46, %v4078_v55 }
0x1120   :  { %3131 = vpow2.f32 %v1996_v13 }
0x1124   :  { %2052 = vrot.lane.b32.xlu1 %v4066_v31, %s4335_s15 }
0x1126   :  { %v3132_v7 = vpop.eup %3131 }
0x1127   :  { %v2005_v56 = vsel %vm4360_vm11, %v3132_v7, 0.0  ;;  %vm4372_vm11 = vmmov %vm4352_vm1 }
0x1128   :  { %2006 = vadd.xlane.f32.xlu0 %v2005_v56 }
0x1158   :  { %v2010_v39 = vpop.xlane.xlu2 %2009 }
0x1159   :  { %3133 = vrcp.f32 %v2010_v39 }
0x115f   :  { %v3134_v42 = vpop.eup %3133 }
0x1160   :  { %v2020_v25 = vmul.f32 %v3134_v42, %v3126_v6  ;;  %v2170_v36 = vpop.permute.xlu2 %2169 }
0x1161   :  { %v2259_v40 = vrot.slane %v2170_v36, 2 }
0x1162   :  { %2898 = vmatmul.msk.f32.vlgmr.msra.gmra.mxu2 %vm4361_vm12, %v2020_v25  ;;  %vm4373_vm12 = vmmov %vm4352_vm1 }
0x1163   :  { %2910 = vmatpush.xpose.msk.msrb.mxu0 %vm4348_vm2, %v2259_v40  ;;  %v2260_v33 = vsel %vm4362_vm13, %v2258_v26, %v2259_v40  ;;  %vm4374_vm2 = vmmov %vm4352_vm1 }
0x1164   :  { %vm4375_vm13 = vmmov %vm4352_vm1 }
0x1167   :  { %2911 = vmatpush.xpose.msk.msrb.mxu0 %vm4363_vm15, %v2260_v33  ;;  %vm4376_vm15 = vmmov %vm4352_vm1 }
0x1168   :  { %v2055_v31 = vpop.permute.xlu2 %2054 }
0x1169   :  { %2895 = vmatpush.msk.msra.mxu1 %vm398_vm4, %v2055_v31 }
0x116a   :  { %2906 = vmatmul.msk.f32.vlgmr.msrb.gmra.mxu2 %vm4364_vm14, %v2159_v24  ;;  %vm4377_vm14 = vmmov %vm4352_vm1 }
0x1176   :  { %v2013_v8 = vpop.xlane.xlu1 %2012 }
0x1177   :  { %3135 = vrcp.f32 %v2013_v8 }
0x117d   :  { %v3136_v30 = vpop.eup %3135 }
0x117e   :  { %v2021_v41 = vmul.f32 %v3136_v30, %v3128_v15 }
0x1180   :  { %2900 = vmatmul.msk.f32.vlgmr.msrb.gmra.mxu3 %vm4352_vm1, %v2021_v41 }
0x1188   :  { %2909 = vmatmul.msk.f32.vlgmr.msra.gmra.mxu3 %vm4365_vm3, %v2161_v44  ;;  %vm4378_vm3 = vmmov %vm4352_vm1 }
0x118e   :  { %v2163_v47 = vpop.permute.xlu1 %2162 }
0x118f   :  { %2912 = vmatmul.msk.f32.vlgmr.msrb.gmra.mxu0 %vm4366_vm5, %v2163_v47  ;;  %vm4379_vm5 = vmmov %vm4352_vm1 }
0x1191   :  { %v4153_v10 = vpop.f32.mrf.mxu3 }
0x1196   :  { %v2053_v45 = vpop.permute.xlu1 %2052 }
0x1197   :  { %2077 = vmatpush.msra.mxu1 %v2053_v45 }
0x1199   :  { %2901 = vmatpush.xpose.msk.msrb.mxu1 %vm4367_vm6, %v4138_v49  ;;  %vm4380_vm6 = vmmov %vm4352_vm1 }
0x119b   :  { %v2007_v5 = vpop.xlane.xlu0 %2006 }
0x119c   :  { %3137 = vrcp.f32 %v2007_v5 }
0x119d   :  { %2902 = vmatpush.xpose.msk.msrb.mxu1 %vm4369_vm8, %v2173_v21  ;;  %vm4382_vm8 = vmmov %vm4352_vm1 }
0x11a2   :  { %v3138_v60 = vpop.eup %3137 }
0x11a3   :  { %v2019_v63 = vmul.f32 %v3138_v60, %v3132_v7 }
0x11a5   :  { %2896 = vmatmul.msk.f32.vlgmr.msra.gmra.mxu1 %vm4370_vm9, %v2019_v63 }
0x11ad   :  { %2903 = vmatmul.msk.f32.vlgmr.msrb.gmra.mxu1 %vm4371_vm10, %v4092_v61 }
0x11e5   :  { %v4149_v29 = vpop.f32.mrf.mxu2 }
0x11ed   :  { %v2226_v28 = vpop.f32.mrf.mxu2 }
0x11ee   :  { %v2227_v27 = vadd.f32 %v2226_v28, %v3760_v62 }
0x11f0   :  { %v2290_v54 = vsel %vm4372_vm11, %v2227_v27, -inf }
0x11f1   :  { %2291 = vmax.xlane.f32.xlu2 %v2290_v54 }
0x1203   :  { %v4155_v1 = vpop.f32.mrf.mxu3 }
0x120b   :  { %v2255_v20 = vpop.f32.mrf.mxu3 }
0x120c   :  { %v2256_v0 = vadd.f32 %v2255_v20, %v3760_v62  ;;  %v2284_v48 = vpop.f32.mrf.mxu0 }
0x120d   :  { %v2285_v59 = vadd.f32 %v2284_v48, %v3760_v62  ;;  %v2986_v48 = vld [vmem:[%s4261_s20 + $0x18] sm:$0xff] }
0x120e   :  { %v2293_v61 = vsel %vm4373_vm12, %v2256_v0, -inf  ;;  %vm4390_vm12 = vcmask 195584  }
0x120f   :  { %2294 = vmax.xlane.f32.xlu1 %v2293_v61  ;;  %v2296_v38 = vsel %vm4374_vm2, %v2285_v59, -inf  ;;  %vm4391_vm2 = vmmov %vm4390_vm12 }
0x1210   :  { %2297 = vmax.xlane.f32.xlu0 %v2296_v38 }
0x1222   :  { %v4161_v3 = vpop.f32.mrf.mxu1 }
0x122a   :  { %v2197_v32 = vpop.f32.mrf.mxu1 }
0x122b   :  { %v2198_v58 = vadd.f32 %v2197_v32, %v3760_v62 }
0x122d   :  { %v2287_v4 = vsel %vm4375_vm13, %v2198_v58, -inf }
0x122e   :  { %2288 = vmax.xlane.f32.xlu0 %v2287_v4 }
0x1242   :  { %2363 = vrot.lane.b32.xlu0 %v4071_v43, %s4335_s15 }
0x124a   :  { %2423 = vrot.lane.b32.xlu0 %v2259_v40, %s4335_s15 }
0x1252   :  { %2421 = vrot.lane.b32.xlu0 %v2260_v33, %s4335_s15 }
0x125a   :  { %2331 = vrot.lane.b32.xlu0 %v2173_v21, %s4335_s15 }
0x1264   :  { %v2292_v12 = vpop.xlane.xlu2 %2291 }
0x1265   :  { %v2300_v57 = vsub.f32 %v2227_v27, %v2292_v12 }
0x1267   :  { %v2305_v51 = vmul.f32 1.442695, %v2300_v57 }
0x1282   :  { %v2295_v6 = vpop.xlane.xlu1 %2294 }
0x1283   :  { %v2301_v14 = vsub.f32 %v2256_v0, %v2295_v6  ;;  %v2298_v16 = vpop.xlane.xlu0 %2297 }
0x1284   :  { %v2302_v17 = vsub.f32 %v2285_v59, %v2298_v16  ;;  %v2985_v59 = vld [vmem:[%s4261_s20 + $0x10] sm:$0xff] }
0x1285   :  { %v2307_v15 = vmul.f32 1.442695, %v2301_v14 }
0x1286   :  { %v2309_v62 = vmul.f32 1.442695, %v2302_v17 }
0x1287   :  { %3139 = vpow2.f32 %v2307_v15 }
0x1288   :  { %3141 = vpow2.f32 %v2309_v62 }
0x1289   :  { %3143 = vpow2.f32 %v2305_v51 }
0x128d   :  { %v3140_v35 = vpop.eup %3139 }
0x128e   :  { %v3142_v2 = vpop.eup %3141  ;;  %v2317_v43 = vsel %vm4376_vm15, %v3140_v35, 0.0 }
0x128f   :  { %2318 = vadd.xlane.f32.xlu1 %v2317_v43  ;;  %v2320_v52 = vsel %vm4377_vm14, %v3142_v2, 0.0  ;;  %v3144_v23 = vpop.eup %3143 }
0x1290   :  { %2321 = vadd.xlane.f32.xlu2 %v2320_v52  ;;  %v2314_v24 = vsel %vm4352_vm1, %v3144_v23, 0.0 }
0x1298   :  { %2315 = vadd.xlane.f32.xlu2 %v2314_v24 }
0x12a1   :  { %v2289_v11 = vpop.xlane.xlu0 %2288 }
0x12a2   :  { %v2299_v56 = vsub.f32 %v2198_v58, %v2289_v11 }
0x12a4   :  { %v2303_v39 = vmul.f32 1.442695, %v2299_v56 }
0x12a6   :  { %3145 = vpow2.f32 %v2303_v39 }
0x12a8   :  { %2393 = vrot.lane.b32.xlu1 %v4110_v53, %s4335_s15 }
0x12ac   :  { %v3146_v53 = vpop.eup %3145 }
0x12ad   :  { %v2311_v25 = vsel %vm4378_vm3, %v3146_v53, 0.0 }
0x12b0   :  { %3036 = vrot.lane.b32.xlu2 %v3035_v34, %s4335_s15 }
0x12b4   :  { %v2364_v13 = vpop.permute.xlu0 %2363 }
0x12b5   :  { %2915 = vmatpush.msk.msra.mxu2 %vm398_vm4, %v2364_v13 }
0x12b8   :  { %2333 = vrot.lane.b32.xlu2 %v4138_v49, %s4335_s15 }
0x12bc   :  { %v2424_v7 = vpop.permute.xlu0 %2423 }
0x12bd   :  { %2919 = vmatpush.msk.msra.mxu0 %vm398_vm4, %v2424_v7 }
0x12c4   :  { %v2422_v42 = vpop.permute.xlu0 %2421 }
0x12c5   :  { %2446 = vmatpush.msra.mxu0 %v2422_v42 }
0x12cc   :  { %v2332_v50 = vpop.permute.xlu0 %2331 }
0x12d2   :  { %2312 = vadd.xlane.f32.xlu1 %v2311_v25 }
0x1302   :  { %v2319_v26 = vpop.xlane.xlu1 %2318 }
0x1303   :  { %v2322_v55 = vpop.xlane.xlu2 %2321 }
0x1304   :  { %3147 = vrcp.f32 %v2322_v55 }
0x130a   :  { %v3148_v46 = vpop.eup %3147 }
0x130b   :  { %v2330_v36 = vmul.f32 %v3148_v46, %v3142_v2  ;;  %v2316_v40 = vpop.xlane.xlu2 %2315 }
0x130c   :  { %3149 = vrcp.f32 %v2316_v40 }
0x130d   :  { %2920 = vmatmul.msk.f32.vlgmr.msra.gmra.mxu0 %vm4379_vm5, %v2330_v36  ;;  %3151 = vrcp.f32 %v2319_v26  ;;  %v2988_v26 = vld [vmem:[%s4265_s24 + $0x8] sm:$0xff] }
0x1312   :  { %v3150_v33 = vpop.eup %3149 }
0x1313   :  { %v3037_v31 = vpop.permute.xlu2 %3036  ;;  %v2328_v30 = vmul.f32 %v3150_v33, %v3144_v23  ;;  %v3152_v41 = vpop.eup %3151  ;;  %v2987_v33 = vld [vmem:[%s4265_s24] sm:$0xff] }
0x1314   :  { %v3038_v8 = vunpack.i.l.bf16 %v3037_v31  ;;  %v3039_v47 = vunpack.i.h.bf16 %v3037_v31  ;;  %v2329_v45 = vmul.f32 %v3152_v41, %v3140_v35  ;;  %v3074_v35 = vld [vmem:[%s4262_s21 + $0x1] ss:$0 sm:$0xff] }
0x1316   :  { %2386 = vmatpush.msra.mxu2 %v3038_v8 }
0x1317   :  { %2916 = vmatmul.msk.f32.vlgmr.msra.gmra.mxu2 %vm4380_vm6, %v2328_v30 }
0x1318   :  { %2594 = vmatpush.bf16.msrb.mxu2 %v2988_v26 }
0x131a   :  { %v2394_v44 = vpop.permute.xlu1 %2393 }
0x131b   :  { %v2334_v49 = vpop.permute.xlu2 %2333  ;;  %2917 = vmatpush.msk.msrb.mxu3 %vm398_vm4, %v2394_v44 }
0x131c   :  { %2913 = vmatpush.msk.msra.mxu1 %vm398_vm4, %v2334_v49  ;;  %vm4386_vm4 = vmmov %vm4371_vm10  ;;  %vm4388_vm10 = vcmask 130048   ;;  %2595 = vmatpush.bf16.msrb.mxu2 %v2987_v33 }
0x131d   :  { %2416 = vmatpush.msrb.mxu3 %v3039_v47  ;;  %vm4387_vm9 = vmmov %vm4386_vm4 }
0x131e   :  { %2356 = vmatpush.msra.mxu1 %v2332_v50  ;;  %2918 = vmatmul.msk.f32.vlgmr.msrb.gmra.mxu3 %vm4381_vm7, %v2329_v45  ;;  %vm4389_vm11 = vmmov %vm4388_vm10 }
0x1320   :  { %2498 = vmatpush.bf16.msrb.mxu1 %v2986_v48 }
0x1324   :  { %2499 = vmatpush.bf16.msrb.mxu1 %v2985_v59 }
0x1345   :  { %v2313_v5 = vpop.xlane.xlu1 %2312 }
0x1346   :  { %3153 = vrcp.f32 %v2313_v5 }
0x134c   :  { %v3154_v21 = vpop.eup %3153 }
0x134d   :  { %v2327_v60 = vmul.f32 %v3154_v21, %v3146_v53 }
0x134f   :  { %2914 = vmatmul.msk.f32.vlgmr.msra.gmra.mxu1 %vm4382_vm8, %v2327_v60 }
0x138a   :  { %v2448_v27 = vpop.f32.mrf.mxu0 }
0x138b   :  { %v3050_v0 = vpack.i.bf16 %v2448_v27, %v4155_v1 }
0x139a   :  { %v2388_v63 = vpop.f32.mrf.mxu2 }
0x139b   :  { %v3040_v28 = vpack.i.bf16 %v2388_v63, %v4161_v3 }
0x139d   :  { %3041 = vrot.lane.b32.xlu2 %v3040_v28, %s4383_s0 }
0x13a1   :  { %v2418_v54 = vpop.f32.mrf.mxu3 }
0x13a2   :  { %v3045_v20 = vpack.i.bf16 %v2418_v54, %v4149_v29 }
0x13a4   :  { %3046 = vrot.lane.b32.xlu0 %v3045_v20, %s4384_s28 }
0x13a5   :  { %3051 = vrot.lane.b32.xlu2 %v3050_v0, %s4385_s12  ;;  %v3076_v0 = vld [vmem:[%s4264_s23 + $0x1] ss:$0 sm:$0xff]  ;;  %s2610_s23 = sshll.u32 %s4266_s25, 4  ;;  %s2611_s23 = int_to_ptr.hbm [resolvable:$true] %s2610_s23 }
0x13cc   :  { %v2358_v1 = vpop.f32.mrf.mxu1 }
0x13f7   :  { %v3042_v61 = vpop.permute.xlu2 %3041 }
0x13f8   :  { %v3044_v38 = vunpack.i.h.bf16 %v3042_v61  ;;  %v3043_v3 = vunpack.i.l.bf16 %v3042_v61 }
0x13fa   :  { %v2154_v6 = vsel %vm4386_vm4, %v4153_v10, %v3043_v3  ;;  %v2463_v12 = vsel %vm4387_vm9, %v2358_v1, %v3044_v38 }
0x13ff   :  { %v3052_v29 = vpop.permute.xlu2 %3051 }
0x1400   :  { %v3054_v14 = vunpack.i.h.bf16 %v3052_v29  ;;  %v3053_v16 = vunpack.i.l.bf16 %v3052_v29 }
0x1416   :  { %v3047_v32 = vpop.permute.xlu0 %3046 }
0x1417   :  { %v3049_v58 = vunpack.i.h.bf16 %v3047_v32  ;;  %v3048_v4 = vunpack.i.l.bf16 %v3047_v32 }
0x1419   :  { %v2155_v17 = vsel %vm4388_vm10, %v2154_v6, %v3048_v4  ;;  %v2464_v15 = vsel %vm4389_vm11, %v2463_v12, %v3049_v58 }
0x141a   :  { %v2156_v57 = vsel %vm4390_vm12, %v2155_v17, %v3053_v16  ;;  %v2465_v62 = vsel %vm4391_vm2, %v2464_v15, %v3054_v14 }
0x141b   :  { %v2466_v51 = vpack.c.bf16 %v2465_v62, %v2156_v57 }
0x141d   :  { %2934 = vmatmul.msk.bf16.vlgmr.msrb.gmra.mxu1 %vm147_vm0, %v2466_v51 }
0x149a   :  { %v2501_v10 = vpop.f32.mrf.mxu1 }
0x149b   :  { %v2502_v2 = vadd.f32 %v3074_v35, %v2501_v10 }
0x149d   :  { %v2506_v43 = vadd.f32 %v2502_v2, %v4028_v18 }
0x149f   :  { %v2512_v52 = vsel %vm147_vm0, %v2506_v43, 0.0 }
0x14a0   :  { %2513 = vadd.xlane.f32.xlu0 %v2512_v52 }
0x14a2   :  { %v2503_v23 = vpop.f32.mrf.mxu1 }
0x14a3   :  { %v2504_v24 = vadd.f32 %v3074_v35, %v2503_v23 }
0x14a5   :  { %v2507_v11 = vadd.f32 %v2504_v24, %v4031_v22 }
0x14a7   :  { %v2515_v34 = vsel %vm147_vm0, %v2507_v11, 0.0 }
0x14a8   :  { %2516 = vadd.xlane.f32.xlu2 %v2515_v34 }
0x1513   :  { %v2514_v13 = vpop.xlane.xlu0 %2513 }
0x1514   :  { %v2518_v7 = vmul.f32 %v2514_v13, %v3393_v37 }
0x1516   :  { %v2520_v56 = vsub.f32 %v2506_v43, %v2518_v7 }
0x1518   :  { %v2522_v39 = vmul.f32 %v2520_v56, %v2520_v56 }
0x151a   :  { %v2524_v42 = vsel %vm147_vm0, %v2522_v39, 0.0 }
0x151b   :  { %v2517_v53 = vpop.xlane.xlu2 %2516  ;;  %2525 = vadd.xlane.f32.xlu1 %v2524_v42 }
0x151c   :  { %v2519_v18 = vmul.f32 %v2517_v53, %v3393_v37 }
0x151e   :  { %v2521_v25 = vsub.f32 %v2507_v11, %v2519_v18 }
0x1520   :  { %v2523_v55 = vmul.f32 %v2521_v25, %v2521_v25 }
0x1522   :  { %v2527_v46 = vsel %vm147_vm0, %v2523_v55, 0.0 }
0x1523   :  { %2528 = vadd.xlane.f32.xlu1 %v2527_v46 }
0x158e   :  { %v2526_v22 = vpop.xlane.xlu1 %2525 }
0x158f   :  { %v2530_v36 = vmul.f32 %v2526_v22, %v3393_v37 }
0x1591   :  { %v2532_v40 = vadd.f32 1e-05, %v2530_v36 }
0x1593   :  { %3155 = vrsqrt.f32 %v2532_v40  ;;  %vm2540_vm15 = vweird.f32 %v2532_v40 }
0x1596   :  { %v2529_v31 = vpop.xlane.xlu1 %2528 }
0x1597   :  { %v2531_v8 = vmul.f32 %v2529_v31, %v3393_v37  ;;  %v3075_v37 = vld [vmem:[%s4263_s22 + $0x1] ss:$0 sm:$0xff] }
0x1599   :  { %v3156_v30 = vpop.eup %3155  ;;  %v2533_v41 = vadd.f32 1e-05, %v2531_v8 }
0x159a   :  { %v2535_v44 = vmul.f32 %v3156_v30, %v2532_v40  ;;  %vm2541_vm13 = vweird.f32 %v3156_v30 }
0x159b   :  { %3157 = vrsqrt.f32 %v2533_v41  ;;  %vm2542_vm14 = vmor %vm2540_vm15, %vm2541_vm13  ;;  %vm2550_vm3 = vweird.f32 %v2533_v41 }
0x159c   :  { %v2536_v47 = vmul.f32 %v3156_v30, %v2535_v44 }
0x159e   :  { %v2537_v49 = vmul.f32 0.5, %v2536_v47 }
0x15a0   :  { %v2538_v45 = vsub.f32 1.5, %v2537_v49 }
0x15a1   :  { %v3158_v50 = vpop.eup %3157 }
0x15a2   :  { %v2539_v5 = vmul.f32 %v3156_v30, %v2538_v45  ;;  %v2545_v21 = vmul.f32 %v3158_v50, %v2533_v41  ;;  %vm2551_vm1 = vweird.f32 %v3158_v50 }
0x15a3   :  { %vm2552_vm5 = vmor %vm2550_vm3, %vm2551_vm1 }
0x15a4   :  { %v2543_v60 = vsel %vm2542_vm14, %v3156_v30, %v2539_v5  ;;  %v2546_v63 = vmul.f32 %v3158_v50, %v2545_v21 }
0x15a5   :  { %v2554_v27 = vmul.f32 %v2543_v60, %v2520_v56 }
0x15a6   :  { %v2547_v28 = vmul.f32 0.5, %v2546_v63 }
0x15a7   :  { %v2559_v48 = vmul.f32 %v3075_v37, %v2554_v27 }
0x15a8   :  { %v2548_v54 = vsub.f32 1.5, %v2547_v28 }
0x15a9   :  { %v2564_v38 = vadd.f32 %v3076_v0, %v2559_v48 }
0x15aa   :  { %v2549_v20 = vmul.f32 %v3158_v50, %v2548_v54 }
0x15ab   :  { %v2566_v32 = vmul.f32 %v2564_v38, %v3417_v9 }
0x15ac   :  { %v2553_v59 = vsel %vm2552_vm5, %v3158_v50, %v2549_v20 }
0x15ad   :  { %v2555_v61 = vmul.f32 %v2553_v59, %v2521_v25 }
0x15af   :  { %v2560_v3 = vmul.f32 %v3075_v37, %v2555_v61 }
0x15b1   :  { %v2565_v29 = vadd.f32 %v3076_v0, %v2560_v3 }
0x15b3   :  { %v2567_v1 = vmul.f32 %v2565_v29, %v3422_v19 }
0x15b5   :  { %v2568_v58 = vpack.c.bf16 %v2567_v1, %v2566_v32 }
0x15b7   :  { %2945 = vmatmul.msk.bf16.vlgmr.msrb.gmra.mxu2 %vm147_vm0, %v2568_v58 }
0x163a   :  { %v2597_v4 = vpop.f32.mrf.mxu2 }
0x163b   :  { %2602 = vst [vmem:[#allocation4] sm:$0xff] %v2597_v4 }
0x1642   :  { %v2599_v6 = vpop.f32.mrf.mxu2 }
0x1643   :  { %2603 = vst [vmem:[#allocation4 + $0x8] sm:$0xff] %v2599_v6 }
0x1644   :  { %2616 = dma.vmem_to_hbm [thread:$0]  %s2609_s26, 256, %s2611_s23, [#allocation5], %s3212_s19, %s3212_s19, %s4383_s0  }
0x1645   :  { %3198 = dma.done.wait [#allocation5], 256  }
0x1646   :  { %3199 = vsyncadd [#allocation5], 4294967040 }
0x1647   :  { %2621 = vsyncpa [#allocation5], 1 }

</bundles_post_ra>
